<compile_context>
chip_gen: v7x
topology: tpu7x:2x2x1
jax: 0.10.0
libtpu: 0.0.40
codegen_flags: <defaults>
</compile_context>

<pallas_src>
import functools

import jax
import jax.numpy as jnp
import numpy as np
from jax import lax
from jax.experimental import pallas as pl
from jax.experimental.pallas import tpu as pltpu

FILTERS = [1, 32, 32, 64, 64, 128, 128]
BN_EPS = 1e-5


# ----------------------------- Pallas kernels ------------------------------ #

def conv3_bn_relu_kernel(x0_ref, x1_ref, x2_ref, w0_ref, w1_ref, w2_ref,
                         shift_ref, o_ref):
    # x*_ref: [tm, (W+2)*Cin] bf16 H-tap rows; w*_ref: [(W+2)*Cin, Wo*Cout] bf16 banded
    # matrices (BN scale folded in); shift_ref: [1, Wo*Cout] f32 folded BN shift.
    acc = jnp.dot(x0_ref[...], w0_ref[...], preferred_element_type=jnp.float32)
    acc = acc + jnp.dot(x1_ref[...], w1_ref[...], preferred_element_type=jnp.float32)
    acc = acc + jnp.dot(x2_ref[...], w2_ref[...], preferred_element_type=jnp.float32)
    o_ref[...] = jnp.maximum(acc + shift_ref[...], 0.0).astype(o_ref.dtype)


def tail_conv_gru_kernel(x0_ref, x1_ref, x2_ref, w0_ref, w1_ref, w2_ref, shift_ref,
                         wi_ref, wh_ref, bi_ref, bh_ref, h_ref, gi_ref, *, B, T, H):
    # Last conv layer fused with the GRU.  Conv rows are ordered (t, b), so y is already
    # the flattened [T, B, F] sequence the GRU consumes.
    y = jnp.dot(x0_ref[...], w0_ref[...], preferred_element_type=jnp.float32)
    y = y + jnp.dot(x1_ref[...], w1_ref[...], preferred_element_type=jnp.float32)
    y = y + jnp.dot(x2_ref[...], w2_ref[...], preferred_element_type=jnp.float32)
    y = jnp.maximum(y + shift_ref[...], 0.0)                    # [T*B, F] conv+BN+ReLU

    # Input-side GRU projections for ALL timesteps in one GEMM (hoisted out of the
    # serial recurrence).
    gi_ref[...] = jnp.dot(y, wi_ref[...],
                          preferred_element_type=jnp.float32) + bi_ref[...]

    # Hoisted bias broadcast (JAX does not CSE broadcast_in_dim inside loops).
    bh = jnp.broadcast_to(bh_ref[...], (B, 3 * H))

    # TODO(synk): gate slices sit at lane offsets H / 2H; for large H pad each gate's
    # column block to a 128-lane multiple to keep the recurrence vreg-aligned.
    def step(t, h):
        gi = gi_ref[pl.ds(t * B, B), :]                          # [B, 3H]
        gh = jnp.dot(h, wh_ref[...],                             # fused r|z|n
                     preferred_element_type=jnp.float32) + bh    # [B, 3H]
        r = jax.nn.sigmoid(gi[:, :H] + gh[:, :H])
        z = jax.nn.sigmoid(gi[:, H:2 * H] + gh[:, H:2 * H])
        n = jnp.tanh(gi[:, 2 * H:] + r * gh[:, 2 * H:])
        return (1.0 - z) * n + z * h

    h0 = jnp.zeros((B, H), jnp.float32)
    # TODO(synk): for production T/B, grid the batch axis across TensorCores and stream
    # gi via BlockSpec instead of keeping it fully VMEM-resident (v7x 64 MiB budget).
    h_ref[...] = lax.fori_loop(0, T, step, h0, unroll=True)


# ------------------------------ JAX wrappers -------------------------------- #

def _round_up(x, m):
    return ((x + m - 1) // m) * m


def _pick_tm(m):
    """Row-tile size: >=2 grid blocks when possible (v7x two-TC split), multiple of 8,
    capped at 1024 rows (VMEM stays far below the default scoped limit)."""
    if m < 16:
        return m
    return min(1024, _round_up((m + 1) // 2, 8))


def conv_bn_relu(x, w0, w1, w2, shift):
    """NHWC conv 3x3 / stride 2 / pad 1 + folded eval-mode BN + ReLU.

    x: [B, H, W, Cin] bf16 -> [B, Ho, Wo, Cout] bf16 (feature layout w*Cout + c)."""
    B, H, W, C = x.shape
    Ho = (H - 1) // 2 + 1
    Wo = (W - 1) // 2 + 1
    K = (W + 2) * C
    N = shift.shape[1]                      # Wo * Cout
    Cout = N // Wo
    M = B * Ho

    # Three stride-2 H-decimated views of the zero-padded activation (one per kh tap);
    # padding along W is handled by the zeros in xp, the kw taps live in the banded w*.
    xp = jnp.pad(x, ((0, 0), (1, 1), (1, 1), (0, 0)))
    taps = [xp[:, k::2][:, :Ho].reshape(M, K) for k in range(3)]

    tm = _pick_tm(M)
    grid = (pl.cdiv(M, tm),)
    # TODO(synk): mark the grid-invariant weight/shift blocks pipeline_mode=pl.Buffered(1)
    # to skip double-buffering them once VMEM pressure matters.
    out = pl.pallas_call(
        conv3_bn_relu_kernel,
        out_shape=jax.ShapeDtypeStruct((M, N), jnp.bfloat16),
        grid_spec=pltpu.PrefetchScalarGridSpec(
            num_scalar_prefetch=0,
            grid=grid,
            in_specs=[pl.BlockSpec((tm, K), lambda i: (i, 0)),
                      pl.BlockSpec((tm, K), lambda i: (i, 0)),
                      pl.BlockSpec((tm, K), lambda i: (i, 0)),
                      pl.BlockSpec((K, N), lambda i: (0, 0)),
                      pl.BlockSpec((K, N), lambda i: (0, 0)),
                      pl.BlockSpec((K, N), lambda i: (0, 0)),
                      pl.BlockSpec((1, N), lambda i: (0, 0))],
            out_specs=pl.BlockSpec((tm, N), lambda i: (i, 0))),
        compiler_params=pltpu.CompilerParams(
            dimension_semantics=("parallel",)),
    )(*taps, w0, w1, w2, shift)
    return out.reshape(B, Ho, Wo, Cout)


def tail_conv_gru(x, w0, w1, w2, shift, wi, wh, bi, bh):
    """Fused last conv layer + GRU: x [B, H, W, C] bf16 -> final hidden state [B, Hd]."""
    B, H, W, C = x.shape
    T = (H - 1) // 2 + 1                     # post-conv sequence length
    K = (W + 2) * C
    Hd = wh.shape[0]                         # GRU hidden size

    xp = jnp.pad(x, ((0, 0), (1, 1), (1, 1), (0, 0)))
    # Rows ordered (t, b) so the flattened conv output is already the [T, B, F] sequence.
    taps = [xp[:, k::2][:, :T].transpose(1, 0, 2, 3).reshape(T * B, K)
            for k in range(3)]

    vmem = pl.BlockSpec(memory_space=pltpu.MemorySpace.VMEM)
    kernel = functools.partial(tail_conv_gru_kernel, B=B, T=T, H=Hd)
    return pl.pallas_call(
        kernel,
        out_shape=jax.ShapeDtypeStruct((B, Hd), jnp.float32),
        in_specs=[vmem] * 11,
        out_specs=vmem,
        scratch_shapes=[pltpu.VMEM((T * B, 3 * Hd), jnp.float32)],
    )(*taps, w0, w1, w2, shift, wi, wh, bi, bh)


def reference_encoder_forward(inputs, prep):
    """inputs: [B, num_frames, num_mel] -> [B, embedding_dim]."""
    B, T0, M0 = inputs.shape
    x = inputs.reshape(B, T0, M0, 1).astype(jnp.bfloat16)      # NHWC
    for layer in prep["convs"]:                                 # conv layers 1..5
        x = conv_bn_relu(x, *layer)
    # TODO(synk): layers 3-5 (tiny M) could also be folded into this call with in-kernel
    # H-decimation to further cut launch overhead.
    return tail_conv_gru(x, *prep["tail"])                      # conv layer 6 + GRU


# --------------------- weight preprocessing (outside jit) ------------------- #

def prepare_params(params, num_mel, embedding_dim):
    """Fold BN into banded per-tap conv matrices and pre-permute the GRU weights.

    Runs once, outside the jitted forward (weights/BN stats are inference constants)."""
    conv_prep = []
    W = num_mel
    for (w, b, gamma, beta, mean, var) in params["convs"]:
        Cout, Cin = int(w.shape[0]), int(w.shape[1])
        Wo = (W - 1) // 2 + 1
        Wp = W + 2
        s = gamma / jnp.sqrt(var + BN_EPS)                      # folded BN scale
        shift = jnp.tile((b - mean) * s + beta, Wo).reshape(1, Wo * Cout)
        wmats = []
        for k in range(3):                                      # kh tap
            m = jnp.zeros((Wp * Cin, Wo * Cout), jnp.float32)
            for wo in range(Wo):
                for kw in range(3):
                    w_in = 2 * wo + kw                          # padded input column
                    blk = (w[:, :, k, kw] * s[:, None]).T       # [Cin, Cout], scale folded
                    m = m.at[w_in * Cin:(w_in + 1) * Cin,
                             wo * Cout:(wo + 1) * Cout].set(blk)
            wmats.append(m.astype(jnp.bfloat16))
        conv_prep.append((wmats[0], wmats[1], wmats[2], shift.astype(jnp.float32)))
        W = Wo

    # GRU weights: PyTorch flattens NCHW as feature = c*W' + w; our conv output feature
    # order is w*Cout + c, so permute the input weight rows once.
    w_ih, w_hh, b_ih, b_hh = params["gru"]
    Hd = embedding_dim
    Cl, Wl = FILTERS[-1], W
    wi = (w_ih.reshape(3 * Hd, Cl, Wl).transpose(0, 2, 1)
              .reshape(3 * Hd, Wl * Cl).T).astype(jnp.float32)   # [F, 3H]
    gru_prep = (wi, w_hh.T.astype(jnp.float32),
                b_ih.reshape(1, 3 * Hd).astype(jnp.float32),
                b_hh.reshape(1, 3 * Hd).astype(jnp.float32))
    return {"convs": conv_prep[:-1], "tail": conv_prep[-1] + gru_prep}


# ------------------------- deterministic parameters ------------------------- #

def post_conv_height(height, n_convs):
    for _ in range(n_convs):
        height = (height - 3 + 2) // 2 + 1
    return height


def init_params(key, num_mel, embedding_dim):
    num_layers = len(FILTERS) - 1
    keys = jax.random.split(key, num_layers * 6 + 4)
    ki = 0
    params = {"convs": []}
    for i in range(num_layers):
        cin, cout = FILTERS[i], FILTERS[i + 1]
        bound = 1.0 / np.sqrt(cin * 9)
        w = jax.random.uniform(keys[ki], (cout, cin, 3, 3), jnp.float32, -bound, bound); ki += 1
        b = jax.random.uniform(keys[ki], (cout,), jnp.float32, -bound, bound); ki += 1
        gamma = 1.0 + 0.1 * jax.random.normal(keys[ki], (cout,), jnp.float32); ki += 1
        beta = 0.1 * jax.random.normal(keys[ki], (cout,), jnp.float32); ki += 1
        mean = 0.1 * jax.random.normal(keys[ki], (cout,), jnp.float32); ki += 1
        var = 1.0 + 0.1 * jnp.abs(jax.random.normal(keys[ki], (cout,), jnp.float32)); ki += 1
        params["convs"].append((w, b, gamma, beta, mean, var))

    F = FILTERS[-1] * post_conv_height(num_mel, num_layers)
    H = embedding_dim
    bound = 1.0 / np.sqrt(H)
    w_ih = jax.random.uniform(keys[ki], (3 * H, F), jnp.float32, -bound, bound); ki += 1
    w_hh = jax.random.uniform(keys[ki], (3 * H, H), jnp.float32, -bound, bound); ki += 1
    b_ih = jax.random.uniform(keys[ki], (3 * H,), jnp.float32, -bound, bound); ki += 1
    b_hh = jax.random.uniform(keys[ki], (3 * H,), jnp.float32, -bound, bound); ki += 1
    params["gru"] = (w_ih, w_hh, b_ih, b_hh)
    return params


# --------------------------- pure-JAX reference ----------------------------- #

def reference_forward_jax(inputs, params, num_mel):
    """Faithful NCHW / PyTorch-ordered reference (conv at HIGHEST precision, f32)."""
    B = inputs.shape[0]
    x = inputs.reshape(B, 1, -1, num_mel)
    for (w, b, gamma, beta, mean, var) in params["convs"]:
        y = lax.conv_general_dilated(x, w, window_strides=(2, 2),
                                     padding=((1, 1), (1, 1)),
                                     dimension_numbers=("NCHW", "OIHW", "NCHW"),
                                     precision=lax.Precision.HIGHEST)
        y = y + b[None, :, None, None]
        y = (y - mean[None, :, None, None]) / jnp.sqrt(var[None, :, None, None] + BN_EPS)
        y = y * gamma[None, :, None, None] + beta[None, :, None, None]
        x = jnp.maximum(y, 0.0)
    x = x.transpose(0, 2, 1, 3)
    _, Tp, C, Mp = x.shape
    x = x.reshape(B, Tp, C * Mp)
    w_ih, w_hh, b_ih, b_hh = params["gru"]
    H = w_hh.shape[1]
    h = jnp.zeros((B, H), jnp.float32)
    for t in range(Tp):
        gi = x[:, t] @ w_ih.T + b_ih
        gh = h @ w_hh.T + b_hh
        r = jax.nn.sigmoid(gi[:, :H] + gh[:, :H])
        z = jax.nn.sigmoid(gi[:, H:2 * H] + gh[:, H:2 * H])
        n = jnp.tanh(gi[:, 2 * H:] + r * gh[:, 2 * H:])
        h = (1.0 - z) * n + z * h
    return h


# ---------------------------------- main ------------------------------------ #

if __name__ == "__main__":
    # TODO(synk): BatchNorm2d is implemented in eval/inference mode (running stats folded
    # into per-channel scale/shift); training-mode batch statistics are not computed.
    num_mel = 16
    embedding_dim = 32
    batch = 2
    num_frames = 128  # -> post-conv sequence length of 2 for the GRU

    key = jax.random.PRNGKey(0)
    k_in, k_par = jax.random.split(key)
    inputs = jax.random.normal(k_in, (batch, num_frames, num_mel), jnp.float32)
    params = init_params(k_par, num_mel, embedding_dim)
    prep = prepare_params(params, num_mel, embedding_dim)

    fwd = jax.jit(reference_encoder_forward)
    out = jax.block_until_ready(fwd(inputs, prep))

    ref = reference_forward_jax(inputs, params, num_mel)
    assert out.shape == (batch, embedding_dim)
    # Tolerance reflects bf16 activations/weights (f32 accumulation) vs the HIGHEST-
    # precision f32 reference across 6 conv layers + the GRU.
    np.testing.assert_allclose(np.asarray(out), np.asarray(ref), rtol=3e-2, atol=3e-2)
    print("KERNEL_OK")
</pallas_src>

<mosaic_0001>
module attributes {stable_mosaic.version = 11 : i64} {
  func.func @conv3_bn_relu_kernel(%arg0: i32, %arg1: memref<64x18xbf16, #tpu.memory_space<vmem>>, %arg2: memref<64x18xbf16, #tpu.memory_space<vmem>>, %arg3: memref<64x18xbf16, #tpu.memory_space<vmem>>, %arg4: memref<18x256xbf16, #tpu.memory_space<vmem>>, %arg5: memref<18x256xbf16, #tpu.memory_space<vmem>>, %arg6: memref<18x256xbf16, #tpu.memory_space<vmem>>, %arg7: memref<1x256xf32, #tpu.memory_space<vmem>>, %arg8: memref<64x256xbf16, #tpu.memory_space<vmem>>) attributes {dimension_semantics = [#tpu.dimension_semantics<parallel>], iteration_bounds = array<i64: 2>, scalar_prefetch = 0 : i64, scratch_operands = 0 : i64, tpu.core_type = #tpu.core_type<tc>, window_params = [{transform_indices = @transform_0, window_bounds = array<i64: 64, 18>}, {transform_indices = @transform_1, window_bounds = array<i64: 64, 18>}, {transform_indices = @transform_2, window_bounds = array<i64: 64, 18>}, {pipeline_mode = #tpu.pipeline_mode<synchronous>, transform_indices = @transform_3, window_bounds = array<i64: 18, 256>}, {pipeline_mode = #tpu.pipeline_mode<synchronous>, transform_indices = @transform_4, window_bounds = array<i64: 18, 256>}, {pipeline_mode = #tpu.pipeline_mode<synchronous>, transform_indices = @transform_5, window_bounds = array<i64: 18, 256>}, {pipeline_mode = #tpu.pipeline_mode<synchronous>, transform_indices = @transform_6, window_bounds = array<i64: 1, 256>}, {transform_indices = @transform_7, window_bounds = array<i64: 64, 256>}]} {
    %c0 = arith.constant 0 : index
    %c0_0 = arith.constant 0 : index
    %0 = vector.load %arg1[%c0, %c0_0] : memref<64x18xbf16, #tpu.memory_space<vmem>>, vector<64x18xbf16>
    %c0_1 = arith.constant 0 : index
    %c0_2 = arith.constant 0 : index
    %1 = vector.load %arg4[%c0_1, %c0_2] : memref<18x256xbf16, #tpu.memory_space<vmem>>, vector<18x256xbf16>
    %cst = arith.constant dense<0.000000e+00> : vector<64x256xf32>
    %2 = tpu.matmul %0, %1, %cst {dimension_numbers = #tpu.dot_dimension_numbers<[1], [0], [0], [1], [0, 0, 1, 1], [], []>} : vector<64x18xbf16>, vector<18x256xbf16>, vector<64x256xf32> -> vector<64x256xf32>
    %c0_3 = arith.constant 0 : index
    %c0_4 = arith.constant 0 : index
    %3 = vector.load %arg2[%c0_3, %c0_4] : memref<64x18xbf16, #tpu.memory_space<vmem>>, vector<64x18xbf16>
    %c0_5 = arith.constant 0 : index
    %c0_6 = arith.constant 0 : index
    %4 = vector.load %arg5[%c0_5, %c0_6] : memref<18x256xbf16, #tpu.memory_space<vmem>>, vector<18x256xbf16>
    %cst_7 = arith.constant dense<0.000000e+00> : vector<64x256xf32>
    %5 = tpu.matmul %3, %4, %cst_7 {dimension_numbers = #tpu.dot_dimension_numbers<[1], [0], [0], [1], [0, 0, 1, 1], [], []>} : vector<64x18xbf16>, vector<18x256xbf16>, vector<64x256xf32> -> vector<64x256xf32>
    %6 = arith.addf %2, %5 : vector<64x256xf32>
    %c0_8 = arith.constant 0 : index
    %c0_9 = arith.constant 0 : index
    %7 = vector.load %arg3[%c0_8, %c0_9] : memref<64x18xbf16, #tpu.memory_space<vmem>>, vector<64x18xbf16>
    %c0_10 = arith.constant 0 : index
    %c0_11 = arith.constant 0 : index
    %8 = vector.load %arg6[%c0_10, %c0_11] : memref<18x256xbf16, #tpu.memory_space<vmem>>, vector<18x256xbf16>
    %cst_12 = arith.constant dense<0.000000e+00> : vector<64x256xf32>
    %9 = tpu.matmul %7, %8, %cst_12 {dimension_numbers = #tpu.dot_dimension_numbers<[1], [0], [0], [1], [0, 0, 1, 1], [], []>} : vector<64x18xbf16>, vector<18x256xbf16>, vector<64x256xf32> -> vector<64x256xf32>
    %10 = arith.addf %6, %9 : vector<64x256xf32>
    %c0_13 = arith.constant 0 : index
    %c0_14 = arith.constant 0 : index
    %11 = vector.load %arg7[%c0_13, %c0_14] : memref<1x256xf32, #tpu.memory_space<vmem>>, vector<1x256xf32>
    %12 = vector.broadcast %11 : vector<1x256xf32> to vector<64x256xf32>
    %13 = arith.addf %10, %12 : vector<64x256xf32>
    %cst_15 = arith.constant 0.000000e+00 : f32
    %14 = vector.broadcast %cst_15 : f32 to vector<64x256xf32>
    %15 = arith.maximumf %13, %14 : vector<64x256xf32>
    %16 = arith.truncf %15 : vector<64x256xf32> to vector<64x256xbf16>
    %c0_16 = arith.constant 0 : index
    %c0_17 = arith.constant 0 : index
    %17 = vector.load %arg8[%c0_16, %c0_17] : memref<64x256xbf16, #tpu.memory_space<vmem>>, vector<64x256xbf16>
    tpu.vector_store %arg8[%c0_16, %c0_17], %16 {strides = array<i32>} : memref<64x256xbf16, #tpu.memory_space<vmem>>, vector<64x256xbf16>,
    return
  }
  func.func @transform_0(%arg0: i32) -> (i32, i32) {
    %c0_i32 = arith.constant 0 : i32
    %c0_i32_0 = arith.constant 0 : i32
    return %arg0, %c0_i32 : i32, i32
  }
  func.func @transform_1(%arg0: i32) -> (i32, i32) {
    %c0_i32 = arith.constant 0 : i32
    %c0_i32_0 = arith.constant 0 : i32
    return %arg0, %c0_i32 : i32, i32
  }
  func.func @transform_2(%arg0: i32) -> (i32, i32) {
    %c0_i32 = arith.constant 0 : i32
    %c0_i32_0 = arith.constant 0 : i32
    return %arg0, %c0_i32 : i32, i32
  }
  func.func @transform_3(%arg0: i32) -> (i32, i32) {
    %c0_i32 = arith.constant 0 : i32
    %c0_i32_0 = arith.constant 0 : i32
    %c0_i32_1 = arith.constant 0 : i32
    return %c0_i32, %c0_i32_0 : i32, i32
  }
  func.func @transform_4(%arg0: i32) -> (i32, i32) {
    %c0_i32 = arith.constant 0 : i32
    %c0_i32_0 = arith.constant 0 : i32
    %c0_i32_1 = arith.constant 0 : i32
    return %c0_i32, %c0_i32_0 : i32, i32
  }
  func.func @transform_5(%arg0: i32) -> (i32, i32) {
    %c0_i32 = arith.constant 0 : i32
    %c0_i32_0 = arith.constant 0 : i32
    %c0_i32_1 = arith.constant 0 : i32
    return %c0_i32, %c0_i32_0 : i32, i32
  }
  func.func @transform_6(%arg0: i32) -> (i32, i32) {
    %c0_i32 = arith.constant 0 : i32
    %c0_i32_0 = arith.constant 0 : i32
    %c0_i32_1 = arith.constant 0 : i32
    return %c0_i32, %c0_i32_0 : i32, i32
  }
  func.func @transform_7(%arg0: i32) -> (i32, i32) {
    %c0_i32 = arith.constant 0 : i32
    %c0_i32_0 = arith.constant 0 : i32
    return %arg0, %c0_i32 : i32, i32
  }
}

module attributes {stable_mosaic.version = 11 : i64} {
  func.func @conv3_bn_relu_kernel(%arg0: i32, %arg1: memref<32x320xbf16, #tpu.memory_space<vmem>>, %arg2: memref<32x320xbf16, #tpu.memory_space<vmem>>, %arg3: memref<32x320xbf16, #tpu.memory_space<vmem>>, %arg4: memref<320x128xbf16, #tpu.memory_space<vmem>>, %arg5: memref<320x128xbf16, #tpu.memory_space<vmem>>, %arg6: memref<320x128xbf16, #tpu.memory_space<vmem>>, %arg7: memref<1x128xf32, #tpu.memory_space<vmem>>, %arg8: memref<32x128xbf16, #tpu.memory_space<vmem>>) attributes {dimension_semantics = [#tpu.dimension_semantics<parallel>], iteration_bounds = array<i64: 2>, scalar_prefetch = 0 : i64, scratch_operands = 0 : i64, tpu.core_type = #tpu.core_type<tc>, window_params = [{transform_indices = @transform_0, window_bounds = array<i64: 32, 320>}, {transform_indices = @transform_1, window_bounds = array<i64: 32, 320>}, {transform_indices = @transform_2, window_bounds = array<i64: 32, 320>}, {pipeline_mode = #tpu.pipeline_mode<synchronous>, transform_indices = @transform_3, window_bounds = array<i64: 320, 128>}, {pipeline_mode = #tpu.pipeline_mode<synchronous>, transform_indices = @transform_4, window_bounds = array<i64: 320, 128>}, {pipeline_mode = #tpu.pipeline_mode<synchronous>, transform_indices = @transform_5, window_bounds = array<i64: 320, 128>}, {pipeline_mode = #tpu.pipeline_mode<synchronous>, transform_indices = @transform_6, window_bounds = array<i64: 1, 128>}, {transform_indices = @transform_7, window_bounds = array<i64: 32, 128>}]} {
    %c0 = arith.constant 0 : index
    %c0_0 = arith.constant 0 : index
    %0 = vector.load %arg1[%c0, %c0_0] : memref<32x320xbf16, #tpu.memory_space<vmem>>, vector<32x320xbf16>
    %c0_1 = arith.constant 0 : index
    %c0_2 = arith.constant 0 : index
    %1 = vector.load %arg4[%c0_1, %c0_2] : memref<320x128xbf16, #tpu.memory_space<vmem>>, vector<320x128xbf16>
    %cst = arith.constant dense<0.000000e+00> : vector<32x128xf32>
    %2 = tpu.matmul %0, %1, %cst {dimension_numbers = #tpu.dot_dimension_numbers<[1], [0], [0], [1], [0, 0, 1, 1], [], []>} : vector<32x320xbf16>, vector<320x128xbf16>, vector<32x128xf32> -> vector<32x128xf32>
    %c0_3 = arith.constant 0 : index
    %c0_4 = arith.constant 0 : index
    %3 = vector.load %arg2[%c0_3, %c0_4] : memref<32x320xbf16, #tpu.memory_space<vmem>>, vector<32x320xbf16>
    %c0_5 = arith.constant 0 : index
    %c0_6 = arith.constant 0 : index
    %4 = vector.load %arg5[%c0_5, %c0_6] : memref<320x128xbf16, #tpu.memory_space<vmem>>, vector<320x128xbf16>
    %cst_7 = arith.constant dense<0.000000e+00> : vector<32x128xf32>
    %5 = tpu.matmul %3, %4, %cst_7 {dimension_numbers = #tpu.dot_dimension_numbers<[1], [0], [0], [1], [0, 0, 1, 1], [], []>} : vector<32x320xbf16>, vector<320x128xbf16>, vector<32x128xf32> -> vector<32x128xf32>
    %6 = arith.addf %2, %5 : vector<32x128xf32>
    %c0_8 = arith.constant 0 : index
    %c0_9 = arith.constant 0 : index
    %7 = vector.load %arg3[%c0_8, %c0_9] : memref<32x320xbf16, #tpu.memory_space<vmem>>, vector<32x320xbf16>
    %c0_10 = arith.constant 0 : index
    %c0_11 = arith.constant 0 : index
    %8 = vector.load %arg6[%c0_10, %c0_11] : memref<320x128xbf16, #tpu.memory_space<vmem>>, vector<320x128xbf16>
    %cst_12 = arith.constant dense<0.000000e+00> : vector<32x128xf32>
    %9 = tpu.matmul %7, %8, %cst_12 {dimension_numbers = #tpu.dot_dimension_numbers<[1], [0], [0], [1], [0, 0, 1, 1], [], []>} : vector<32x320xbf16>, vector<320x128xbf16>, vector<32x128xf32> -> vector<32x128xf32>
    %10 = arith.addf %6, %9 : vector<32x128xf32>
    %c0_13 = arith.constant 0 : index
    %c0_14 = arith.constant 0 : index
    %11 = vector.load %arg7[%c0_13, %c0_14] : memref<1x128xf32, #tpu.memory_space<vmem>>, vector<1x128xf32>
    %12 = vector.broadcast %11 : vector<1x128xf32> to vector<32x128xf32>
    %13 = arith.addf %10, %12 : vector<32x128xf32>
    %cst_15 = arith.constant 0.000000e+00 : f32
    %14 = vector.broadcast %cst_15 : f32 to vector<32x128xf32>
    %15 = arith.maximumf %13, %14 : vector<32x128xf32>
    %16 = arith.truncf %15 : vector<32x128xf32> to vector<32x128xbf16>
    %c0_16 = arith.constant 0 : index
    %c0_17 = arith.constant 0 : index
    %17 = vector.load %arg8[%c0_16, %c0_17] : memref<32x128xbf16, #tpu.memory_space<vmem>>, vector<32x128xbf16>
    tpu.vector_store %arg8[%c0_16, %c0_17], %16 {strides = array<i32>} : memref<32x128xbf16, #tpu.memory_space<vmem>>, vector<32x128xbf16>,
    return
  }
  func.func @transform_0(%arg0: i32) -> (i32, i32) {
    %c0_i32 = arith.constant 0 : i32
    %c0_i32_0 = arith.constant 0 : i32
    return %arg0, %c0_i32 : i32, i32
  }
  func.func @transform_1(%arg0: i32) -> (i32, i32) {
    %c0_i32 = arith.constant 0 : i32
    %c0_i32_0 = arith.constant 0 : i32
    return %arg0, %c0_i32 : i32, i32
  }
  func.func @transform_2(%arg0: i32) -> (i32, i32) {
    %c0_i32 = arith.constant 0 : i32
    %c0_i32_0 = arith.constant 0 : i32
    return %arg0, %c0_i32 : i32, i32
  }
  func.func @transform_3(%arg0: i32) -> (i32, i32) {
    %c0_i32 = arith.constant 0 : i32
    %c0_i32_0 = arith.constant 0 : i32
    %c0_i32_1 = arith.constant 0 : i32
    return %c0_i32, %c0_i32_0 : i32, i32
  }
  func.func @transform_4(%arg0: i32) -> (i32, i32) {
    %c0_i32 = arith.constant 0 : i32
    %c0_i32_0 = arith.constant 0 : i32
    %c0_i32_1 = arith.constant 0 : i32
    return %c0_i32, %c0_i32_0 : i32, i32
  }
  func.func @transform_5(%arg0: i32) -> (i32, i32) {
    %c0_i32 = arith.constant 0 : i32
    %c0_i32_0 = arith.constant 0 : i32
    %c0_i32_1 = arith.constant 0 : i32
    return %c0_i32, %c0_i32_0 : i32, i32
  }
  func.func @transform_6(%arg0: i32) -> (i32, i32) {
    %c0_i32 = arith.constant 0 : i32
    %c0_i32_0 = arith.constant 0 : i32
    %c0_i32_1 = arith.constant 0 : i32
    return %c0_i32, %c0_i32_0 : i32, i32
  }
  func.func @transform_7(%arg0: i32) -> (i32, i32) {
    %c0_i32 = arith.constant 0 : i32
    %c0_i32_0 = arith.constant 0 : i32
    return %arg0, %c0_i32 : i32, i32
  }
}

module attributes {stable_mosaic.version = 11 : i64} {
  func.func @conv3_bn_relu_kernel(%arg0: i32, %arg1: memref<16x192xbf16, #tpu.memory_space<vmem>>, %arg2: memref<16x192xbf16, #tpu.memory_space<vmem>>, %arg3: memref<16x192xbf16, #tpu.memory_space<vmem>>, %arg4: memref<192x128xbf16, #tpu.memory_space<vmem>>, %arg5: memref<192x128xbf16, #tpu.memory_space<vmem>>, %arg6: memref<192x128xbf16, #tpu.memory_space<vmem>>, %arg7: memref<1x128xf32, #tpu.memory_space<vmem>>, %arg8: memref<16x128xbf16, #tpu.memory_space<vmem>>) attributes {dimension_semantics = [#tpu.dimension_semantics<parallel>], iteration_bounds = array<i64: 2>, scalar_prefetch = 0 : i64, scratch_operands = 0 : i64, tpu.core_type = #tpu.core_type<tc>, window_params = [{transform_indices = @transform_0, window_bounds = array<i64: 16, 192>}, {transform_indices = @transform_1, window_bounds = array<i64: 16, 192>}, {transform_indices = @transform_2, window_bounds = array<i64: 16, 192>}, {pipeline_mode = #tpu.pipeline_mode<synchronous>, transform_indices = @transform_3, window_bounds = array<i64: 192, 128>}, {pipeline_mode = #tpu.pipeline_mode<synchronous>, transform_indices = @transform_4, window_bounds = array<i64: 192, 128>}, {pipeline_mode = #tpu.pipeline_mode<synchronous>, transform_indices = @transform_5, window_bounds = array<i64: 192, 128>}, {pipeline_mode = #tpu.pipeline_mode<synchronous>, transform_indices = @transform_6, window_bounds = array<i64: 1, 128>}, {transform_indices = @transform_7, window_bounds = array<i64: 16, 128>}]} {
    %c0 = arith.constant 0 : index
    %c0_0 = arith.constant 0 : index
    %0 = vector.load %arg1[%c0, %c0_0] : memref<16x192xbf16, #tpu.memory_space<vmem>>, vector<16x192xbf16>
    %c0_1 = arith.constant 0 : index
    %c0_2 = arith.constant 0 : index
    %1 = vector.load %arg4[%c0_1, %c0_2] : memref<192x128xbf16, #tpu.memory_space<vmem>>, vector<192x128xbf16>
    %cst = arith.constant dense<0.000000e+00> : vector<16x128xf32>
    %2 = tpu.matmul %0, %1, %cst {dimension_numbers = #tpu.dot_dimension_numbers<[1], [0], [0], [1], [0, 0, 1, 1], [], []>} : vector<16x192xbf16>, vector<192x128xbf16>, vector<16x128xf32> -> vector<16x128xf32>
    %c0_3 = arith.constant 0 : index
    %c0_4 = arith.constant 0 : index
    %3 = vector.load %arg2[%c0_3, %c0_4] : memref<16x192xbf16, #tpu.memory_space<vmem>>, vector<16x192xbf16>
    %c0_5 = arith.constant 0 : index
    %c0_6 = arith.constant 0 : index
    %4 = vector.load %arg5[%c0_5, %c0_6] : memref<192x128xbf16, #tpu.memory_space<vmem>>, vector<192x128xbf16>
    %cst_7 = arith.constant dense<0.000000e+00> : vector<16x128xf32>
    %5 = tpu.matmul %3, %4, %cst_7 {dimension_numbers = #tpu.dot_dimension_numbers<[1], [0], [0], [1], [0, 0, 1, 1], [], []>} : vector<16x192xbf16>, vector<192x128xbf16>, vector<16x128xf32> -> vector<16x128xf32>
    %6 = arith.addf %2, %5 : vector<16x128xf32>
    %c0_8 = arith.constant 0 : index
    %c0_9 = arith.constant 0 : index
    %7 = vector.load %arg3[%c0_8, %c0_9] : memref<16x192xbf16, #tpu.memory_space<vmem>>, vector<16x192xbf16>
    %c0_10 = arith.constant 0 : index
    %c0_11 = arith.constant 0 : index
    %8 = vector.load %arg6[%c0_10, %c0_11] : memref<192x128xbf16, #tpu.memory_space<vmem>>, vector<192x128xbf16>
    %cst_12 = arith.constant dense<0.000000e+00> : vector<16x128xf32>
    %9 = tpu.matmul %7, %8, %cst_12 {dimension_numbers = #tpu.dot_dimension_numbers<[1], [0], [0], [1], [0, 0, 1, 1], [], []>} : vector<16x192xbf16>, vector<192x128xbf16>, vector<16x128xf32> -> vector<16x128xf32>
    %10 = arith.addf %6, %9 : vector<16x128xf32>
    %c0_13 = arith.constant 0 : index
    %c0_14 = arith.constant 0 : index
    %11 = vector.load %arg7[%c0_13, %c0_14] : memref<1x128xf32, #tpu.memory_space<vmem>>, vector<1x128xf32>
    %12 = vector.broadcast %11 : vector<1x128xf32> to vector<16x128xf32>
    %13 = arith.addf %10, %12 : vector<16x128xf32>
    %cst_15 = arith.constant 0.000000e+00 : f32
    %14 = vector.broadcast %cst_15 : f32 to vector<16x128xf32>
    %15 = arith.maximumf %13, %14 : vector<16x128xf32>
    %16 = arith.truncf %15 : vector<16x128xf32> to vector<16x128xbf16>
    %c0_16 = arith.constant 0 : index
    %c0_17 = arith.constant 0 : index
    %17 = vector.load %arg8[%c0_16, %c0_17] : memref<16x128xbf16, #tpu.memory_space<vmem>>, vector<16x128xbf16>
    tpu.vector_store %arg8[%c0_16, %c0_17], %16 {strides = array<i32>} : memref<16x128xbf16, #tpu.memory_space<vmem>>, vector<16x128xbf16>,
    return
  }
  func.func @transform_0(%arg0: i32) -> (i32, i32) {
    %c0_i32 = arith.constant 0 : i32
    %c0_i32_0 = arith.constant 0 : i32
    return %arg0, %c0_i32 : i32, i32
  }
  func.func @transform_1(%arg0: i32) -> (i32, i32) {
    %c0_i32 = arith.constant 0 : i32
    %c0_i32_0 = arith.constant 0 : i32
    return %arg0, %c0_i32 : i32, i32
  }
  func.func @transform_2(%arg0: i32) -> (i32, i32) {
    %c0_i32 = arith.constant 0 : i32
    %c0_i32_0 = arith.constant 0 : i32
    return %arg0, %c0_i32 : i32, i32
  }
  func.func @transform_3(%arg0: i32) -> (i32, i32) {
    %c0_i32 = arith.constant 0 : i32
    %c0_i32_0 = arith.constant 0 : i32
    %c0_i32_1 = arith.constant 0 : i32
    return %c0_i32, %c0_i32_0 : i32, i32
  }
  func.func @transform_4(%arg0: i32) -> (i32, i32) {
    %c0_i32 = arith.constant 0 : i32
    %c0_i32_0 = arith.constant 0 : i32
    %c0_i32_1 = arith.constant 0 : i32
    return %c0_i32, %c0_i32_0 : i32, i32
  }
  func.func @transform_5(%arg0: i32) -> (i32, i32) {
    %c0_i32 = arith.constant 0 : i32
    %c0_i32_0 = arith.constant 0 : i32
    %c0_i32_1 = arith.constant 0 : i32
    return %c0_i32, %c0_i32_0 : i32, i32
  }
  func.func @transform_6(%arg0: i32) -> (i32, i32) {
    %c0_i32 = arith.constant 0 : i32
    %c0_i32_0 = arith.constant 0 : i32
    %c0_i32_1 = arith.constant 0 : i32
    return %c0_i32, %c0_i32_0 : i32, i32
  }
  func.func @transform_7(%arg0: i32) -> (i32, i32) {
    %c0_i32 = arith.constant 0 : i32
    %c0_i32_0 = arith.constant 0 : i32
    return %arg0, %c0_i32 : i32, i32
  }
}

module attributes {stable_mosaic.version = 11 : i64} {
  func.func @conv3_bn_relu_kernel(%arg0: i32, %arg1: memref<8x192xbf16, #tpu.memory_space<vmem>>, %arg2: memref<8x192xbf16, #tpu.memory_space<vmem>>, %arg3: memref<8x192xbf16, #tpu.memory_space<vmem>>, %arg4: memref<192x128xbf16, #tpu.memory_space<vmem>>, %arg5: memref<192x128xbf16, #tpu.memory_space<vmem>>, %arg6: memref<192x128xbf16, #tpu.memory_space<vmem>>, %arg7: memref<1x128xf32, #tpu.memory_space<vmem>>, %arg8: memref<8x128xbf16, #tpu.memory_space<vmem>>) attributes {dimension_semantics = [#tpu.dimension_semantics<parallel>], iteration_bounds = array<i64: 1>, scalar_prefetch = 0 : i64, scratch_operands = 0 : i64, tpu.core_type = #tpu.core_type<tc>, window_params = [{transform_indices = @transform_0, window_bounds = array<i64: 8, 192>}, {transform_indices = @transform_1, window_bounds = array<i64: 8, 192>}, {transform_indices = @transform_2, window_bounds = array<i64: 8, 192>}, {pipeline_mode = #tpu.pipeline_mode<synchronous>, transform_indices = @transform_3, window_bounds = array<i64: 192, 128>}, {pipeline_mode = #tpu.pipeline_mode<synchronous>, transform_indices = @transform_4, window_bounds = array<i64: 192, 128>}, {pipeline_mode = #tpu.pipeline_mode<synchronous>, transform_indices = @transform_5, window_bounds = array<i64: 192, 128>}, {pipeline_mode = #tpu.pipeline_mode<synchronous>, transform_indices = @transform_6, window_bounds = array<i64: 1, 128>}, {transform_indices = @transform_7, window_bounds = array<i64: 8, 128>}]} {
    %c0 = arith.constant 0 : index
    %c0_0 = arith.constant 0 : index
    %0 = vector.load %arg1[%c0, %c0_0] : memref<8x192xbf16, #tpu.memory_space<vmem>>, vector<8x192xbf16>
    %c0_1 = arith.constant 0 : index
    %c0_2 = arith.constant 0 : index
    %1 = vector.load %arg4[%c0_1, %c0_2] : memref<192x128xbf16, #tpu.memory_space<vmem>>, vector<192x128xbf16>
    %cst = arith.constant dense<0.000000e+00> : vector<8x128xf32>
    %2 = tpu.matmul %0, %1, %cst {dimension_numbers = #tpu.dot_dimension_numbers<[1], [0], [0], [1], [0, 0, 1, 1], [], []>} : vector<8x192xbf16>, vector<192x128xbf16>, vector<8x128xf32> -> vector<8x128xf32>
    %c0_3 = arith.constant 0 : index
    %c0_4 = arith.constant 0 : index
    %3 = vector.load %arg2[%c0_3, %c0_4] : memref<8x192xbf16, #tpu.memory_space<vmem>>, vector<8x192xbf16>
    %c0_5 = arith.constant 0 : index
    %c0_6 = arith.constant 0 : index
    %4 = vector.load %arg5[%c0_5, %c0_6] : memref<192x128xbf16, #tpu.memory_space<vmem>>, vector<192x128xbf16>
    %cst_7 = arith.constant dense<0.000000e+00> : vector<8x128xf32>
    %5 = tpu.matmul %3, %4, %cst_7 {dimension_numbers = #tpu.dot_dimension_numbers<[1], [0], [0], [1], [0, 0, 1, 1], [], []>} : vector<8x192xbf16>, vector<192x128xbf16>, vector<8x128xf32> -> vector<8x128xf32>
    %6 = arith.addf %2, %5 : vector<8x128xf32>
    %c0_8 = arith.constant 0 : index
    %c0_9 = arith.constant 0 : index
    %7 = vector.load %arg3[%c0_8, %c0_9] : memref<8x192xbf16, #tpu.memory_space<vmem>>, vector<8x192xbf16>
    %c0_10 = arith.constant 0 : index
    %c0_11 = arith.constant 0 : index
    %8 = vector.load %arg6[%c0_10, %c0_11] : memref<192x128xbf16, #tpu.memory_space<vmem>>, vector<192x128xbf16>
    %cst_12 = arith.constant dense<0.000000e+00> : vector<8x128xf32>
    %9 = tpu.matmul %7, %8, %cst_12 {dimension_numbers = #tpu.dot_dimension_numbers<[1], [0], [0], [1], [0, 0, 1, 1], [], []>} : vector<8x192xbf16>, vector<192x128xbf16>, vector<8x128xf32> -> vector<8x128xf32>
    %10 = arith.addf %6, %9 : vector<8x128xf32>
    %c0_13 = arith.constant 0 : index
    %c0_14 = arith.constant 0 : index
    %11 = vector.load %arg7[%c0_13, %c0_14] : memref<1x128xf32, #tpu.memory_space<vmem>>, vector<1x128xf32>
    %12 = vector.broadcast %11 : vector<1x128xf32> to vector<8x128xf32>
    %13 = arith.addf %10, %12 : vector<8x128xf32>
    %cst_15 = arith.constant 0.000000e+00 : f32
    %14 = vector.broadcast %cst_15 : f32 to vector<8x128xf32>
    %15 = arith.maximumf %13, %14 : vector<8x128xf32>
    %16 = arith.truncf %15 : vector<8x128xf32> to vector<8x128xbf16>
    %c0_16 = arith.constant 0 : index
    %c0_17 = arith.constant 0 : index
    %17 = vector.load %arg8[%c0_16, %c0_17] : memref<8x128xbf16, #tpu.memory_space<vmem>>, vector<8x128xbf16>
    tpu.vector_store %arg8[%c0_16, %c0_17], %16 {strides = array<i32>} : memref<8x128xbf16, #tpu.memory_space<vmem>>, vector<8x128xbf16>,
    return
  }
  func.func @transform_0(%arg0: i32) -> (i32, i32) {
    %c0_i32 = arith.constant 0 : i32
    %c0_i32_0 = arith.constant 0 : i32
    return %arg0, %c0_i32 : i32, i32
  }
  func.func @transform_1(%arg0: i32) -> (i32, i32) {
    %c0_i32 = arith.constant 0 : i32
    %c0_i32_0 = arith.constant 0 : i32
    return %arg0, %c0_i32 : i32, i32
  }
  func.func @transform_2(%arg0: i32) -> (i32, i32) {
    %c0_i32 = arith.constant 0 : i32
    %c0_i32_0 = arith.constant 0 : i32
    return %arg0, %c0_i32 : i32, i32
  }
  func.func @transform_3(%arg0: i32) -> (i32, i32) {
    %c0_i32 = arith.constant 0 : i32
    %c0_i32_0 = arith.constant 0 : i32
    %c0_i32_1 = arith.constant 0 : i32
    return %c0_i32, %c0_i32_0 : i32, i32
  }
  func.func @transform_4(%arg0: i32) -> (i32, i32) {
    %c0_i32 = arith.constant 0 : i32
    %c0_i32_0 = arith.constant 0 : i32
    %c0_i32_1 = arith.constant 0 : i32
    return %c0_i32, %c0_i32_0 : i32, i32
  }
  func.func @transform_5(%arg0: i32) -> (i32, i32) {
    %c0_i32 = arith.constant 0 : i32
    %c0_i32_0 = arith.constant 0 : i32
    %c0_i32_1 = arith.constant 0 : i32
    return %c0_i32, %c0_i32_0 : i32, i32
  }
  func.func @transform_6(%arg0: i32) -> (i32, i32) {
    %c0_i32 = arith.constant 0 : i32
    %c0_i32_0 = arith.constant 0 : i32
    %c0_i32_1 = arith.constant 0 : i32
    return %c0_i32, %c0_i32_0 : i32, i32
  }
  func.func @transform_7(%arg0: i32) -> (i32, i32) {
    %c0_i32 = arith.constant 0 : i32
    %c0_i32_0 = arith.constant 0 : i32
    return %arg0, %c0_i32 : i32, i32
  }
}

module attributes {stable_mosaic.version = 11 : i64} {
  func.func @conv3_bn_relu_kernel(%arg0: i32, %arg1: memref<8x256xbf16, #tpu.memory_space<vmem>>, %arg2: memref<8x256xbf16, #tpu.memory_space<vmem>>, %arg3: memref<8x256xbf16, #tpu.memory_space<vmem>>, %arg4: memref<256x64xbf16, #tpu.memory_space<vmem>>, %arg5: memref<256x64xbf16, #tpu.memory_space<vmem>>, %arg6: memref<256x64xbf16, #tpu.memory_space<vmem>>, %arg7: memref<1x64xf32, #tpu.memory_space<vmem>>, %arg8: memref<8x64xbf16, #tpu.memory_space<vmem>>) attributes {dimension_semantics = [#tpu.dimension_semantics<parallel>], iteration_bounds = array<i64: 2>, scalar_prefetch = 0 : i64, scratch_operands = 0 : i64, tpu.core_type = #tpu.core_type<tc>, window_params = [{transform_indices = @transform_0, window_bounds = array<i64: 8, 256>}, {transform_indices = @transform_1, window_bounds = array<i64: 8, 256>}, {transform_indices = @transform_2, window_bounds = array<i64: 8, 256>}, {pipeline_mode = #tpu.pipeline_mode<synchronous>, transform_indices = @transform_3, window_bounds = array<i64: 256, 64>}, {pipeline_mode = #tpu.pipeline_mode<synchronous>, transform_indices = @transform_4, window_bounds = array<i64: 256, 64>}, {pipeline_mode = #tpu.pipeline_mode<synchronous>, transform_indices = @transform_5, window_bounds = array<i64: 256, 64>}, {pipeline_mode = #tpu.pipeline_mode<synchronous>, transform_indices = @transform_6, window_bounds = array<i64: 1, 64>}, {transform_indices = @transform_7, window_bounds = array<i64: 8, 64>}]} {
    %c0 = arith.constant 0 : index
    %c0_0 = arith.constant 0 : index
    %0 = vector.load %arg1[%c0, %c0_0] : memref<8x256xbf16, #tpu.memory_space<vmem>>, vector<8x256xbf16>
    %c0_1 = arith.constant 0 : index
    %c0_2 = arith.constant 0 : index
    %1 = vector.load %arg4[%c0_1, %c0_2] : memref<256x64xbf16, #tpu.memory_space<vmem>>, vector<256x64xbf16>
    %cst = arith.constant dense<0.000000e+00> : vector<8x64xf32>
    %2 = tpu.matmul %0, %1, %cst {dimension_numbers = #tpu.dot_dimension_numbers<[1], [0], [0], [1], [0, 0, 1, 1], [], []>} : vector<8x256xbf16>, vector<256x64xbf16>, vector<8x64xf32> -> vector<8x64xf32>
    %c0_3 = arith.constant 0 : index
    %c0_4 = arith.constant 0 : index
    %3 = vector.load %arg2[%c0_3, %c0_4] : memref<8x256xbf16, #tpu.memory_space<vmem>>, vector<8x256xbf16>
    %c0_5 = arith.constant 0 : index
    %c0_6 = arith.constant 0 : index
    %4 = vector.load %arg5[%c0_5, %c0_6] : memref<256x64xbf16, #tpu.memory_space<vmem>>, vector<256x64xbf16>
    %cst_7 = arith.constant dense<0.000000e+00> : vector<8x64xf32>
    %5 = tpu.matmul %3, %4, %cst_7 {dimension_numbers = #tpu.dot_dimension_numbers<[1], [0], [0], [1], [0, 0, 1, 1], [], []>} : vector<8x256xbf16>, vector<256x64xbf16>, vector<8x64xf32> -> vector<8x64xf32>
    %6 = arith.addf %2, %5 : vector<8x64xf32>
    %c0_8 = arith.constant 0 : index
    %c0_9 = arith.constant 0 : index
    %7 = vector.load %arg3[%c0_8, %c0_9] : memref<8x256xbf16, #tpu.memory_space<vmem>>, vector<8x256xbf16>
    %c0_10 = arith.constant 0 : index
    %c0_11 = arith.constant 0 : index
    %8 = vector.load %arg6[%c0_10, %c0_11] : memref<256x64xbf16, #tpu.memory_space<vmem>>, vector<256x64xbf16>
    %cst_12 = arith.constant dense<0.000000e+00> : vector<8x64xf32>
    %9 = tpu.matmul %7, %8, %cst_12 {dimension_numbers = #tpu.dot_dimension_numbers<[1], [0], [0], [1], [0, 0, 1, 1], [], []>} : vector<8x256xbf16>, vector<256x64xbf16>, vector<8x64xf32> -> vector<8x64xf32>
    %10 = arith.addf %6, %9 : vector<8x64xf32>
    %c0_13 = arith.constant 0 : index
    %c0_14 = arith.constant 0 : index
    %11 = vector.load %arg7[%c0_13, %c0_14] : memref<1x64xf32, #tpu.memory_space<vmem>>, vector<1x64xf32>
    %12 = vector.broadcast %11 : vector<1x64xf32> to vector<8x64xf32>
    %13 = arith.addf %10, %12 : vector<8x64xf32>
    %cst_15 = arith.constant 0.000000e+00 : f32
    %14 = vector.broadcast %cst_15 : f32 to vector<8x64xf32>
    %15 = arith.maximumf %13, %14 : vector<8x64xf32>
    %16 = arith.truncf %15 : vector<8x64xf32> to vector<8x64xbf16>
    %c0_16 = arith.constant 0 : index
    %c0_17 = arith.constant 0 : index
    %17 = vector.load %arg8[%c0_16, %c0_17] : memref<8x64xbf16, #tpu.memory_space<vmem>>, vector<8x64xbf16>
    tpu.vector_store %arg8[%c0_16, %c0_17], %16 {strides = array<i32>} : memref<8x64xbf16, #tpu.memory_space<vmem>>, vector<8x64xbf16>,
    return
  }
  func.func @transform_0(%arg0: i32) -> (i32, i32) {
    %c0_i32 = arith.constant 0 : i32
    %c0_i32_0 = arith.constant 0 : i32
    return %arg0, %c0_i32 : i32, i32
  }
  func.func @transform_1(%arg0: i32) -> (i32, i32) {
    %c0_i32 = arith.constant 0 : i32
    %c0_i32_0 = arith.constant 0 : i32
    return %arg0, %c0_i32 : i32, i32
  }
  func.func @transform_2(%arg0: i32) -> (i32, i32) {
    %c0_i32 = arith.constant 0 : i32
    %c0_i32_0 = arith.constant 0 : i32
    return %arg0, %c0_i32 : i32, i32
  }
  func.func @transform_3(%arg0: i32) -> (i32, i32) {
    %c0_i32 = arith.constant 0 : i32
    %c0_i32_0 = arith.constant 0 : i32
    %c0_i32_1 = arith.constant 0 : i32
    return %c0_i32, %c0_i32_0 : i32, i32
  }
  func.func @transform_4(%arg0: i32) -> (i32, i32) {
    %c0_i32 = arith.constant 0 : i32
    %c0_i32_0 = arith.constant 0 : i32
    %c0_i32_1 = arith.constant 0 : i32
    return %c0_i32, %c0_i32_0 : i32, i32
  }
  func.func @transform_5(%arg0: i32) -> (i32, i32) {
    %c0_i32 = arith.constant 0 : i32
    %c0_i32_0 = arith.constant 0 : i32
    %c0_i32_1 = arith.constant 0 : i32
    return %c0_i32, %c0_i32_0 : i32, i32
  }
  func.func @transform_6(%arg0: i32) -> (i32, i32) {
    %c0_i32 = arith.constant 0 : i32
    %c0_i32_0 = arith.constant 0 : i32
    %c0_i32_1 = arith.constant 0 : i32
    return %c0_i32, %c0_i32_0 : i32, i32
  }
  func.func @transform_7(%arg0: i32) -> (i32, i32) {
    %c0_i32 = arith.constant 0 : i32
    %c0_i32_0 = arith.constant 0 : i32
    return %arg0, %c0_i32 : i32, i32
  }
}

module attributes {stable_mosaic.version = 11 : i64} {
  func.func @tail_conv_gru_kernel(%arg0: memref<4x384xbf16, #tpu.memory_space<vmem>>, %arg1: memref<4x384xbf16, #tpu.memory_space<vmem>>, %arg2: memref<4x384xbf16, #tpu.memory_space<vmem>>, %arg3: memref<384x128xbf16, #tpu.memory_space<vmem>>, %arg4: memref<384x128xbf16, #tpu.memory_space<vmem>>, %arg5: memref<384x128xbf16, #tpu.memory_space<vmem>>, %arg6: memref<1x128xf32, #tpu.memory_space<vmem>>, %arg7: memref<128x96xf32, #tpu.memory_space<vmem>>, %arg8: memref<32x96xf32, #tpu.memory_space<vmem>>, %arg9: memref<1x96xf32, #tpu.memory_space<vmem>>, %arg10: memref<1x96xf32, #tpu.memory_space<vmem>>, %arg11: memref<2x32xf32, #tpu.memory_space<vmem>>, %arg12: memref<4x96xf32, #tpu.memory_space<vmem>>) attributes {dimension_semantics = [], scalar_prefetch = 0 : i64, scratch_operands = 1 : i64, tpu.core_type = #tpu.core_type<tc>} {
    %c0 = arith.constant 0 : index
    %c0_0 = arith.constant 0 : index
    %0 = vector.load %arg0[%c0, %c0_0] : memref<4x384xbf16, #tpu.memory_space<vmem>>, vector<4x384xbf16>
    %c0_1 = arith.constant 0 : index
    %c0_2 = arith.constant 0 : index
    %1 = vector.load %arg3[%c0_1, %c0_2] : memref<384x128xbf16, #tpu.memory_space<vmem>>, vector<384x128xbf16>
    %cst = arith.constant dense<0.000000e+00> : vector<4x128xf32>
    %2 = tpu.matmul %0, %1, %cst {dimension_numbers = #tpu.dot_dimension_numbers<[1], [0], [0], [1], [0, 0, 1, 1], [], []>} : vector<4x384xbf16>, vector<384x128xbf16>, vector<4x128xf32> -> vector<4x128xf32>
    %c0_3 = arith.constant 0 : index
    %c0_4 = arith.constant 0 : index
    %3 = vector.load %arg1[%c0_3, %c0_4] : memref<4x384xbf16, #tpu.memory_space<vmem>>, vector<4x384xbf16>
    %c0_5 = arith.constant 0 : index
    %c0_6 = arith.constant 0 : index
    %4 = vector.load %arg4[%c0_5, %c0_6] : memref<384x128xbf16, #tpu.memory_space<vmem>>, vector<384x128xbf16>
    %cst_7 = arith.constant dense<0.000000e+00> : vector<4x128xf32>
    %5 = tpu.matmul %3, %4, %cst_7 {dimension_numbers = #tpu.dot_dimension_numbers<[1], [0], [0], [1], [0, 0, 1, 1], [], []>} : vector<4x384xbf16>, vector<384x128xbf16>, vector<4x128xf32> -> vector<4x128xf32>
    %6 = arith.addf %2, %5 : vector<4x128xf32>
    %c0_8 = arith.constant 0 : index
    %c0_9 = arith.constant 0 : index
    %7 = vector.load %arg2[%c0_8, %c0_9] : memref<4x384xbf16, #tpu.memory_space<vmem>>, vector<4x384xbf16>
    %c0_10 = arith.constant 0 : index
    %c0_11 = arith.constant 0 : index
    %8 = vector.load %arg5[%c0_10, %c0_11] : memref<384x128xbf16, #tpu.memory_space<vmem>>, vector<384x128xbf16>
    %cst_12 = arith.constant dense<0.000000e+00> : vector<4x128xf32>
    %9 = tpu.matmul %7, %8, %cst_12 {dimension_numbers = #tpu.dot_dimension_numbers<[1], [0], [0], [1], [0, 0, 1, 1], [], []>} : vector<4x384xbf16>, vector<384x128xbf16>, vector<4x128xf32> -> vector<4x128xf32>
    %10 = arith.addf %6, %9 : vector<4x128xf32>
    %c0_13 = arith.constant 0 : index
    %c0_14 = arith.constant 0 : index
    %11 = vector.load %arg6[%c0_13, %c0_14] : memref<1x128xf32, #tpu.memory_space<vmem>>, vector<1x128xf32>
    %12 = vector.broadcast %11 : vector<1x128xf32> to vector<4x128xf32>
    %13 = arith.addf %10, %12 : vector<4x128xf32>
    %cst_15 = arith.constant 0.000000e+00 : f32
    %14 = vector.broadcast %cst_15 : f32 to vector<4x128xf32>
    %15 = arith.maximumf %13, %14 : vector<4x128xf32>
    %c0_16 = arith.constant 0 : index
    %c0_17 = arith.constant 0 : index
    %16 = vector.load %arg7[%c0_16, %c0_17] : memref<128x96xf32, #tpu.memory_space<vmem>>, vector<128x96xf32>
    %cst_18 = arith.constant dense<0.000000e+00> : vector<4x96xf32>
    %17 = tpu.matmul %15, %16, %cst_18 {dimension_numbers = #tpu.dot_dimension_numbers<[1], [0], [0], [1], [0, 0, 1, 1], [], []>} : vector<4x128xf32>, vector<128x96xf32>, vector<4x96xf32> -> vector<4x96xf32>
    %c0_19 = arith.constant 0 : index
    %c0_20 = arith.constant 0 : index
    %18 = vector.load %arg9[%c0_19, %c0_20] : memref<1x96xf32, #tpu.memory_space<vmem>>, vector<1x96xf32>
    %19 = vector.broadcast %18 : vector<1x96xf32> to vector<4x96xf32>
    %20 = arith.addf %17, %19 : vector<4x96xf32>
    %c0_21 = arith.constant 0 : index
    %c0_22 = arith.constant 0 : index
    %21 = vector.load %arg12[%c0_21, %c0_22] : memref<4x96xf32, #tpu.memory_space<vmem>>, vector<4x96xf32>
    tpu.vector_store %arg12[%c0_21, %c0_22], %20 {strides = array<i32>} : memref<4x96xf32, #tpu.memory_space<vmem>>, vector<4x96xf32>,
    %c0_23 = arith.constant 0 : index
    %c0_24 = arith.constant 0 : index
    %22 = vector.load %arg10[%c0_23, %c0_24] : memref<1x96xf32, #tpu.memory_space<vmem>>, vector<1x96xf32>
    %23 = vector.shape_cast %22 : vector<1x96xf32> to vector<1x96xf32>
    %24 = vector.broadcast %23 : vector<1x96xf32> to vector<2x96xf32>
    %cst_25 = arith.constant 0.000000e+00 : f32
    %25 = vector.broadcast %cst_25 : f32 to vector<2x32xf32>
    %c0_i32 = arith.constant 0 : i32
    %c2_i32 = arith.constant 2 : i32
    %26 = arith.muli %c0_i32, %c2_i32 : i32
    %27 = arith.index_cast %26 : i32 to index
    %c0_26 = arith.constant 0 : index
    %28 = vector.load %arg12[%27, %c0_26] : memref<4x96xf32, #tpu.memory_space<vmem>>, vector<2x96xf32>
    %c0_27 = arith.constant 0 : index
    %c0_28 = arith.constant 0 : index
    %29 = vector.load %arg8[%c0_27, %c0_28] : memref<32x96xf32, #tpu.memory_space<vmem>>, vector<32x96xf32>
    %cst_29 = arith.constant dense<0.000000e+00> : vector<2x96xf32>
    %30 = tpu.matmul %25, %29, %cst_29 {dimension_numbers = #tpu.dot_dimension_numbers<[1], [0], [0], [1], [0, 0, 1, 1], [], []>} : vector<2x32xf32>, vector<32x96xf32>, vector<2x96xf32> -> vector<2x96xf32>
    %31 = arith.addf %30, %24 : vector<2x96xf32>
    %32 = vector.extract_strided_slice %28 {offsets = [0, 0], sizes = [2, 32], strides = [1, 1]} : vector<2x96xf32> to vector<2x32xf32>
    %33 = vector.extract_strided_slice %31 {offsets = [0, 0], sizes = [2, 32], strides = [1, 1]} : vector<2x96xf32> to vector<2x32xf32>
    %34 = arith.addf %32, %33 : vector<2x32xf32>
    %35 = arith.negf %34 : vector<2x32xf32>
    %36 = math.exp %35 : vector<2x32xf32>
    %cst_30 = arith.constant 1.000000e+00 : f32
    %37 = vector.broadcast %cst_30 : f32 to vector<2x32xf32>
    %38 = arith.addf %37, %36 : vector<2x32xf32>
    %39 = arith.divf %37, %38 : vector<2x32xf32>
    %40 = vector.extract_strided_slice %28 {offsets = [0, 32], sizes = [2, 32], strides = [1, 1]} : vector<2x96xf32> to vector<2x32xf32>
    %41 = vector.extract_strided_slice %31 {offsets = [0, 32], sizes = [2, 32], strides = [1, 1]} : vector<2x96xf32> to vector<2x32xf32>
    %42 = arith.addf %40, %41 : vector<2x32xf32>
    %43 = arith.negf %42 : vector<2x32xf32>
    %44 = math.exp %43 : vector<2x32xf32>
    %cst_31 = arith.constant 1.000000e+00 : f32
    %45 = vector.broadcast %cst_31 : f32 to vector<2x32xf32>
    %46 = arith.addf %45, %44 : vector<2x32xf32>
    %47 = arith.divf %45, %46 : vector<2x32xf32>
    %48 = vector.extract_strided_slice %28 {offsets = [0, 64], sizes = [2, 32], strides = [1, 1]} : vector<2x96xf32> to vector<2x32xf32>
    %49 = vector.extract_strided_slice %31 {offsets = [0, 64], sizes = [2, 32], strides = [1, 1]} : vector<2x96xf32> to vector<2x32xf32>
    %50 = arith.mulf %39, %49 : vector<2x32xf32>
    %51 = arith.addf %48, %50 : vector<2x32xf32>
    %52 = math.tanh %51 : vector<2x32xf32>
    %cst_32 = arith.constant 1.000000e+00 : f32
    %53 = vector.broadcast %cst_32 : f32 to vector<2x32xf32>
    %54 = arith.subf %53, %47 : vector<2x32xf32>
    %55 = arith.mulf %54, %52 : vector<2x32xf32>
    %56 = arith.mulf %47, %25 : vector<2x32xf32>
    %57 = arith.addf %55, %56 : vector<2x32xf32>
    %c1_i32 = arith.constant 1 : i32
    %c2_i32_33 = arith.constant 2 : i32
    %58 = arith.muli %c1_i32, %c2_i32_33 : i32
    %59 = arith.index_cast %58 : i32 to index
    %c0_34 = arith.constant 0 : index
    %60 = vector.load %arg12[%59, %c0_34] : memref<4x96xf32, #tpu.memory_space<vmem>>, vector<2x96xf32>
    %c0_35 = arith.constant 0 : index
    %c0_36 = arith.constant 0 : index
    %61 = vector.load %arg8[%c0_35, %c0_36] : memref<32x96xf32, #tpu.memory_space<vmem>>, vector<32x96xf32>
    %cst_37 = arith.constant dense<0.000000e+00> : vector<2x96xf32>
    %62 = tpu.matmul %57, %61, %cst_37 {dimension_numbers = #tpu.dot_dimension_numbers<[1], [0], [0], [1], [0, 0, 1, 1], [], []>} : vector<2x32xf32>, vector<32x96xf32>, vector<2x96xf32> -> vector<2x96xf32>
    %63 = arith.addf %62, %24 : vector<2x96xf32>
    %64 = vector.extract_strided_slice %60 {offsets = [0, 0], sizes = [2, 32], strides = [1, 1]} : vector<2x96xf32> to vector<2x32xf32>
    %65 = vector.extract_strided_slice %63 {offsets = [0, 0], sizes = [2, 32], strides = [1, 1]} : vector<2x96xf32> to vector<2x32xf32>
    %66 = arith.addf %64, %65 : vector<2x32xf32>
    %67 = arith.negf %66 : vector<2x32xf32>
    %68 = math.exp %67 : vector<2x32xf32>
    %cst_38 = arith.constant 1.000000e+00 : f32
    %69 = vector.broadcast %cst_38 : f32 to vector<2x32xf32>
    %70 = arith.addf %69, %68 : vector<2x32xf32>
    %71 = arith.divf %69, %70 : vector<2x32xf32>
    %72 = vector.extract_strided_slice %60 {offsets = [0, 32], sizes = [2, 32], strides = [1, 1]} : vector<2x96xf32> to vector<2x32xf32>
    %73 = vector.extract_strided_slice %63 {offsets = [0, 32], sizes = [2, 32], strides = [1, 1]} : vector<2x96xf32> to vector<2x32xf32>
    %74 = arith.addf %72, %73 : vector<2x32xf32>
    %75 = arith.negf %74 : vector<2x32xf32>
    %76 = math.exp %75 : vector<2x32xf32>
    %cst_39 = arith.constant 1.000000e+00 : f32
    %77 = vector.broadcast %cst_39 : f32 to vector<2x32xf32>
    %78 = arith.addf %77, %76 : vector<2x32xf32>
    %79 = arith.divf %77, %78 : vector<2x32xf32>
    %80 = vector.extract_strided_slice %60 {offsets = [0, 64], sizes = [2, 32], strides = [1, 1]} : vector<2x96xf32> to vector<2x32xf32>
    %81 = vector.extract_strided_slice %63 {offsets = [0, 64], sizes = [2, 32], strides = [1, 1]} : vector<2x96xf32> to vector<2x32xf32>
    %82 = arith.mulf %71, %81 : vector<2x32xf32>
    %83 = arith.addf %80, %82 : vector<2x32xf32>
    %84 = math.tanh %83 : vector<2x32xf32>
    %cst_40 = arith.constant 1.000000e+00 : f32
    %85 = vector.broadcast %cst_40 : f32 to vector<2x32xf32>
    %86 = arith.subf %85, %79 : vector<2x32xf32>
    %87 = arith.mulf %86, %84 : vector<2x32xf32>
    %88 = arith.mulf %79, %57 : vector<2x32xf32>
    %89 = arith.addf %87, %88 : vector<2x32xf32>
    %c2_i32_41 = arith.constant 2 : i32
    %c0_42 = arith.constant 0 : index
    %c0_43 = arith.constant 0 : index
    %90 = vector.load %arg11[%c0_42, %c0_43] : memref<2x32xf32, #tpu.memory_space<vmem>>, vector<2x32xf32>
    tpu.vector_store %arg11[%c0_42, %c0_43], %89 {strides = array<i32>} : memref<2x32xf32, #tpu.memory_space<vmem>>, vector<2x32xf32>,
    return
  }
}

</mosaic_0001>

<bundles_post_ra>
// kernel: reference_encoder_forward.6
= control target key start
LH: loop header
LB: loop body
LE: loop exit
PB: predicated region body
PF: predicated region fallthrough
CT: control target
= control target key end

     0   :  { %s1133_s24 = smov 0   ;;  %s1269_s0 = inlined_call_operand.vmem [shape: bf16[128,18], index: 0, kind: input, shape index: {}]   ;;  %s1270_s1 = inlined_call_operand.vmem [shape: bf16[128,18], index: 1, kind: input, shape index: {}]   ;;  %s1271_s2 = inlined_call_operand.vmem [shape: bf16[128,18], index: 2, kind: input, shape index: {}]   ;;  %s1272_s3 = inlined_call_operand.vmem [shape: bf16[18,256], index: 3, kind: input, shape index: {}]   ;;  %s1273_s4 = inlined_call_operand.vmem [shape: bf16[18,256], index: 4, kind: input, shape index: {}]   ;;  %s1274_s5 = inlined_call_operand.vmem [shape: bf16[18,256], index: 5, kind: input, shape index: {}]   ;;  %s1275_s6 = inlined_call_operand.vmem [shape: f32[1,256], index: 6, kind: input, shape index: {}]   ;;  %s1276_s7 = inlined_call_operand.vmem [shape: bf16[128,256], index: 7, kind: output, shape index: {}]  }
   0x1 LB: > { %s940_s25 = sadd.s32 4294967295, %s1090_s24   ;;  %p944_p0 = scmp.ge.s32.totalorder %s1090_s24, 1  ;;  %s1090_s24 = sphi %s1133_s24, %s17_s24  }
   0x2   : > { %p260_p1 = scmp.lt.s32.totalorder %s1090_s24, 3 }
   0x4   : > { %p261_p2 = pnand %p944_p0, %p260_p1 }
   0x5   : > { %v1057_v0 = vld [vmem:[%s1273_s4 + $0x4] ss:$8 sps:$4 sm:$0xff] (!%p261_p2)   ;;  %vm399_vm0 = vcmask (!%p261_p2), 1040384   ;;  %v1092_v2 = vmov (!%p261_p2), 0   ;;  %s945_s30 = sshll.u32 (!%p261_p2), %s940_s25, 3  ;;  %vm386_vm1 = vcmask (!%p261_p2), 146432   ;;  %v760_v35 = vlaneseq (!%p261_p2) }
   0x6   : > { %264 = sbr.rel (%p261_p2) target bundleno = 282 (0x11a), region = 48  ;;  %v1059_v1 = vld [vmem:[%s1272_s3 + $0x4] ss:$8 sps:$4 sm:$0xff] (!%p261_p2)   ;;  %438 = vmatprep.mubr.bf16.mxu1 (!%p261_p2), %v1092_v2  ;;  %564 = vmatprep.mubr.bf16.mxu0 (!%p261_p2), %v1092_v2  ;;  %v1061_v3 = vld [vmem:[%s1273_s4] ss:$8 sps:$4 sm:$0xff] (!%p261_p2)   ;;  %p304_p3 = scmp.lt.s32.totalorder (!%p261_p2), %s945_s30, 15 }
   0x7   : > { %406 = vmatprep.subr.bf16.mxu1 (!%p261_p2), %v1057_v0  ;;  %v1062_v4 = vld [vmem:[%s1272_s3] ss:$8 sps:$4 sm:$0xff] (!%p261_p2)   ;;  %v350_v5 = vld [vmem:[%s1273_s4 + $0x10] sm:$0x11] (!%p261_p2)  ;;  %532 = vmatprep.subr.bf16.mxu0 (!%p261_p2), %v1059_v1  ;;  %v1071_v12 = vld [vmem:[%s1274_s5 + $0x4] ss:$8 sps:$4 sm:$0xff] (!%p261_p2)  }
   0x8   : > { %v961_v6 = vcombine.high (!%p261_p2), %v350_v5, %v350_v5  ;;  %v339_v7 = vld [vmem:[%s1272_s3 + $0x10] sm:$0x11] (!%p261_p2)  ;;  %v960_v8 = vcombine.low (!%p261_p2), %v350_v5, %v350_v5  ;;  %407 = vmatpush1.bf16.msra.mxu1 (!%p261_p2), %v1061_v3  ;;  %533 = vmatpush1.bf16.msra.mxu0 (!%p261_p2), %v1062_v4  ;;  %v1069_v15 = vld [vmem:[%s1274_s5] ss:$8 sps:$4 sm:$0xff] (!%p261_p2)   ;;  %v761_v37 = vshrl.u32 (!%p261_p2), %v760_v35, 7 }
   0x9   : > { %v974_v9 = vcombine.high (!%p261_p2), %v339_v7, %v339_v7  ;;  %v973_v10 = vcombine.low (!%p261_p2), %v339_v7, %v339_v7  ;;  %v615_v14 = vld [vmem:[%s1274_s5 + $0x10] sm:$0x11] (!%p261_p2)  ;;  %v758_v42 = vld [vmem:[%s1275_s6] sm:$0x3] (!%p261_p2) }
   0xa   : > { %962 = vmatprep.subr.msk.bf16.mxu1 (!%p261_p2), %vm399_vm0, %v961_v6  ;;  %v401_v11 = vsel (!%p261_p2), %vm399_vm0, %v960_v8, 0  ;;  %v987_v18 = vcombine.high (!%p261_p2), %v615_v14, %v615_v14  ;;  %v986_v19 = vcombine.low (!%p261_p2), %v615_v14, %v615_v14  ;;  %v762_v41 = vsub.s32 (!%p261_p2), 0, %v761_v37 }
   0xb   : > { %975 = vmatprep.subr.msk.bf16.mxu0 (!%p261_p2), %vm399_vm0, %v974_v9  ;;  %v527_v13 = vsel (!%p261_p2), %vm399_vm0, %v973_v10, 0  ;;  %v766_v43 = vsub.s32 (!%p261_p2), 1, %v761_v37 }
   0xc   : > { %409 = vmatpush1.bf16.msra.mxu1 (!%p261_p2), %v401_v11  ;;  %535 = vmatpush1.bf16.msra.mxu0 (!%p261_p2), %v527_v13  ;;  %v664_v20 = vsel (!%p261_p2), %vm399_vm0, %v986_v19, 0  ;;  %v1232_v44 = vrot.slane (!%p261_p2), %v758_v42, %v762_v41 }
   0xd   : > { %s1278_s30 = smov (!%p304_p3, %s945_s30), 15  ;;  %1012 = vmatprep.subr.bf16.mxu1 %v1059_v1  ;;  %669 = vmatprep.subr.bf16.mxu0 %v1071_v12  ;;  %v1234_v46 = vrot.slane %v758_v42, %v766_v43 }
   0xe   : > { %s946_s18 = sshll.u32 %s1278_s30, 2  ;;  %s1003_s13 = sshll.u32 %s1278_s30, 3 }
   0xf   : > { %s1177_s23 = scalar_lea.vmem %s1270_s1, %s946_s18  ;;  %s1186_s29 = scalar_lea.vmem %s1269_s0, %s946_s18 }
  0x10   : > { %v1067_v16 = vld [vmem:[%s1177_s23] sm:$0xff]   ;;  %s1194_s10 = scalar_lea.vmem %s1271_s2, %s946_s18  ;;  %v1072_v21 = vld [vmem:[%s1177_s23 + $0x8] sm:$0xff]   ;;  %v1076_v23 = vld [vmem:[%s1177_s23 + $0x10] sm:$0xff]   ;;  %s1244_s16 = scalar_lea.vmem %s1276_s7, %s1003_s13 }
  0x11   : > { %v1068_v17 = vld [vmem:[%s1186_s29] sm:$0xff]   ;;  %963 = vmatmul.mubr.msk.bf16.vlgmr.msra.gmra.mrb[0].mxu1 %vm386_vm1, %v1067_v16  ;;  %v1073_v22 = vld [vmem:[%s1186_s29 + $0x8] sm:$0xff]   ;;  %v1078_v25 = vld [vmem:[%s1177_s23 + $0x18] sm:$0xff]  }
  0x12   : > { %976 = vmatmul.mubr.msk.bf16.vlgmr.msra.gmra.mrb[0].mxu0 %vm386_vm1, %v1068_v17  ;;  %1014 = vmatpush1.bf16.msra.mxu1 %v1062_v4  ;;  %v1077_v24 = vld [vmem:[%s1194_s10] sm:$0xff]   ;;  %v1079_v26 = vld [vmem:[%s1194_s10 + $0x8] sm:$0xff]   ;;  %v1080_v27 = vld [vmem:[%s1186_s29 + $0x10] sm:$0xff]  }
  0x13   : > { %670 = vmatpush1.bf16.msra.mxu0 %v1069_v15  ;;  %448 = vmatprep.mubr.bf16.mxu1 %v1092_v2  ;;  %v1081_v28 = vld [vmem:[%s1194_s10 + $0x10] sm:$0xff]   ;;  %v1082_v29 = vld [vmem:[%s1186_s29 + $0x18] sm:$0xff]  }
  0x14   : > { %574 = vmatprep.mubr.bf16.mxu0 %v1092_v2  ;;  %988 = vmatprep.subr.msk.bf16.mxu0 %vm399_vm0, %v987_v18  ;;  %v1083_v30 = vld [vmem:[%s1194_s10 + $0x18] sm:$0xff]  }
  0x15   : > { %1013 = vmatprep.subr.msk.bf16.mxu1 %vm399_vm0, %v974_v9 }
  0x16   : > { %1015 = vmatpush1.bf16.msra.mxu1 %v527_v13 }
  0x17   : > { %672 = vmatpush1.bf16.msra.mxu0 %v664_v20 }
  0x19   : > { %964 = vmatmul.mubr.msk.bf16.gmra.mrb[4].mxu1 %vm386_vm1, %v1072_v21 }
  0x1a   : > { %977 = vmatmul.mubr.msk.bf16.gmra.mrb[4].mxu0 %vm386_vm1, %v1073_v22  ;;  %458 = vmatprep.mubr.bf16.mxu1 %v1092_v2 }
  0x1b   : > { %701 = vmatprep.mubr.bf16.mxu0 %v1092_v2 }
  0x21   : > { %965 = vmatmul.mubr.msk.bf16.gmra.mrb[8].mxu1 %vm386_vm1, %v1076_v23 }
  0x22   : > { %989 = vmatmul.mubr.msk.bf16.vlgmr.msra.gmra.mrb[0].mxu0 %vm386_vm1, %v1077_v24  ;;  %468 = vmatprep.mubr.bf16.mxu1 %v1092_v2 }
  0x23   : > { %711 = vmatprep.mubr.bf16.mxu0 %v1092_v2 }
  0x29   : > { %966 = vmatmul.mubr.msk.bf16.gmra.mrb[12].mxu1 %vm386_vm1, %v1078_v25 }
  0x2a   : > { %990 = vmatmul.mubr.msk.bf16.gmra.mrb[4].mxu0 %vm386_vm1, %v1079_v26  ;;  %584 = vmatprep.mubr.bf16.mxu1 %v1092_v2 }
  0x2b   : > { %721 = vmatprep.mubr.bf16.mxu0 %v1092_v2 }
  0x31   : > { %978 = vmatmul.mubr.msk.bf16.vlgmr.msra.gmra.mrb[8].mxu1 %vm386_vm1, %v1080_v27 }
  0x32   : > { %991 = vmatmul.mubr.msk.bf16.gmra.mrb[8].mxu0 %vm386_vm1, %v1081_v28  ;;  %594 = vmatprep.mubr.bf16.mxu1 %v1092_v2 }
  0x33   : > { %731 = vmatprep.mubr.bf16.mxu0 %v1092_v2 }
  0x39   : > { %979 = vmatmul.mubr.msk.bf16.gmra.mrb[12].mxu1 %vm386_vm1, %v1082_v29 }
  0x3a   : > { %992 = vmatmul.mubr.msk.bf16.gmra.mrb[12].mxu0 %vm386_vm1, %v1083_v30 }
  0xe4   : > { %v440_v31 = vpop.f32.mrb[0].mxu1 }
  0xe5   : > { %v442_v32 = vpop.f32.mrb[1].mxu1 }
  0xe6   : > { %v444_v33 = vpop.f32.mrb[2].mxu1 }
  0xe7   : > { %v446_v34 = vpop.f32.mrb[3].mxu1 }
  0xec   : > { %v450_v36 = vpop.f32.mrb[4].mxu1 }
  0xed   : > { %v452_v38 = vpop.f32.mrb[5].mxu1 }
  0xee   : > { %v454_v39 = vpop.f32.mrb[6].mxu1 }
  0xef   : > { %v456_v40 = vpop.f32.mrb[7].mxu1 }
  0xf5   : > { %v703_v45 = vpop.f32.mrb[0].mxu0 }
  0xf6   : > { %v1016_v47 = vadd.f32 %v703_v45, %v440_v31  ;;  %v705_v48 = vpop.f32.mrb[1].mxu0 }
  0xf7   : > { %v1017_v49 = vadd.f32 %v705_v48, %v442_v32  ;;  %v707_v50 = vpop.f32.mrb[2].mxu0 }
  0xf8   : > { %v770_v51 = vadd.f32 %v1016_v47, %v1232_v44  ;;  %v1018_v52 = vadd.f32 %v707_v50, %v444_v33  ;;  %v709_v53 = vpop.f32.mrb[3].mxu0 }
  0xf9   : > { %v771_v54 = vadd.f32 %v1017_v49, %v1234_v46  ;;  %v1019_v55 = vadd.f32 %v709_v53, %v446_v34 }
  0xfa   : > { %v786_v56 = vmax.f32 %v770_v51, 0.0  ;;  %v772_v57 = vadd.f32 %v1018_v52, %v1232_v44 }
  0xfb   : > { %v787_v58 = vmax.f32 %v771_v54, 0.0  ;;  %v773_v59 = vadd.f32 %v1019_v55, %v1234_v46 }
  0xfc   : > { %v788_v60 = vmax.f32 %v772_v57, 0.0 }
  0xfd   : > { %v1004_v61 = vpack.c.bf16 %v787_v58, %v786_v56  ;;  %v789_v62 = vmax.f32 %v773_v59, 0.0  ;;  %v713_v63 = vpop.f32.mrb[4].mxu0 }
  0xfe   : > { %v1020_v0 = vadd.f32 %v713_v63, %v450_v36  ;;  %v715_v1 = vpop.f32.mrb[5].mxu0 }
  0xff   : > { %850 = vst [vmem:[%s1244_s16] sm:$0xff] %v1004_v61  ;;  %v1005_v2 = vpack.c.bf16 %v789_v62, %v788_v60  ;;  %v1021_v3 = vadd.f32 %v715_v1, %v452_v38  ;;  %v717_v4 = vpop.f32.mrb[6].mxu0 }
 0x100   : > { %v774_v5 = vadd.f32 %v1020_v0, %v1232_v44  ;;  %v1022_v6 = vadd.f32 %v717_v4, %v454_v39  ;;  %v719_v7 = vpop.f32.mrb[7].mxu0 }
 0x101   : > { %851 = vst [vmem:[%s1244_s16 + $0x8] sm:$0xff] %v1005_v2  ;;  %v775_v8 = vadd.f32 %v1021_v3, %v1234_v46  ;;  %v1023_v9 = vadd.f32 %v719_v7, %v456_v40 }
 0x102   : > { %v790_v10 = vmax.f32 %v774_v5, 0.0  ;;  %v776_v11 = vadd.f32 %v1022_v6, %v1232_v44 }
 0x103   : > { %v791_v12 = vmax.f32 %v775_v8, 0.0  ;;  %v777_v13 = vadd.f32 %v1023_v9, %v1234_v46 }
 0x104   : > { %v792_v14 = vmax.f32 %v776_v11, 0.0  ;;  %v586_v15 = vpop.f32.mrb[8].mxu1 }
 0x105   : > { %v1006_v16 = vpack.c.bf16 %v791_v12, %v790_v10  ;;  %v793_v17 = vmax.f32 %v777_v13, 0.0  ;;  %v723_v18 = vpop.f32.mrb[8].mxu0  ;;  %v588_v19 = vpop.f32.mrb[9].mxu1 }
 0x106   : > { %v1024_v20 = vadd.f32 %v723_v18, %v586_v15  ;;  %v725_v21 = vpop.f32.mrb[9].mxu0  ;;  %v590_v22 = vpop.f32.mrb[10].mxu1 }
 0x107   : > { %852 = vst [vmem:[%s1244_s16 + $0x10] sm:$0xff] %v1006_v16  ;;  %v1007_v23 = vpack.c.bf16 %v793_v17, %v792_v14  ;;  %v1025_v24 = vadd.f32 %v725_v21, %v588_v19  ;;  %v727_v25 = vpop.f32.mrb[10].mxu0  ;;  %v592_v26 = vpop.f32.mrb[11].mxu1 }
 0x108   : > { %v778_v27 = vadd.f32 %v1024_v20, %v1232_v44  ;;  %v1026_v28 = vadd.f32 %v727_v25, %v590_v22  ;;  %v729_v29 = vpop.f32.mrb[11].mxu0 }
 0x109   : > { %853 = vst [vmem:[%s1244_s16 + $0x18] sm:$0xff] %v1007_v23  ;;  %v779_v30 = vadd.f32 %v1025_v24, %v1234_v46  ;;  %v1027_v31 = vadd.f32 %v729_v29, %v592_v26 }
 0x10a   : > { %v794_v32 = vmax.f32 %v778_v27, 0.0  ;;  %v780_v33 = vadd.f32 %v1026_v28, %v1232_v44 }
 0x10b   : > { %v795_v34 = vmax.f32 %v779_v30, 0.0  ;;  %v781_v35 = vadd.f32 %v1027_v31, %v1234_v46 }
 0x10c   : > { %v796_v36 = vmax.f32 %v780_v33, 0.0  ;;  %v596_v37 = vpop.f32.mrb[12].mxu1 }
 0x10d   : > { %v1008_v38 = vpack.c.bf16 %v795_v34, %v794_v32  ;;  %v797_v39 = vmax.f32 %v781_v35, 0.0  ;;  %v733_v40 = vpop.f32.mrb[12].mxu0  ;;  %v598_v41 = vpop.f32.mrb[13].mxu1 }
 0x10e   : > { %v1028_v42 = vadd.f32 %v733_v40, %v596_v37  ;;  %v735_v43 = vpop.f32.mrb[13].mxu0  ;;  %v600_v45 = vpop.f32.mrb[14].mxu1 }
 0x10f   : > { %854 = vst [vmem:[%s1244_s16 + $0x20] sm:$0xff] %v1008_v38  ;;  %v1009_v47 = vpack.c.bf16 %v797_v39, %v796_v36  ;;  %v1029_v48 = vadd.f32 %v735_v43, %v598_v41  ;;  %v737_v49 = vpop.f32.mrb[14].mxu0  ;;  %v602_v50 = vpop.f32.mrb[15].mxu1 }
 0x110   : > { %v782_v51 = vadd.f32 %v1028_v42, %v1232_v44  ;;  %v1030_v52 = vadd.f32 %v737_v49, %v600_v45  ;;  %v739_v53 = vpop.f32.mrb[15].mxu0 }
 0x111   : > { %855 = vst [vmem:[%s1244_s16 + $0x28] sm:$0xff] %v1009_v47  ;;  %v783_v54 = vadd.f32 %v1029_v48, %v1234_v46  ;;  %v1031_v55 = vadd.f32 %v739_v53, %v602_v50 }
 0x112   : > { %v798_v56 = vmax.f32 %v782_v51, 0.0  ;;  %v784_v57 = vadd.f32 %v1030_v52, %v1232_v44 }
 0x113   : > { %v799_v58 = vmax.f32 %v783_v54, 0.0  ;;  %v785_v59 = vadd.f32 %v1031_v55, %v1234_v46 }
 0x114   : > { %v800_v60 = vmax.f32 %v784_v57, 0.0 }
 0x115   : > { %v1010_v61 = vpack.c.bf16 %v799_v58, %v798_v56  ;;  %v801_v62 = vmax.f32 %v785_v59, 0.0 }
 0x117   : > { %856 = vst [vmem:[%s1244_s16 + $0x30] sm:$0xff] %v1010_v61  ;;  %v1011_v63 = vpack.c.bf16 %v801_v62, %v800_v60 }
 0x119   : > { %857 = vst [vmem:[%s1244_s16 + $0x38] sm:$0xff] %v1011_v63 }
 0x11a PF: > { %s17_s24 = sadd.s32 1, %s1090_s24  }
 0x11b   : > { %p14_p4 = scmp.ge.s32.totalorder %s17_s24, 4  }
 0x11d   :  { %16 = sbr.rel (!%p14_p4) target bundleno = 1 (0x1), region = 84 }

// kernel: reference_encoder_forward.7
= control target key start
LH: loop header
LB: loop body
LE: loop exit
PB: predicated region body
PF: predicated region fallthrough
CT: control target
= control target key end

     0   :  { %s1780_s24 = smov 0   ;;  %s2025_s0 = inlined_call_operand.vmem [shape: bf16[64,320], index: 0, kind: input, shape index: {}]   ;;  %s2026_s1 = inlined_call_operand.vmem [shape: bf16[64,320], index: 1, kind: input, shape index: {}]   ;;  %s2027_s2 = inlined_call_operand.vmem [shape: bf16[64,320], index: 2, kind: input, shape index: {}]   ;;  %s2028_s3 = inlined_call_operand.vmem [shape: bf16[320,128], index: 3, kind: input, shape index: {}]   ;;  %s2029_s4 = inlined_call_operand.vmem [shape: bf16[320,128], index: 4, kind: input, shape index: {}]   ;;  %s2030_s5 = inlined_call_operand.vmem [shape: bf16[320,128], index: 5, kind: input, shape index: {}]   ;;  %s2031_s6 = inlined_call_operand.vmem [shape: f32[1,128], index: 6, kind: input, shape index: {}]   ;;  %s2032_s7 = inlined_call_operand.vmem [shape: bf16[64,128], index: 7, kind: output, shape index: {}]  }
   0x1 LB: > { %s1362_s25 = sadd.s32 4294967295, %s1738_s24   ;;  %p1366_p0 = scmp.ge.s32.totalorder %s1738_s24, 1  ;;  %s1738_s24 = sphi %s1780_s24, %s17_s24  }
   0x2   : > { %p263_p1 = scmp.lt.s32.totalorder %s1738_s24, 3 }
   0x4   : > { %p264_p2 = pnand %p1366_p0, %p263_p1 }
   0x5   : > { %v1648_v0 = vld [vmem:[%s2029_s4 + $0x40] sm:$0xff] (!%p264_p2)   ;;  %s1367_s28 = sshll.u32 (!%p264_p2), %s1362_s25, 2  ;;  %v1651_v3 = vld [vmem:[%s2029_s4 + $0x48] sm:$0xff] (!%p264_p2)   ;;  %v1654_v6 = vld [vmem:[%s2029_s4 + $0x50] sm:$0xff] (!%p264_p2)   ;;  %vm582_vm0 = vcmask (!%p264_p2), 523264  }
   0x6   : > { %267 = sbr.rel (%p264_p2) target bundleno = 311 (0x137), region = 48  ;;  %v1649_v1 = vld [vmem:[%s2029_s4 + $0x80] sm:$0xff] (!%p264_p2)   ;;  %p309_p3 = scmp.lt.s32.totalorder (!%p264_p2), %s1367_s28, 7  ;;  %1481 = vmatprep.subr.bf16.mxu0 (!%p264_p2), %v1648_v0  ;;  %v1652_v4 = vld [vmem:[%s2029_s4 + $0x88] sm:$0xff] (!%p264_p2)   ;;  %v1655_v7 = vld [vmem:[%s2029_s4 + $0x90] sm:$0xff] (!%p264_p2)  }
   0x7   : > { %v1650_v2 = vld [vmem:[%s2029_s4] sm:$0xff] (!%p264_p2)   ;;  %1583 = vmatprep.subr.bf16.mxu1 (!%p264_p2), %v1649_v1  ;;  %v1653_v5 = vld [vmem:[%s2029_s4 + $0x8] sm:$0xff] (!%p264_p2)   ;;  %v1656_v8 = vld [vmem:[%s2029_s4 + $0x10] sm:$0xff] (!%p264_p2)  }
   0x8   : > { %1482 = vmatpush3.bf16.msra.mxu0 (!%p264_p2), %v1650_v2  ;;  %1584 = vmatpush3.bf16.msra.mxu1 (!%p264_p2), %v1649_v1  ;;  %v1657_v9 = vld [vmem:[%s2029_s4 + $0x58] sm:$0xff] (!%p264_p2)   ;;  %v1660_v12 = vld [vmem:[%s2029_s4 + $0x60] sm:$0xff] (!%p264_p2)   ;;  %v1666_v18 = vld [vmem:[%s2029_s4 + $0x68] sm:$0xff] (!%p264_p2)  }
   0x9   : > { %1483 = vmatprep.subr.bf16.mxu0 (!%p264_p2), %v1651_v3  ;;  %1585 = vmatprep.subr.bf16.mxu1 (!%p264_p2), %v1652_v4  ;;  %v1658_v10 = vld [vmem:[%s2029_s4 + $0x98] sm:$0xff] (!%p264_p2)   ;;  %v1662_v14 = vld [vmem:[%s2028_s3 + $0x40] sm:$0xff] (!%p264_p2)   ;;  %v1667_v19 = vld [vmem:[%s2028_s3 + $0x48] sm:$0xff] (!%p264_p2)  }
   0xa   : > { %v1659_v11 = vld [vmem:[%s2029_s4 + $0x18] sm:$0xff] (!%p264_p2)   ;;  %v1663_v15 = vld [vmem:[%s2029_s4 + $0x20] sm:$0xff] (!%p264_p2)   ;;  %v1668_v20 = vld [vmem:[%s2029_s4 + $0x28] sm:$0xff] (!%p264_p2)  }
   0xb   : > { %v1665_v17 = vld [vmem:[%s2028_s3] sm:$0xff] (!%p264_p2)   ;;  %v1669_v21 = vld [vmem:[%s2028_s3 + $0x8] sm:$0xff] (!%p264_p2)   ;;  %v1670_v22 = vld [vmem:[%s2029_s4 + $0x70] sm:$0xff] (!%p264_p2)  }
   0xc   : > { %1484 = vmatpush3.bf16.msra.mxu0 (!%p264_p2), %v1653_v5  ;;  %1586 = vmatpush3.bf16.msra.mxu1 (!%p264_p2), %v1652_v4  ;;  %v1671_v23 = vld [vmem:[%s2028_s3 + $0x50] sm:$0xff] (!%p264_p2)   ;;  %v1674_v26 = vld [vmem:[%s2029_s4 + $0x78] sm:$0xff] (!%p264_p2)   ;;  %v1681_v32 = vld [vmem:[%s2028_s3 + $0x60] sm:$0xff] (!%p264_p2)  }
   0xd   : > { %s2034_s28 = smov (!%p309_p3, %s1367_s28), 7  ;;  %1485 = vmatprep.subr.bf16.mxu0 %v1654_v6  ;;  %1587 = vmatprep.subr.bf16.mxu1 %v1655_v7  ;;  %v1672_v24 = vld [vmem:[%s2029_s4 + $0x30] sm:$0xff]   ;;  %v1675_v27 = vld [vmem:[%s2028_s3 + $0x58] sm:$0xff]   ;;  %v1682_v33 = vld [vmem:[%s2030_s5 + $0x40] sm:$0xff]  }
   0xe   : > { %s1812_s18 = smul.u32 12, %s2034_s28  ;;  %v1673_v25 = vld [vmem:[%s2028_s3 + $0x10] sm:$0xff]   ;;  %v1676_v28 = vld [vmem:[%s2029_s4 + $0x38] sm:$0xff]   ;;  %v1683_v34 = vld [vmem:[%s2028_s3 + $0x20] sm:$0xff]   ;;  %s1374_s20 = sshll.u32 %s2034_s28, 2 }
   0xf   : > { %v1677_v29 = vld [vmem:[%s2028_s3 + $0x18] sm:$0xff]   ;;  %v1684_v35 = vld [vmem:[%s2030_s5] sm:$0xff]   ;;  %v1685_v36 = vld [vmem:[%s2028_s3 + $0x68] sm:$0xff]   ;;  %s333_s22 = scalar_lea.vmem %s2032_s7, %s1374_s20 }
  0x10   : > { %s1830_s8 = scalar_lea.vmem %s2026_s1, %s1812_s18  ;;  %1486 = vmatpush3.bf16.msra.mxu0 %v1656_v8  ;;  %1588 = vmatpush3.bf16.msra.mxu1 %v1655_v7  ;;  %v1686_v37 = vld [vmem:[%s2030_s5 + $0x48] sm:$0xff]   ;;  %v1689_v40 = vld [vmem:[%s2028_s3 + $0x70] sm:$0xff]   ;;  %v1693_v44 = vld [vmem:[%s2028_s3 + $0x78] sm:$0xff]   ;;  %s1935_s16 = scalar_lea.vmem %s2025_s0, %s1812_s18 }
  0x11   : > { %1487 = vmatprep.subr.bf16.mxu0 %v1657_v9  ;;  %1589 = vmatprep.subr.bf16.mxu1 %v1658_v10  ;;  %v1661_v13 = vld [vmem:[%s1830_s8 + $0x8] ss:$12 sps:$4 sm:$0xff]   ;;  %v1664_v16 = vld [vmem:[%s1830_s8 + $0x20] ss:$12 sps:$4 sm:$0xff]   ;;  %v1680_v31 = vld [vmem:[%s1830_s8 + $0x4] ss:$12 sps:$4 sm:$0xff]   ;;  %s1983_s26 = scalar_lea.vmem %s2027_s2, %s1812_s18 }
  0x12   : > { %1591 = vmatprep.mubr.msk.bf16.mxu1 %vm582_vm0, %v1661_v13  ;;  %v1678_v30 = vld [vmem:[%s1830_s8] ss:$12 sps:$4 sm:$0xff]   ;;  %621 = vmatprep.mubr.bf16.mxu0 %v1680_v31  ;;  %v1690_v41 = vld [vmem:[%s2030_s5 + $0x50] sm:$0xff]   ;;  %v1694_v45 = vld [vmem:[%s2030_s5 + $0x58] sm:$0xff]  }
  0x13   : > { %v1687_v38 = vld [vmem:[%s2028_s3 + $0x28] sm:$0xff]   ;;  %v1691_v42 = vld [vmem:[%s2028_s3 + $0x30] sm:$0xff]   ;;  %v1695_v46 = vld [vmem:[%s2028_s3 + $0x38] sm:$0xff]  }
  0x14   : > { %1488 = vmatpush3.bf16.msra.mxu0 %v1659_v11  ;;  %1590 = vmatpush3.bf16.msra.mxu1 %v1658_v10  ;;  %v1688_v39 = vld [vmem:[%s2030_s5 + $0x8] sm:$0xff]   ;;  %v1692_v43 = vld [vmem:[%s2030_s5 + $0x10] sm:$0xff]   ;;  %v1696_v47 = vld [vmem:[%s2030_s5 + $0x18] sm:$0xff]  }
  0x15   : > { %1489 = vmatprep.subr.bf16.mxu0 %v1660_v12  ;;  %1515 = vmatprep.subr.bf16.mxu1 %v1662_v14  ;;  %v1697_v48 = vld [vmem:[%s1935_s16] ss:$12 sps:$4 sm:$0xff]   ;;  %v1699_v49 = vld [vmem:[%s1935_s16 + $0x4] ss:$12 sps:$4 sm:$0xff]   ;;  %v1706_v56 = vld [vmem:[%s1830_s8 + $0x1c] ss:$12 sps:$4 sm:$0xff]  }
  0x16   : > { %v1700_v50 = vld [vmem:[%s2028_s3 + $0x80] sm:$0xff]   ;;  %v1703_v53 = vld [vmem:[%s2028_s3 + $0x88] sm:$0xff]   ;;  %v1712_v60 = vld [vmem:[%s2028_s3 + $0x90] sm:$0xff]  }
  0x17   : > { %1592 = vmatmul.mubr.msk.bf16.vlgmr.msra.gmra.mrb[0].mxu1 %vm582_vm0, %v1664_v16  ;;  %v1701_v51 = vld [vmem:[%s2030_s5 + $0x60] sm:$0xff]   ;;  %v1704_v54 = vld [vmem:[%s2030_s5 + $0x68] sm:$0xff]   ;;  %v1713_v61 = vld [vmem:[%s2030_s5 + $0x70] sm:$0xff]  }
  0x18   : > { %1490 = vmatpush3.bf16.msra.mxu0 %v1663_v15  ;;  %1516 = vmatpush3.bf16.msra.mxu1 %v1665_v17  ;;  %v1702_v52 = vld [vmem:[%s2030_s5 + $0x20] sm:$0xff]   ;;  %v1705_v55 = vld [vmem:[%s2030_s5 + $0x28] sm:$0xff]   ;;  %v1714_v62 = vld [vmem:[%s2030_s5 + $0x30] sm:$0xff]  }
  0x19   : > { %1491 = vmatprep.subr.bf16.mxu0 %v1666_v18  ;;  %1517 = vmatprep.subr.bf16.mxu1 %v1667_v19  ;;  %v1708_v57 = vld [vmem:[%s1935_s16 + $0x1c] ss:$12 sps:$4 sm:$0xff]   ;;  %v1710_v58 = vld [vmem:[%s1830_s8 + $0x18] ss:$12 sps:$4 sm:$0xff]   ;;  %v1718_v2 = vld [vmem:[%s1983_s26] ss:$12 sps:$4 sm:$0xff]  }
  0x1a   : > { %875 = vmatprep.mubr.bf16.mxu1 %v1699_v49  ;;  %v1711_v59 = vld [vmem:[%s1935_s16 + $0x18] ss:$12 sps:$4 sm:$0xff]   ;;  %v1721_v4 = vld [vmem:[%s1935_s16 + $0x8] ss:$12 sps:$4 sm:$0xff]   ;;  %v1723_v6 = vld [vmem:[%s1935_s16 + $0x20] ss:$12 sps:$4 sm:$0xff]  }
  0x1b   : > { %v1715_v63 = vld [vmem:[%s2028_s3 + $0x98] sm:$0xff]   ;;  %v1720_v3 = vld [vmem:[%s1983_s26 + $0x4] ss:$12 sps:$4 sm:$0xff]   ;;  %v1724_v7 = vld [vmem:[%s2030_s5 + $0x88] sm:$0xff]  }
  0x1c   : > { %1492 = vmatpush3.bf16.msra.mxu0 %v1668_v20  ;;  %1518 = vmatpush3.bf16.msra.mxu1 %v1669_v21  ;;  %v1716_v0 = vld [vmem:[%s2030_s5 + $0x78] sm:$0xff]   ;;  %v1722_v5 = vld [vmem:[%s2030_s5 + $0x80] sm:$0xff]   ;;  %v1728_v9 = vld [vmem:[%s2030_s5 + $0x90] sm:$0xff]  }
  0x1d   : > { %1493 = vmatprep.subr.bf16.mxu0 %v1670_v22  ;;  %1519 = vmatprep.subr.bf16.mxu1 %v1671_v23  ;;  %v1717_v1 = vld [vmem:[%s2030_s5 + $0x38] sm:$0xff]   ;;  %v1730_v10 = vld [vmem:[%s1983_s26 + $0x8] ss:$12 sps:$4 sm:$0xff]   ;;  %v1731_v13 = vld [vmem:[%s1983_s26 + $0x20] ss:$12 sps:$4 sm:$0xff]  }
  0x1e   : > { %v1725_v8 = vld [vmem:[%s1983_s26 + $0x1c] ss:$12 sps:$4 sm:$0xff]   ;;  %v1727_v11 = vld [vmem:[%s1983_s26 + $0x18] ss:$12 sps:$4 sm:$0xff]  }
  0x1f   : > { %v1729_v12 = vld [vmem:[%s2030_s5 + $0x98] sm:$0xff]  }
  0x20   : > { %1494 = vmatpush3.bf16.msra.mxu0 %v1672_v24  ;;  %1520 = vmatpush3.bf16.msra.mxu1 %v1673_v25 }
  0x21   : > { %1495 = vmatprep.subr.bf16.mxu0 %v1674_v26  ;;  %1521 = vmatprep.subr.bf16.mxu1 %v1675_v27 }
  0x24   : > { %1496 = vmatpush3.bf16.msra.mxu0 %v1676_v28  ;;  %1522 = vmatpush3.bf16.msra.mxu1 %v1677_v29 }
  0x25   : > { %1523 = vmatprep.subr.bf16.mxu1 %v1681_v32  ;;  %1549 = vmatprep.subr.bf16.mxu0 %v1682_v33 }
  0x27   : > { %622 = vmatmul.mubr.bf16.vlgmr.msra.gmra.mrb[0].mxu0 %v1678_v30 }
  0x28   : > { %1524 = vmatpush3.bf16.msra.mxu1 %v1683_v34  ;;  %1550 = vmatpush3.bf16.msra.mxu0 %v1684_v35 }
  0x29   : > { %1525 = vmatprep.subr.bf16.mxu1 %v1685_v36  ;;  %1551 = vmatprep.subr.bf16.mxu0 %v1686_v37 }
  0x2a   : > { %629 = vmatprep.mubr.bf16.mxu0 %v1706_v56 }
  0x2c   : > { %1526 = vmatpush3.bf16.msra.mxu1 %v1687_v38  ;;  %1552 = vmatpush3.bf16.msra.mxu0 %v1688_v39 }
  0x2d   : > { %1527 = vmatprep.subr.bf16.mxu1 %v1689_v40  ;;  %1553 = vmatprep.subr.bf16.mxu0 %v1690_v41 }
  0x2f   : > { %630 = vmatmul.mubr.bf16.gmra.mrb[4].mxu0 %v1710_v58 }
  0x30   : > { %1528 = vmatpush3.bf16.msra.mxu1 %v1691_v42  ;;  %1554 = vmatpush3.bf16.msra.mxu0 %v1692_v43 }
  0x31   : > { %1529 = vmatprep.subr.bf16.mxu1 %v1693_v44  ;;  %1555 = vmatprep.subr.bf16.mxu0 %v1694_v45 }
  0x32   : > { %1177 = vmatprep.mubr.bf16.mxu0 %v1720_v3 }
  0x34   : > { %1530 = vmatpush3.bf16.msra.mxu1 %v1695_v46  ;;  %1556 = vmatpush3.bf16.msra.mxu0 %v1696_v47 }
  0x35   : > { %1595 = vmatprep.subr.bf16.mxu1 %v1700_v50  ;;  %1557 = vmatprep.subr.bf16.mxu0 %v1701_v51 }
  0x37   : > { %876 = vmatmul.mubr.bf16.vlgmr.msra.gmra.mrb[4].mxu1 %v1697_v48 }
  0x38   : > { %1596 = vmatpush3.bf16.msra.mxu1 %v1700_v50  ;;  %1558 = vmatpush3.bf16.msra.mxu0 %v1702_v52 }
  0x39   : > { %1597 = vmatprep.subr.bf16.mxu1 %v1703_v53  ;;  %1559 = vmatprep.subr.bf16.mxu0 %v1704_v54 }
  0x3a   : > { %883 = vmatprep.mubr.bf16.mxu1 %v1708_v57 }
  0x3c   : > { %1598 = vmatpush3.bf16.msra.mxu1 %v1703_v53  ;;  %1560 = vmatpush3.bf16.msra.mxu0 %v1705_v55 }
  0x3d   : > { %1599 = vmatprep.subr.bf16.mxu1 %v1712_v60  ;;  %1561 = vmatprep.subr.bf16.mxu0 %v1713_v61 }
  0x3f   : > { %884 = vmatmul.mubr.bf16.gmra.mrb[8].mxu1 %v1711_v59  ;;  %v1459_v59 = vld [vmem:[%s2031_s6] ss:$0 sm:$0xff] }
  0x40   : > { %1600 = vmatpush3.bf16.msra.mxu1 %v1712_v60  ;;  %1562 = vmatpush3.bf16.msra.mxu0 %v1714_v62 }
  0x41   : > { %1601 = vmatprep.subr.bf16.mxu1 %v1715_v63  ;;  %1563 = vmatprep.subr.bf16.mxu0 %v1716_v0 }
  0x42   : > { %1603 = vmatprep.mubr.msk.bf16.mxu1 %vm582_vm0, %v1721_v4 }
  0x44   : > { %1602 = vmatpush3.bf16.msra.mxu1 %v1715_v63  ;;  %1564 = vmatpush3.bf16.msra.mxu0 %v1717_v1 }
  0x45   : > { %1607 = vmatprep.subr.bf16.mxu1 %v1722_v5 }
  0x47   : > { %1178 = vmatmul.mubr.bf16.vlgmr.msra.gmra.mrb[8].mxu0 %v1718_v2  ;;  %1604 = vmatmul.mubr.msk.bf16.vlgmr.msra.gmra.mrb[0].mxu1 %vm582_vm0, %v1723_v6 }
  0x48   : > { %1608 = vmatpush3.bf16.msra.mxu1 %v1722_v5  ;;  %1185 = vmatprep.mubr.bf16.mxu0 %v1725_v8 }
  0x49   : > { %1609 = vmatprep.subr.bf16.mxu1 %v1724_v7  ;;  %1615 = vmatprep.mubr.msk.bf16.mxu1 %vm582_vm0, %v1730_v10 }
  0x4c   : > { %1610 = vmatpush3.bf16.msra.mxu1 %v1724_v7 }
  0x4d   : > { %1611 = vmatprep.subr.bf16.mxu1 %v1728_v9 }
  0x4f   : > { %1186 = vmatmul.mubr.bf16.gmra.mrb[12].mxu0 %v1727_v11 }
  0x50   : > { %1612 = vmatpush3.bf16.msra.mxu1 %v1728_v9 }
  0x51   : > { %1613 = vmatprep.subr.bf16.mxu1 %v1729_v12 }
  0x54   : > { %1614 = vmatpush3.bf16.msra.mxu1 %v1729_v12 }
  0x57   : > { %1616 = vmatmul.mubr.msk.bf16.vlgmr.msra.gmra.mrb[0].mxu1 %vm582_vm0, %v1731_v13 }
  0xfa   : > { %v1497_v14 = vpop.f32.mrb[0].mxu0 }
  0xfb   : > { %v1498_v15 = vpop.f32.mrb[1].mxu0 }
  0xfc   : > { %v1499_v16 = vadd.f32 %v1498_v15, %v1497_v14  ;;  %v1500_v17 = vpop.f32.mrb[2].mxu0 }
  0xfd   : > { %v1501_v18 = vpop.f32.mrb[3].mxu0 }
  0xfe   : > { %v1502_v19 = vadd.f32 %v1501_v18, %v1500_v17 }
 0x102   : > { %v1503_v28 = vpop.f32.mrb[4].mxu0 }
 0x103   : > { %v1504_v30 = vpop.f32.mrb[5].mxu0 }
 0x104   : > { %v1505_v31 = vadd.f32 %v1504_v30, %v1503_v28  ;;  %v1506_v33 = vpop.f32.mrb[6].mxu0 }
 0x105   : > { %v1507_v36 = vpop.f32.mrb[7].mxu0 }
 0x106   : > { %v1508_v37 = vadd.f32 %v1507_v36, %v1506_v33 }
 0x10a   : > { %v1531_v20 = vpop.f32.mrb[4].mxu1 }
 0x10b   : > { %v1532_v21 = vpop.f32.mrb[5].mxu1 }
 0x10c   : > { %v1533_v22 = vadd.f32 %v1532_v21, %v1531_v20  ;;  %v1534_v23 = vpop.f32.mrb[6].mxu1 }
 0x10d   : > { %v1535_v24 = vpop.f32.mrb[7].mxu1 }
 0x10e   : > { %v1622_v25 = vadd.f32 %v1533_v22, %v1499_v16  ;;  %v1536_v26 = vadd.f32 %v1535_v24, %v1534_v23 }
 0x110   : > { %v1628_v27 = vadd.f32 %v1536_v26, %v1502_v19 }
 0x112   : > { %v1537_v29 = vpop.f32.mrb[8].mxu1 }
 0x113   : > { %v1538_v32 = vpop.f32.mrb[9].mxu1 }
 0x114   : > { %v1539_v34 = vadd.f32 %v1538_v32, %v1537_v29  ;;  %v1540_v35 = vpop.f32.mrb[10].mxu1 }
 0x115   : > { %v1541_v38 = vpop.f32.mrb[11].mxu1 }
 0x116   : > { %v1619_v39 = vadd.f32 %v1539_v34, %v1505_v31  ;;  %v1542_v40 = vadd.f32 %v1541_v38, %v1540_v35 }
 0x118   : > { %v1625_v41 = vadd.f32 %v1542_v40, %v1508_v37 }
 0x11a   : > { %v1565_v42 = vpop.f32.mrb[8].mxu0 }
 0x11b   : > { %v1566_v43 = vpop.f32.mrb[9].mxu0 }
 0x11c   : > { %v1567_v44 = vadd.f32 %v1566_v43, %v1565_v42  ;;  %v1568_v45 = vpop.f32.mrb[10].mxu0 }
 0x11d   : > { %v1569_v46 = vpop.f32.mrb[11].mxu0 }
 0x11e   : > { %v1570_v47 = vadd.f32 %v1569_v46, %v1568_v45  ;;  %v1623_v48 = vadd.f32 %v1622_v25, %v1567_v44 }
 0x120   : > { %v1629_v49 = vadd.f32 %v1628_v27, %v1570_v47 }
 0x122   : > { %v1571_v50 = vpop.f32.mrb[12].mxu0 }
 0x123   : > { %v1572_v51 = vpop.f32.mrb[13].mxu0 }
 0x124   : > { %v1573_v52 = vadd.f32 %v1572_v51, %v1571_v50  ;;  %v1574_v53 = vpop.f32.mrb[14].mxu0 }
 0x125   : > { %v1575_v54 = vpop.f32.mrb[15].mxu0 }
 0x126   : > { %v1576_v55 = vadd.f32 %v1575_v54, %v1574_v53  ;;  %v1620_v56 = vadd.f32 %v1619_v39, %v1573_v52 }
 0x128   : > { %v1626_v57 = vadd.f32 %v1625_v41, %v1576_v55 }
 0x12a   : > { %v1617_v58 = vpop.f32.mrb[0].mxu1 }
 0x12b   : > { %v1621_v60 = vadd.f32 %v1620_v56, %v1617_v58  ;;  %v1228_v61 = vpop.f32.mrb[1].mxu1 }
 0x12c   : > { %v1624_v62 = vadd.f32 %v1623_v48, %v1228_v61  ;;  %v1618_v63 = vpop.f32.mrb[2].mxu1 }
 0x12d   : > { %v1256_v0 = vadd.f32 %v1621_v60, %v1459_v59  ;;  %v1627_v1 = vadd.f32 %v1626_v57, %v1618_v63  ;;  %v1231_v2 = vpop.f32.mrb[3].mxu1 }
 0x12e   : > { %v1254_v3 = vadd.f32 %v1624_v62, %v1459_v59  ;;  %v1630_v4 = vadd.f32 %v1629_v49, %v1231_v2 }
 0x12f   : > { %v1257_v5 = vadd.f32 %v1627_v1, %v1459_v59  ;;  %v1260_v7 = vmax.f32 %v1256_v0, 0.0 }
 0x130   : > { %v1255_v6 = vadd.f32 %v1630_v4, %v1459_v59  ;;  %v1258_v9 = vmax.f32 %v1254_v3, 0.0 }
 0x131   : > { %v1261_v8 = vmax.f32 %v1257_v5, 0.0 }
 0x132   : > { %v1259_v10 = vmax.f32 %v1255_v6, 0.0 }
 0x133   : > { %v1478_v11 = vpack.c.bf16 %v1261_v8, %v1260_v7 }
 0x134   : > { %v1473_v12 = vpack.c.bf16 %v1259_v10, %v1258_v9 }
 0x135   : > { %1480 = vst [vmem:[%s333_s22 + $0x8] sm:$0xff] %v1478_v11  }
 0x136   : > { %1474 = vst [vmem:[%s333_s22] sm:$0xff] %v1473_v12  }
 0x137 PF: > { %s17_s24 = sadd.s32 1, %s1738_s24  }
 0x138   : > { %p14_p4 = scmp.ge.s32.totalorder %s17_s24, 4  }
 0x13a   :  { %16 = sbr.rel (!%p14_p4) target bundleno = 1 (0x1), region = 84 }

// kernel: reference_encoder_forward.8
= control target key start
LH: loop header
LB: loop body
LE: loop exit
PB: predicated region body
PF: predicated region fallthrough
CT: control target
= control target key end

     0   :  { %s1072_s24 = smov 0   ;;  %s1266_s0 = inlined_call_operand.vmem [shape: bf16[32,192], index: 0, kind: input, shape index: {}]   ;;  %s1267_s1 = inlined_call_operand.vmem [shape: bf16[32,192], index: 1, kind: input, shape index: {}]   ;;  %s1268_s2 = inlined_call_operand.vmem [shape: bf16[32,192], index: 2, kind: input, shape index: {}]   ;;  %s1269_s3 = inlined_call_operand.vmem [shape: bf16[192,128], index: 3, kind: input, shape index: {}]   ;;  %s1270_s4 = inlined_call_operand.vmem [shape: bf16[192,128], index: 4, kind: input, shape index: {}]   ;;  %s1271_s5 = inlined_call_operand.vmem [shape: bf16[192,128], index: 5, kind: input, shape index: {}]   ;;  %s1272_s6 = inlined_call_operand.vmem [shape: f32[1,128], index: 6, kind: input, shape index: {}]   ;;  %s1273_s7 = inlined_call_operand.vmem [shape: bf16[32,128], index: 7, kind: output, shape index: {}]  }
   0x1 LB: > { %s893_s25 = sadd.s32 4294967295, %s1029_s24   ;;  %p897_p0 = scmp.ge.s32.totalorder %s1029_s24, 1  ;;  %s1029_s24 = sphi %s1072_s24, %s17_s24  }
   0x2   : > { %p263_p1 = scmp.lt.s32.totalorder %s1029_s24, 3 }
   0x4   : > { %p264_p2 = pnand %p897_p0, %p263_p1 }
   0x5   : > { %v978_v0 = vld [vmem:[%s1270_s4] sm:$0xff] (!%p264_p2)   ;;  %v1031_v1 = vmov (!%p264_p2), 0   ;;  %v980_v3 = vld [vmem:[%s1270_s4 + $0x8] sm:$0xff] (!%p264_p2)   ;;  %v982_v5 = vld [vmem:[%s1270_s4 + $0x10] sm:$0xff] (!%p264_p2)   ;;  %s898_s15 = sshll.u32 (!%p264_p2), %s893_s25, 1  ;;  %vm469_vm0 = vcmask (!%p264_p2), 523264  }
   0x6   : > { %267 = sbr.rel (%p264_p2) target bundleno = 325 (0x145), region = 48  ;;  %473 = vmatprep.subr.bf16.mxu0 (!%p264_p2), %v1031_v1  ;;  %598 = vmatprep.subr.bf16.mxu1 (!%p264_p2), %v1031_v1  ;;  %v979_v2 = vld [vmem:[%s1269_s3] sm:$0xff] (!%p264_p2)   ;;  %v981_v4 = vld [vmem:[%s1269_s3 + $0x8] sm:$0xff] (!%p264_p2)   ;;  %v983_v6 = vld [vmem:[%s1269_s3 + $0x10] sm:$0xff] (!%p264_p2)   ;;  %p309_p3 = scmp.lt.s32.totalorder (!%p264_p2), %s898_s15, 3 }
   0x7   : > { %474 = vmatpush1.bf16.msra.mxu0 (!%p264_p2), %v978_v0  ;;  %599 = vmatpush1.bf16.msra.mxu1 (!%p264_p2), %v979_v2  ;;  %v984_v7 = vld [vmem:[%s1270_s4 + $0x18] sm:$0xff] (!%p264_p2)   ;;  %v986_v9 = vld [vmem:[%s1270_s4 + $0x20] sm:$0xff] (!%p264_p2)   ;;  %v988_v11 = vld [vmem:[%s1270_s4 + $0x28] sm:$0xff] (!%p264_p2)  }
   0x8   : > { %475 = vmatprep.subr.bf16.mxu0 (!%p264_p2), %v1031_v1  ;;  %600 = vmatprep.subr.bf16.mxu1 (!%p264_p2), %v1031_v1  ;;  %v985_v8 = vld [vmem:[%s1269_s3 + $0x18] sm:$0xff] (!%p264_p2)   ;;  %v987_v10 = vld [vmem:[%s1269_s3 + $0x20] sm:$0xff] (!%p264_p2)   ;;  %v989_v12 = vld [vmem:[%s1269_s3 + $0x28] sm:$0xff] (!%p264_p2)  }
   0x9   : > { %v990_v13 = vld [vmem:[%s1270_s4 + $0x30] sm:$0xff] (!%p264_p2)   ;;  %v992_v16 = vld [vmem:[%s1270_s4 + $0x38] sm:$0xff] (!%p264_p2)   ;;  %v994_v19 = vld [vmem:[%s1270_s4 + $0x40] sm:$0xff] (!%p264_p2)  }
   0xa   : > { %v991_v14 = vld [vmem:[%s1269_s3 + $0x30] sm:$0xff] (!%p264_p2)   ;;  %v993_v18 = vld [vmem:[%s1269_s3 + $0x38] sm:$0xff] (!%p264_p2)   ;;  %v995_v20 = vld [vmem:[%s1269_s3 + $0x40] sm:$0xff] (!%p264_p2)  }
   0xb   : > { %476 = vmatpush1.bf16.msra.mxu0 (!%p264_p2), %v980_v3  ;;  %601 = vmatpush1.bf16.msra.mxu1 (!%p264_p2), %v981_v4  ;;  %v996_v21 = vld [vmem:[%s1270_s4 + $0x48] sm:$0xff] (!%p264_p2)   ;;  %v998_v23 = vld [vmem:[%s1270_s4 + $0x50] sm:$0xff] (!%p264_p2)   ;;  %v1000_v25 = vld [vmem:[%s1270_s4 + $0x58] sm:$0xff] (!%p264_p2)  }
   0xc   : > { %477 = vmatprep.subr.bf16.mxu0 (!%p264_p2), %v1031_v1  ;;  %602 = vmatprep.subr.bf16.mxu1 (!%p264_p2), %v1031_v1  ;;  %v997_v22 = vld [vmem:[%s1269_s3 + $0x48] sm:$0xff] (!%p264_p2)   ;;  %v999_v24 = vld [vmem:[%s1269_s3 + $0x50] sm:$0xff] (!%p264_p2)   ;;  %v1001_v26 = vld [vmem:[%s1269_s3 + $0x58] sm:$0xff] (!%p264_p2)  }
   0xd   : > { %s1275_s15 = smov (!%p309_p3, %s898_s15), 3  ;;  %v1008_v29 = vld [vmem:[%s1271_s5] sm:$0xff]   ;;  %v1009_v31 = vld [vmem:[%s1271_s5 + $0x8] sm:$0xff]   ;;  %v1010_v32 = vld [vmem:[%s1271_s5 + $0x10] sm:$0xff]  }
   0xe   : > { %s1130_s29 = sshll.u32 %s1275_s15, 3  ;;  %v1011_v33 = vld [vmem:[%s1271_s5 + $0x18] sm:$0xff]   ;;  %v1012_v34 = vld [vmem:[%s1271_s5 + $0x20] sm:$0xff]   ;;  %v1013_v35 = vld [vmem:[%s1271_s5 + $0x28] sm:$0xff]  }
   0xf   : > { %478 = vmatpush1.bf16.msra.mxu0 %v982_v5  ;;  %603 = vmatpush1.bf16.msra.mxu1 %v983_v6  ;;  %s1140_s11 = scalar_lea.vmem %s1267_s1, %s1130_s29  ;;  %s1150_s17 = scalar_lea.vmem %s1266_s0, %s1130_s29  ;;  %v1014_v36 = vld [vmem:[%s1271_s5 + $0x30] sm:$0xff]   ;;  %v1015_v37 = vld [vmem:[%s1271_s5 + $0x38] sm:$0xff]   ;;  %v1016_v38 = vld [vmem:[%s1271_s5 + $0x40] sm:$0xff]  }
  0x10   : > { %479 = vmatprep.subr.bf16.mxu0 %v1031_v1  ;;  %604 = vmatprep.subr.bf16.mxu1 %v1031_v1  ;;  %v1004_v15 = vld [vmem:[%s1140_s11 + $0x4] ss:$8 sps:$4 sm:$0xff]   ;;  %s1185_s12 = scalar_lea.vmem %s1268_s2, %s1130_s29  ;;  %v1002_v27 = vld [vmem:[%s1140_s11] ss:$8 sps:$4 sm:$0xff]   ;;  %v1018_v40 = vld [vmem:[%s1271_s5 + $0x50] sm:$0xff]  }
  0x11   : > { %v1007_v17 = vld [vmem:[%s1150_s17 + $0x4] ss:$8 sps:$4 sm:$0xff]   ;;  %923 = vmatprep.mubr.msk.bf16.mxu0 %vm469_vm0, %v1004_v15  ;;  %v1005_v28 = vld [vmem:[%s1150_s17] ss:$8 sps:$4 sm:$0xff]   ;;  %v1019_v41 = vld [vmem:[%s1271_s5 + $0x58] sm:$0xff]  }
  0x12   : > { %938 = vmatprep.mubr.msk.bf16.mxu1 %vm469_vm0, %v1007_v17  ;;  %v1020_v30 = vld [vmem:[%s1185_s12 + $0x4] ss:$8 sps:$4 sm:$0xff]   ;;  %v1022_v42 = vld [vmem:[%s1185_s12] ss:$8 sps:$4 sm:$0xff]   ;;  %s908_s12 = sshll.u32 %s1275_s15, 2 }
  0x13   : > { %480 = vmatpush1.bf16.msra.mxu0 %v984_v7  ;;  %605 = vmatpush1.bf16.msra.mxu1 %v985_v8  ;;  %v1017_v39 = vld [vmem:[%s1271_s5 + $0x48] sm:$0xff]   ;;  %v954_v54 = vld [vmem:[%s1272_s6] ss:$0 sm:$0xff]  ;;  %s333_s30 = scalar_lea.vmem %s1273_s7, %s908_s12 }
  0x14   : > { %481 = vmatprep.subr.bf16.mxu0 %v1031_v1  ;;  %606 = vmatprep.subr.bf16.mxu1 %v1031_v1 }
  0x17   : > { %482 = vmatpush1.bf16.msra.mxu0 %v986_v9  ;;  %607 = vmatpush1.bf16.msra.mxu1 %v987_v10 }
  0x18   : > { %483 = vmatprep.subr.bf16.mxu0 %v1031_v1  ;;  %608 = vmatprep.subr.bf16.mxu1 %v1031_v1 }
  0x1b   : > { %484 = vmatpush1.bf16.msra.mxu0 %v988_v11  ;;  %609 = vmatpush1.bf16.msra.mxu1 %v989_v12 }
  0x1c   : > { %485 = vmatprep.subr.bf16.mxu0 %v1031_v1  ;;  %610 = vmatprep.subr.bf16.mxu1 %v1031_v1 }
  0x1f   : > { %486 = vmatpush1.bf16.msra.mxu0 %v990_v13  ;;  %611 = vmatpush1.bf16.msra.mxu1 %v991_v14 }
  0x20   : > { %487 = vmatprep.subr.bf16.mxu0 %v1031_v1  ;;  %612 = vmatprep.subr.bf16.mxu1 %v1031_v1 }
  0x23   : > { %488 = vmatpush1.bf16.msra.mxu0 %v992_v16  ;;  %613 = vmatpush1.bf16.msra.mxu1 %v993_v18 }
  0x24   : > { %489 = vmatprep.subr.bf16.mxu0 %v1031_v1  ;;  %614 = vmatprep.subr.bf16.mxu1 %v1031_v1 }
  0x27   : > { %490 = vmatpush1.bf16.msra.mxu0 %v994_v19  ;;  %615 = vmatpush1.bf16.msra.mxu1 %v995_v20 }
  0x28   : > { %491 = vmatprep.subr.bf16.mxu0 %v1031_v1  ;;  %616 = vmatprep.subr.bf16.mxu1 %v1031_v1 }
  0x2b   : > { %492 = vmatpush1.bf16.msra.mxu0 %v996_v21  ;;  %617 = vmatpush1.bf16.msra.mxu1 %v997_v22 }
  0x2c   : > { %493 = vmatprep.subr.bf16.mxu0 %v1031_v1  ;;  %618 = vmatprep.subr.bf16.mxu1 %v1031_v1 }
  0x2f   : > { %494 = vmatpush1.bf16.msra.mxu0 %v998_v23  ;;  %619 = vmatpush1.bf16.msra.mxu1 %v999_v24 }
  0x30   : > { %495 = vmatprep.subr.bf16.mxu0 %v1031_v1  ;;  %620 = vmatprep.subr.bf16.mxu1 %v1031_v1 }
  0x33   : > { %496 = vmatpush1.bf16.msra.mxu0 %v1000_v25  ;;  %621 = vmatpush1.bf16.msra.mxu1 %v1001_v26 }
  0x34   : > { %749 = vmatprep.subr.bf16.mxu0 %v1031_v1 }
  0x36   : > { %506 = vmatmul.mubr.bf16.vlgmr.msra.gmra.mrb[0].mxu0 %v1002_v27  ;;  %631 = vmatmul.mubr.bf16.vlgmr.msra.gmra.mrb[0].mxu1 %v1005_v28 }
  0x37   : > { %750 = vmatpush1.bf16.msra.mxu0 %v1008_v29  ;;  %953 = vmatprep.mubr.msk.bf16.mxu0 %vm469_vm0, %v1020_v30 }
  0x38   : > { %751 = vmatprep.subr.bf16.mxu0 %v1031_v1 }
  0x3b   : > { %752 = vmatpush1.bf16.msra.mxu0 %v1009_v31 }
  0x3c   : > { %753 = vmatprep.subr.bf16.mxu0 %v1031_v1 }
  0x3f   : > { %754 = vmatpush1.bf16.msra.mxu0 %v1010_v32 }
  0x40   : > { %755 = vmatprep.subr.bf16.mxu0 %v1031_v1 }
  0x43   : > { %756 = vmatpush1.bf16.msra.mxu0 %v1011_v33 }
  0x44   : > { %757 = vmatprep.subr.bf16.mxu0 %v1031_v1 }
  0x47   : > { %758 = vmatpush1.bf16.msra.mxu0 %v1012_v34 }
  0x48   : > { %759 = vmatprep.subr.bf16.mxu0 %v1031_v1 }
  0x4b   : > { %760 = vmatpush1.bf16.msra.mxu0 %v1013_v35 }
  0x4c   : > { %761 = vmatprep.subr.bf16.mxu0 %v1031_v1 }
  0x4f   : > { %762 = vmatpush1.bf16.msra.mxu0 %v1014_v36 }
  0x50   : > { %763 = vmatprep.subr.bf16.mxu0 %v1031_v1 }
  0x53   : > { %764 = vmatpush1.bf16.msra.mxu0 %v1015_v37 }
  0x54   : > { %765 = vmatprep.subr.bf16.mxu0 %v1031_v1 }
  0x57   : > { %766 = vmatpush1.bf16.msra.mxu0 %v1016_v38 }
  0x58   : > { %767 = vmatprep.subr.bf16.mxu0 %v1031_v1 }
  0x5b   : > { %768 = vmatpush1.bf16.msra.mxu0 %v1017_v39 }
  0x5c   : > { %769 = vmatprep.subr.bf16.mxu0 %v1031_v1 }
  0x5f   : > { %770 = vmatpush1.bf16.msra.mxu0 %v1018_v40 }
  0x60   : > { %771 = vmatprep.subr.bf16.mxu0 %v1031_v1 }
  0x63   : > { %772 = vmatpush1.bf16.msra.mxu0 %v1019_v41 }
  0x66   : > { %782 = vmatmul.mubr.bf16.vlgmr.msra.gmra.mrb[4].mxu0 %v1022_v42 }
 0x109   : > { %v507_v43 = vpop.f32.mrb[0].mxu0  ;;  %v632_v44 = vpop.f32.mrb[0].mxu1 }
 0x10a   : > { %v509_v45 = vpop.f32.mrb[1].mxu0  ;;  %v633_v46 = vadd.f32 %v632_v44, %v507_v43  ;;  %v634_v47 = vpop.f32.mrb[1].mxu1 }
 0x10b   : > { %v510_v48 = vpop.f32.mrb[2].mxu0  ;;  %v635_v49 = vpop.f32.mrb[2].mxu1 }
 0x10c   : > { %v512_v50 = vpop.f32.mrb[3].mxu0  ;;  %v636_v51 = vadd.f32 %v635_v49, %v510_v48  ;;  %v637_v52 = vpop.f32.mrb[3].mxu1 }
 0x139   : > { %v783_v53 = vpop.f32.mrb[4].mxu0 }
 0x13a   : > { %v790_v55 = vadd.f32 %v783_v53, %v633_v46  ;;  %v785_v56 = vpop.f32.mrb[5].mxu0 }
 0x13b   : > { %v786_v57 = vpop.f32.mrb[6].mxu0 }
 0x13c   : > { %v799_v58 = vadd.f32 %v954_v54, %v790_v55  ;;  %v791_v59 = vadd.f32 %v786_v57, %v636_v51  ;;  %v788_v60 = vpop.f32.mrb[7].mxu0 }
 0x13e   : > { %v800_v61 = vadd.f32 %v954_v54, %v791_v59  ;;  %v801_v62 = vmax.f32 %v799_v58, 0.0 }
 0x140   : > { %v802_v63 = vmax.f32 %v800_v61, 0.0 }
 0x142   : > { %v967_v0 = vpack.c.bf16 %v802_v63, %v801_v62 }
 0x144   : > { %968 = vst [vmem:[%s333_s30] sm:$0xff] %v967_v0  }
 0x145 PF: > { %s17_s24 = sadd.s32 1, %s1029_s24  }
 0x146   : > { %p14_p4 = scmp.ge.s32.totalorder %s17_s24, 4  }
 0x148   :  { %16 = sbr.rel (!%p14_p4) target bundleno = 1 (0x1), region = 84 }

// kernel: reference_encoder_forward.10
= control target key start
LH: loop header
LB: loop body
LE: loop exit
PB: predicated region body
PF: predicated region fallthrough
CT: control target
= control target key end

     0   :  { %v571_v0 = vmov 0   ;;  %vm155_vm0 = vcmask 523264   ;;  %s774_s4 = inlined_call_operand.vmem [shape: bf16[192,128], index: 4, kind: input, shape index: {}]   ;;  %s775_s3 = inlined_call_operand.vmem [shape: bf16[192,128], index: 3, kind: input, shape index: {}]   ;;  %s776_s1 = inlined_call_operand.vmem [shape: bf16[8,192], index: 1, kind: input, shape index: {}]   ;;  %s777_s0 = inlined_call_operand.vmem [shape: bf16[8,192], index: 0, kind: input, shape index: {}]   ;;  %s778_s5 = inlined_call_operand.vmem [shape: bf16[192,128], index: 5, kind: input, shape index: {}]   ;;  %s779_s2 = inlined_call_operand.vmem [shape: bf16[8,192], index: 2, kind: input, shape index: {}]   ;;  %s780_s6 = inlined_call_operand.vmem [shape: f32[1,128], index: 6, kind: input, shape index: {}]   ;;  %s781_s7 = inlined_call_operand.vmem [shape: bf16[8,128], index: 7, kind: output, shape index: {}]  }
   0x1   :  { %159 = vmatprep.subr.bf16.mxu0 %v571_v0  ;;  %v529_v1 = vld [vmem:[%s774_s4] sm:$0xff]   ;;  %280 = vmatprep.subr.bf16.mxu1 %v571_v0  ;;  %v531_v3 = vld [vmem:[%s774_s4 + $0x8] sm:$0xff]   ;;  %v533_v5 = vld [vmem:[%s774_s4 + $0x10] sm:$0xff]  }
   0x2   :  { %v530_v2 = vld [vmem:[%s775_s3] sm:$0xff]   ;;  %160 = vmatpush1.bf16.msra.mxu0 %v529_v1  ;;  %v532_v4 = vld [vmem:[%s775_s3 + $0x8] sm:$0xff]   ;;  %v534_v6 = vld [vmem:[%s775_s3 + $0x10] sm:$0xff]  }
   0x3   :  { %281 = vmatpush1.bf16.msra.mxu1 %v530_v2  ;;  %161 = vmatprep.subr.bf16.mxu0 %v571_v0  ;;  %v535_v7 = vld [vmem:[%s774_s4 + $0x18] sm:$0xff]   ;;  %v537_v9 = vld [vmem:[%s774_s4 + $0x20] sm:$0xff]   ;;  %v539_v11 = vld [vmem:[%s774_s4 + $0x28] sm:$0xff]  }
   0x4   :  { %282 = vmatprep.subr.bf16.mxu1 %v571_v0  ;;  %v536_v8 = vld [vmem:[%s775_s3 + $0x18] sm:$0xff]   ;;  %v538_v10 = vld [vmem:[%s775_s3 + $0x20] sm:$0xff]   ;;  %v540_v12 = vld [vmem:[%s775_s3 + $0x28] sm:$0xff]  }
   0x5   :  { %v541_v13 = vld [vmem:[%s774_s4 + $0x30] sm:$0xff]   ;;  %v52_v15 = vld [vmem:[%s776_s1] sm:$0xff]  ;;  %v543_v19 = vld [vmem:[%s774_s4 + $0x38] sm:$0xff]  }
   0x6   :  { %162 = vmatpush1.bf16.msra.mxu0 %v531_v3  ;;  %v542_v14 = vld [vmem:[%s775_s3 + $0x30] sm:$0xff]   ;;  %v27_v16 = vld [vmem:[%s777_s0] sm:$0xff]  ;;  %v483_v17 = vcombine.high %v52_v15, %v52_v15  ;;  %v544_v20 = vld [vmem:[%s775_s3 + $0x38] sm:$0xff]   ;;  %v482_v30 = vcombine.low %v52_v15, %v52_v15 }
   0x7   :  { %283 = vmatpush1.bf16.msra.mxu1 %v532_v4  ;;  %163 = vmatprep.subr.bf16.mxu0 %v571_v0  ;;  %v498_v18 = vcombine.high %v27_v16, %v27_v16  ;;  %v545_v21 = vld [vmem:[%s774_s4 + $0x40] sm:$0xff]   ;;  %v547_v23 = vld [vmem:[%s774_s4 + $0x48] sm:$0xff]   ;;  %v549_v25 = vld [vmem:[%s774_s4 + $0x50] sm:$0xff]   ;;  %v497_v31 = vcombine.low %v27_v16, %v27_v16 }
   0x8   :  { %284 = vmatprep.subr.bf16.mxu1 %v571_v0  ;;  %496 = vmatprep.mubr.msk.bf16.mxu0 %vm155_vm0, %v483_v17  ;;  %v546_v22 = vld [vmem:[%s775_s3 + $0x40] sm:$0xff]   ;;  %v548_v24 = vld [vmem:[%s775_s3 + $0x48] sm:$0xff]   ;;  %v550_v26 = vld [vmem:[%s775_s3 + $0x50] sm:$0xff]  }
   0x9   :  { %511 = vmatprep.mubr.msk.bf16.mxu1 %vm155_vm0, %v498_v18  ;;  %v551_v27 = vld [vmem:[%s774_s4 + $0x58] sm:$0xff]   ;;  %v320_v29 = vld [vmem:[%s779_s2] sm:$0xff]  ;;  %v558_v34 = vld [vmem:[%s778_s5 + $0x8] sm:$0xff]  }
   0xa   :  { %164 = vmatpush1.bf16.msra.mxu0 %v533_v5  ;;  %v552_v28 = vld [vmem:[%s775_s3 + $0x58] sm:$0xff]   ;;  %v557_v32 = vld [vmem:[%s778_s5] sm:$0xff]   ;;  %v513_v33 = vcombine.high %v320_v29, %v320_v29  ;;  %v559_v35 = vld [vmem:[%s778_s5 + $0x10] sm:$0xff]   ;;  %v512_v45 = vcombine.low %v320_v29, %v320_v29 }
   0xb   :  { %285 = vmatpush1.bf16.msra.mxu1 %v534_v6  ;;  %165 = vmatprep.subr.bf16.mxu0 %v571_v0  ;;  %v560_v36 = vld [vmem:[%s778_s5 + $0x18] sm:$0xff]   ;;  %v561_v37 = vld [vmem:[%s778_s5 + $0x20] sm:$0xff]   ;;  %v562_v38 = vld [vmem:[%s778_s5 + $0x28] sm:$0xff]  }
   0xc   :  { %286 = vmatprep.subr.bf16.mxu1 %v571_v0  ;;  %v563_v39 = vld [vmem:[%s778_s5 + $0x30] sm:$0xff]   ;;  %v564_v40 = vld [vmem:[%s778_s5 + $0x38] sm:$0xff]   ;;  %v565_v41 = vld [vmem:[%s778_s5 + $0x40] sm:$0xff]  }
   0xd   :  { %v566_v42 = vld [vmem:[%s778_s5 + $0x48] sm:$0xff]   ;;  %v567_v43 = vld [vmem:[%s778_s5 + $0x50] sm:$0xff]   ;;  %v568_v44 = vld [vmem:[%s778_s5 + $0x58] sm:$0xff]  }
   0xe   :  { %166 = vmatpush1.bf16.msra.mxu0 %v535_v7  ;;  %v527_v56 = vld [vmem:[%s780_s6] ss:$0 sm:$0xff] }
   0xf   :  { %287 = vmatpush1.bf16.msra.mxu1 %v536_v8  ;;  %167 = vmatprep.subr.bf16.mxu0 %v571_v0 }
  0x10   :  { %288 = vmatprep.subr.bf16.mxu1 %v571_v0 }
  0x12   :  { %168 = vmatpush1.bf16.msra.mxu0 %v537_v9 }
  0x13   :  { %289 = vmatpush1.bf16.msra.mxu1 %v538_v10  ;;  %169 = vmatprep.subr.bf16.mxu0 %v571_v0 }
  0x14   :  { %290 = vmatprep.subr.bf16.mxu1 %v571_v0 }
  0x16   :  { %170 = vmatpush1.bf16.msra.mxu0 %v539_v11 }
  0x17   :  { %291 = vmatpush1.bf16.msra.mxu1 %v540_v12  ;;  %171 = vmatprep.subr.bf16.mxu0 %v571_v0 }
  0x18   :  { %292 = vmatprep.subr.bf16.mxu1 %v571_v0 }
  0x1a   :  { %172 = vmatpush1.bf16.msra.mxu0 %v541_v13 }
  0x1b   :  { %293 = vmatpush1.bf16.msra.mxu1 %v542_v14  ;;  %173 = vmatprep.subr.bf16.mxu0 %v571_v0 }
  0x1c   :  { %294 = vmatprep.subr.bf16.mxu1 %v571_v0 }
  0x1e   :  { %174 = vmatpush1.bf16.msra.mxu0 %v543_v19 }
  0x1f   :  { %295 = vmatpush1.bf16.msra.mxu1 %v544_v20  ;;  %175 = vmatprep.subr.bf16.mxu0 %v571_v0 }
  0x20   :  { %296 = vmatprep.subr.bf16.mxu1 %v571_v0 }
  0x22   :  { %176 = vmatpush1.bf16.msra.mxu0 %v545_v21 }
  0x23   :  { %297 = vmatpush1.bf16.msra.mxu1 %v546_v22  ;;  %177 = vmatprep.subr.bf16.mxu0 %v571_v0 }
  0x24   :  { %298 = vmatprep.subr.bf16.mxu1 %v571_v0 }
  0x26   :  { %178 = vmatpush1.bf16.msra.mxu0 %v547_v23 }
  0x27   :  { %299 = vmatpush1.bf16.msra.mxu1 %v548_v24  ;;  %179 = vmatprep.subr.bf16.mxu0 %v571_v0 }
  0x28   :  { %300 = vmatprep.subr.bf16.mxu1 %v571_v0 }
  0x2a   :  { %180 = vmatpush1.bf16.msra.mxu0 %v549_v25 }
  0x2b   :  { %301 = vmatpush1.bf16.msra.mxu1 %v550_v26  ;;  %181 = vmatprep.subr.bf16.mxu0 %v571_v0 }
  0x2c   :  { %302 = vmatprep.subr.bf16.mxu1 %v571_v0 }
  0x2e   :  { %182 = vmatpush1.bf16.msra.mxu0 %v551_v27 }
  0x2f   :  { %303 = vmatpush1.bf16.msra.mxu1 %v552_v28  ;;  %426 = vmatprep.subr.bf16.mxu0 %v571_v0 }
  0x31   :  { %192 = vmatmul.mubr.bf16.vlgmr.msra.gmra.mrb[0].mxu0 %v482_v30 }
  0x32   :  { %313 = vmatmul.mubr.bf16.vlgmr.msra.gmra.mrb[0].mxu1 %v497_v31  ;;  %427 = vmatpush1.bf16.msra.mxu0 %v557_v32 }
  0x33   :  { %428 = vmatprep.subr.bf16.mxu0 %v571_v0  ;;  %526 = vmatprep.mubr.msk.bf16.mxu0 %vm155_vm0, %v513_v33 }
  0x36   :  { %429 = vmatpush1.bf16.msra.mxu0 %v558_v34 }
  0x37   :  { %430 = vmatprep.subr.bf16.mxu0 %v571_v0 }
  0x3a   :  { %431 = vmatpush1.bf16.msra.mxu0 %v559_v35 }
  0x3b   :  { %432 = vmatprep.subr.bf16.mxu0 %v571_v0 }
  0x3e   :  { %433 = vmatpush1.bf16.msra.mxu0 %v560_v36 }
  0x3f   :  { %434 = vmatprep.subr.bf16.mxu0 %v571_v0 }
  0x42   :  { %435 = vmatpush1.bf16.msra.mxu0 %v561_v37 }
  0x43   :  { %436 = vmatprep.subr.bf16.mxu0 %v571_v0 }
  0x46   :  { %437 = vmatpush1.bf16.msra.mxu0 %v562_v38 }
  0x47   :  { %438 = vmatprep.subr.bf16.mxu0 %v571_v0 }
  0x4a   :  { %439 = vmatpush1.bf16.msra.mxu0 %v563_v39 }
  0x4b   :  { %440 = vmatprep.subr.bf16.mxu0 %v571_v0 }
  0x4e   :  { %441 = vmatpush1.bf16.msra.mxu0 %v564_v40 }
  0x4f   :  { %442 = vmatprep.subr.bf16.mxu0 %v571_v0 }
  0x52   :  { %443 = vmatpush1.bf16.msra.mxu0 %v565_v41 }
  0x53   :  { %444 = vmatprep.subr.bf16.mxu0 %v571_v0 }
  0x56   :  { %445 = vmatpush1.bf16.msra.mxu0 %v566_v42 }
  0x57   :  { %446 = vmatprep.subr.bf16.mxu0 %v571_v0 }
  0x5a   :  { %447 = vmatpush1.bf16.msra.mxu0 %v567_v43 }
  0x5b   :  { %448 = vmatprep.subr.bf16.mxu0 %v571_v0 }
  0x5e   :  { %449 = vmatpush1.bf16.msra.mxu0 %v568_v44 }
  0x61   :  { %459 = vmatmul.mubr.bf16.vlgmr.msra.gmra.mrb[4].mxu0 %v512_v45 }
 0x104   :  { %v193_v46 = vpop.f32.mrb[0].mxu0 }
 0x105   :  { %v195_v47 = vpop.f32.mrb[1].mxu0  ;;  %v314_v48 = vpop.f32.mrb[0].mxu1 }
 0x106   :  { %v315_v49 = vadd.f32 %v314_v48, %v193_v46  ;;  %v196_v50 = vpop.f32.mrb[2].mxu0  ;;  %v316_v51 = vpop.f32.mrb[1].mxu1 }
 0x107   :  { %v197_v52 = vpop.f32.mrb[3].mxu0  ;;  %v317_v53 = vpop.f32.mrb[2].mxu1 }
 0x108   :  { %v318_v54 = vpop.f32.mrb[3].mxu1 }
 0x134   :  { %v460_v55 = vpop.f32.mrb[4].mxu0 }
 0x135   :  { %v466_v57 = vadd.f32 %v460_v55, %v315_v49  ;;  %v462_v58 = vpop.f32.mrb[5].mxu0 }
 0x136   :  { %v463_v59 = vpop.f32.mrb[6].mxu0 }
 0x137   :  { %v474_v60 = vadd.f32 %v527_v56, %v466_v57  ;;  %v464_v61 = vpop.f32.mrb[7].mxu0 }
 0x139   :  { %v475_v62 = vmax.f32 %v474_v60, 0.0 }
 0x13b   :  { %v476_v63 = vpack.c.bf16 %v475_v62, %v475_v62 }
 0x13d   :  { %477 = vst [vmem:[%s781_s7] sm:$0xf] %v476_v63 }

// kernel: reference_encoder_forward.9
= control target key start
LH: loop header
LB: loop body
LE: loop exit
PB: predicated region body
PF: predicated region fallthrough
CT: control target
= control target key end

     0   :  { %s1184_s24 = smov 0   ;;  %s1367_s0 = inlined_call_operand.vmem [shape: bf16[16,256], index: 0, kind: input, shape index: {}]   ;;  %s1368_s1 = inlined_call_operand.vmem [shape: bf16[16,256], index: 1, kind: input, shape index: {}]   ;;  %s1369_s2 = inlined_call_operand.vmem [shape: bf16[16,256], index: 2, kind: input, shape index: {}]   ;;  %s1370_s3 = inlined_call_operand.vmem [shape: bf16[256,64], index: 3, kind: input, shape index: {}]   ;;  %s1371_s4 = inlined_call_operand.vmem [shape: bf16[256,64], index: 4, kind: input, shape index: {}]   ;;  %s1372_s5 = inlined_call_operand.vmem [shape: bf16[256,64], index: 5, kind: input, shape index: {}]   ;;  %s1373_s6 = inlined_call_operand.vmem [shape: f32[1,64], index: 6, kind: input, shape index: {}]   ;;  %s1374_s7 = inlined_call_operand.vmem [shape: bf16[16,64], index: 7, kind: output, shape index: {}]  }
   0x1 LB: > { %s936_s25 = sadd.s32 4294967295, %s1142_s24   ;;  %p940_p0 = scmp.ge.s32.totalorder %s1142_s24, 1  ;;  %s1142_s24 = sphi %s1184_s24, %s17_s24  }
   0x2   : > { %p257_p1 = scmp.lt.s32.totalorder %s1142_s24, 3 }
   0x4   : > { %p258_p2 = pnand %p940_p0, %p257_p1 }
   0x5   : > { %v1082_v0 = vld [vmem:[%s1371_s4 + $0x40] sm:$0xff] (!%p258_p2)   ;;  %v1086_v4 = vld [vmem:[%s1371_s4 + $0x48] sm:$0xff] (!%p258_p2)   ;;  %v1090_v8 = vld [vmem:[%s1371_s4 + $0x50] sm:$0xff] (!%p258_p2)   ;;  %p298_p3 = scmp.lt.s32.totalorder (!%p258_p2), %s936_s25, 1  ;;  %vm857_vm0 = vcmask (!%p258_p2), 519168  }
   0x6   : > { %261 = sbr.rel (%p258_p2) target bundleno = 295 (0x127), region = 48  ;;  %v1083_v1 = vld [vmem:[%s1370_s3 + $0x40] sm:$0xff] (!%p258_p2)   ;;  %1008 = vmatprep.subr.bf16.mxu0 (!%p258_p2), %v1082_v0  ;;  %v1087_v5 = vld [vmem:[%s1370_s3 + $0x48] sm:$0xff] (!%p258_p2)   ;;  %v1091_v9 = vld [vmem:[%s1370_s3 + $0x50] sm:$0xff] (!%p258_p2)  }
   0x7   : > { %v1084_v2 = vld [vmem:[%s1371_s4] sm:$0xff] (!%p258_p2)   ;;  %1030 = vmatprep.subr.bf16.mxu1 (!%p258_p2), %v1083_v1  ;;  %v1088_v6 = vld [vmem:[%s1371_s4 + $0x8] sm:$0xff] (!%p258_p2)   ;;  %v1092_v10 = vld [vmem:[%s1371_s4 + $0x10] sm:$0xff] (!%p258_p2)  }
   0x8   : > { %v1085_v3 = vld [vmem:[%s1370_s3] sm:$0xff] (!%p258_p2)   ;;  %1009 = vmatpush3.bf16.msra.mxu0 (!%p258_p2), %v1084_v2  ;;  %v1089_v7 = vld [vmem:[%s1370_s3 + $0x8] sm:$0xff] (!%p258_p2)   ;;  %v1093_v11 = vld [vmem:[%s1370_s3 + $0x10] sm:$0xff] (!%p258_p2)  }
   0x9   : > { %1031 = vmatpush3.bf16.msra.mxu1 (!%p258_p2), %v1085_v3  ;;  %1010 = vmatprep.subr.bf16.mxu0 (!%p258_p2), %v1086_v4  ;;  %v1094_v12 = vld [vmem:[%s1371_s4 + $0x58] sm:$0xff] (!%p258_p2)   ;;  %v1098_v16 = vld [vmem:[%s1371_s4 + $0x60] sm:$0xff] (!%p258_p2)   ;;  %v1102_v20 = vld [vmem:[%s1371_s4 + $0x68] sm:$0xff] (!%p258_p2)  }
   0xa   : > { %1032 = vmatprep.subr.bf16.mxu1 (!%p258_p2), %v1087_v5  ;;  %v1095_v13 = vld [vmem:[%s1370_s3 + $0x58] sm:$0xff] (!%p258_p2)   ;;  %v1099_v17 = vld [vmem:[%s1370_s3 + $0x60] sm:$0xff] (!%p258_p2)   ;;  %v1103_v21 = vld [vmem:[%s1370_s3 + $0x68] sm:$0xff] (!%p258_p2)  }
   0xb   : > { %v1096_v14 = vld [vmem:[%s1371_s4 + $0x18] sm:$0xff] (!%p258_p2)   ;;  %v1100_v18 = vld [vmem:[%s1371_s4 + $0x20] sm:$0xff] (!%p258_p2)   ;;  %v1104_v22 = vld [vmem:[%s1371_s4 + $0x28] sm:$0xff] (!%p258_p2)  }
   0xc   : > { %1011 = vmatpush3.bf16.msra.mxu0 (!%p258_p2), %v1088_v6  ;;  %v1097_v15 = vld [vmem:[%s1370_s3 + $0x18] sm:$0xff] (!%p258_p2)   ;;  %v1101_v19 = vld [vmem:[%s1370_s3 + $0x20] sm:$0xff] (!%p258_p2)   ;;  %v1105_v23 = vld [vmem:[%s1370_s3 + $0x28] sm:$0xff] (!%p258_p2)  }
   0xd   : > { %1033 = vmatpush3.bf16.msra.mxu1 %v1089_v7  ;;  %1012 = vmatprep.subr.bf16.mxu0 %v1090_v8  ;;  %s1376_s25 = smov (!%p298_p3, %s936_s25), 1  ;;  %v1106_v24 = vld [vmem:[%s1371_s4 + $0x70] sm:$0xff]   ;;  %v1110_v28 = vld [vmem:[%s1371_s4 + $0x78] sm:$0xff]   ;;  %v1118_v38 = vld [vmem:[%s1372_s5 + $0x40] sm:$0xff]  }
   0xe   : > { %1034 = vmatprep.subr.bf16.mxu1 %v1091_v9  ;;  %v1107_v25 = vld [vmem:[%s1370_s3 + $0x70] sm:$0xff]   ;;  %s1280_s15 = sshll.u32 %s1376_s25, 3  ;;  %v1111_v29 = vld [vmem:[%s1370_s3 + $0x78] sm:$0xff]   ;;  %v1119_v39 = vld [vmem:[%s1372_s5] sm:$0xff]  }
   0xf   : > { %v1108_v26 = vld [vmem:[%s1371_s4 + $0x30] sm:$0xff]   ;;  %s307_s26 = scalar_lea.vmem %s1368_s1, %s1280_s15  ;;  %s302_s29 = scalar_lea.vmem %s1367_s0, %s1280_s15  ;;  %v1112_v30 = vld [vmem:[%s1371_s4 + $0x38] sm:$0xff]   ;;  %v1120_v40 = vld [vmem:[%s1372_s5 + $0x48] sm:$0xff]  }
  0x10   : > { %1013 = vmatpush3.bf16.msra.mxu0 %v1092_v10  ;;  %v1109_v27 = vld [vmem:[%s1370_s3 + $0x30] sm:$0xff]   ;;  %v1113_v31 = vld [vmem:[%s1370_s3 + $0x38] sm:$0xff]   ;;  %v351_v32 = vld [vmem:[%s307_s26] sm:$0xff]  ;;  %s312_s30 = scalar_lea.vmem %s1369_s2, %s1280_s15 }
  0x11   : > { %1035 = vmatpush3.bf16.msra.mxu1 %v1093_v11  ;;  %1014 = vmatprep.subr.bf16.mxu0 %v1094_v12  ;;  %v318_v33 = vld [vmem:[%s302_s29] sm:$0xff]  ;;  %v948_v34 = vcombine.low %v351_v32, %v351_v32  ;;  %v949_v35 = vcombine.high %v351_v32, %v351_v32  ;;  %v1121_v41 = vld [vmem:[%s1372_s5 + $0x8] sm:$0xff]   ;;  %v1122_v42 = vld [vmem:[%s1372_s5 + $0x50] sm:$0xff]  }
  0x12   : > { %1036 = vmatprep.subr.bf16.mxu1 %v1095_v13  ;;  %v966_v36 = vcombine.low %v318_v33, %v318_v33  ;;  %v967_v37 = vcombine.high %v318_v33, %v318_v33  ;;  %v1123_v43 = vld [vmem:[%s1372_s5 + $0x10] sm:$0xff]   ;;  %v1124_v44 = vld [vmem:[%s1372_s5 + $0x58] sm:$0xff]   ;;  %v1126_v46 = vld [vmem:[%s1372_s5 + $0x60] sm:$0xff]  }
  0x13   : > { %519 = vmatprep.mubr.bf16.mxu0 %v949_v35  ;;  %v1125_v45 = vld [vmem:[%s1372_s5 + $0x18] sm:$0xff]   ;;  %v670_v47 = vld [vmem:[%s312_s30] sm:$0xff]  ;;  %v1128_v50 = vld [vmem:[%s1372_s5 + $0x68] sm:$0xff]   ;;  %s947_s30 = sshll.u32 %s1376_s25, 2 }
  0x14   : > { %1015 = vmatpush3.bf16.msra.mxu0 %v1096_v14  ;;  %662 = vmatprep.mubr.bf16.mxu1 %v967_v37  ;;  %v985_v48 = vcombine.high %v670_v47, %v670_v47  ;;  %v1127_v49 = vld [vmem:[%s1372_s5 + $0x20] sm:$0xff]   ;;  %v1129_v51 = vld [vmem:[%s1372_s5 + $0x28] sm:$0xff]   ;;  %v1130_v52 = vld [vmem:[%s1372_s5 + $0x70] sm:$0xff]   ;;  %v984_v56 = vcombine.low %v670_v47, %v670_v47  ;;  %s316_s10 = scalar_lea.vmem %s1374_s7, %s947_s30 }
  0x15   : > { %1037 = vmatpush3.bf16.msra.mxu1 %v1097_v15  ;;  %1016 = vmatprep.subr.bf16.mxu0 %v1098_v16  ;;  %v1131_v53 = vld [vmem:[%s1372_s5 + $0x30] sm:$0xff]   ;;  %v1132_v54 = vld [vmem:[%s1372_s5 + $0x78] sm:$0xff]   ;;  %v1002_v8 = vld [vmem:[%s1373_s6] ss:$0 sm:$0xff] }
  0x16   : > { %1038 = vmatprep.subr.bf16.mxu1 %v1099_v17  ;;  %v1133_v55 = vld [vmem:[%s1372_s5 + $0x38] sm:$0xff]  }
  0x18   : > { %1017 = vmatpush3.bf16.msra.mxu0 %v1100_v18 }
  0x19   : > { %1039 = vmatpush3.bf16.msra.mxu1 %v1101_v19  ;;  %1018 = vmatprep.subr.bf16.mxu0 %v1102_v20 }
  0x1a   : > { %1040 = vmatprep.subr.bf16.mxu1 %v1103_v21 }
  0x1c   : > { %1019 = vmatpush3.bf16.msra.mxu0 %v1104_v22 }
  0x1d   : > { %1041 = vmatpush3.bf16.msra.mxu1 %v1105_v23  ;;  %1020 = vmatprep.subr.bf16.mxu0 %v1106_v24 }
  0x1e   : > { %1042 = vmatprep.subr.bf16.mxu1 %v1107_v25 }
  0x20   : > { %1021 = vmatpush3.bf16.msra.mxu0 %v1108_v26 }
  0x21   : > { %1043 = vmatpush3.bf16.msra.mxu1 %v1109_v27  ;;  %1022 = vmatprep.subr.bf16.mxu0 %v1110_v28 }
  0x22   : > { %1044 = vmatprep.subr.bf16.mxu1 %v1111_v29 }
  0x24   : > { %1023 = vmatpush3.bf16.msra.mxu0 %v1112_v30 }
  0x25   : > { %1045 = vmatpush3.bf16.msra.mxu1 %v1113_v31  ;;  %1052 = vmatprep.subr.bf16.mxu0 %v1118_v38 }
  0x27   : > { %520 = vmatmul.mubr.bf16.vlgmr.msra.gmra.mrb[0].mxu0 %v948_v34 }
  0x28   : > { %663 = vmatmul.mubr.bf16.vlgmr.msra.gmra.mrb[0].mxu1 %v966_v36  ;;  %1053 = vmatpush3.bf16.msra.mxu0 %v1119_v39 }
  0x29   : > { %1054 = vmatprep.subr.bf16.mxu0 %v1120_v40  ;;  %838 = vmatprep.mubr.bf16.mxu0 %v985_v48 }
  0x2c   : > { %1055 = vmatpush3.bf16.msra.mxu0 %v1121_v41 }
  0x2d   : > { %1056 = vmatprep.subr.bf16.mxu0 %v1122_v42 }
  0x30   : > { %1057 = vmatpush3.bf16.msra.mxu0 %v1123_v43 }
  0x31   : > { %1058 = vmatprep.subr.bf16.mxu0 %v1124_v44 }
  0x34   : > { %1059 = vmatpush3.bf16.msra.mxu0 %v1125_v45 }
  0x35   : > { %1060 = vmatprep.subr.bf16.mxu0 %v1126_v46 }
  0x38   : > { %1061 = vmatpush3.bf16.msra.mxu0 %v1127_v49 }
  0x39   : > { %1062 = vmatprep.subr.bf16.mxu0 %v1128_v50 }
  0x3c   : > { %1063 = vmatpush3.bf16.msra.mxu0 %v1129_v51 }
  0x3d   : > { %1064 = vmatprep.subr.bf16.mxu0 %v1130_v52 }
  0x40   : > { %1065 = vmatpush3.bf16.msra.mxu0 %v1131_v53 }
  0x41   : > { %1066 = vmatprep.subr.bf16.mxu0 %v1132_v54 }
  0x44   : > { %1067 = vmatpush3.bf16.msra.mxu0 %v1133_v55 }
  0x47   : > { %839 = vmatmul.mubr.bf16.vlgmr.msra.gmra.mrb[4].mxu0 %v984_v56 }
  0xfa   : > { %v1024_v57 = vpop.f32.mrb[0].mxu0 }
  0xfb   : > { %v1046_v58 = vpop.f32.mrb[0].mxu1  ;;  %v1025_v59 = vpop.f32.mrb[1].mxu0 }
  0xfc   : > { %v1047_v60 = vpop.f32.mrb[1].mxu1  ;;  %v1026_v61 = vadd.f32 %v1025_v59, %v1024_v57  ;;  %v1027_v63 = vpop.f32.mrb[2].mxu0 }
  0xfd   : > { %v1048_v62 = vadd.f32 %v1047_v60, %v1046_v58  ;;  %v1049_v0 = vpop.f32.mrb[2].mxu1  ;;  %v1028_v1 = vpop.f32.mrb[3].mxu0 }
  0xfe   : > { %v1050_v2 = vpop.f32.mrb[3].mxu1 }
  0xff   : > { %v665_v3 = vadd.f32 %v1048_v62, %v1026_v61 }
 0x11a   : > { %v1068_v4 = vpop.f32.mrb[4].mxu0 }
 0x11b   : > { %v1069_v5 = vpop.f32.mrb[5].mxu0 }
 0x11c   : > { %v1070_v6 = vadd.f32 %v1069_v5, %v1068_v4  ;;  %v1071_v7 = vpop.f32.mrb[6].mxu0 }
 0x11d   : > { %v1072_v9 = vpop.f32.mrb[7].mxu0 }
 0x11e   : > { %v846_v10 = vadd.f32 %v1070_v6, %v665_v3 }
 0x120   : > { %v854_v11 = vadd.f32 %v1002_v8, %v846_v10 }
 0x122   : > { %v855_v12 = vmax.f32 %v854_v11, 0.0 }
 0x124   : > { %v856_v13 = vpack.c.bf16 %v855_v12, %v855_v12 }
 0x126   : > { %858 = vst.msk [vmem:[%s316_s10] sm:$0xf] %vm857_vm0, %v856_v13 }
 0x127 PF: > { %s17_s24 = sadd.s32 1, %s1142_s24  }
 0x128   : > { %p14_p4 = scmp.ge.s32.totalorder %s17_s24, 4  }
 0x12a   :  { %16 = sbr.rel (!%p14_p4) target bundleno = 1 (0x1), region = 84 }

// kernel: reference_encoder_forward.11
= control target key start
LH: loop header
LB: loop body
LE: loop exit
PB: predicated region body
PF: predicated region fallthrough
CT: control target
= control target key end

     0   :  { %v1727_v1 = vmov 0.0   ;;  %vm1728_vm0 = vmmov 0   ;;  %v143_v20 = vlaneseq  ;;  %v1729_v25 = vmov 1983009808   ;;  %s2153_s0 = inlined_call_operand.vmem [shape: bf16[4,384], index: 0, kind: input, shape index: {}]   ;;  %s2154_s1 = inlined_call_operand.vmem [shape: bf16[4,384], index: 1, kind: input, shape index: {}]   ;;  %s2155_s2 = inlined_call_operand.vmem [shape: bf16[4,384], index: 2, kind: input, shape index: {}]   ;;  %s2156_s3 = inlined_call_operand.vmem [shape: bf16[384,128], index: 3, kind: input, shape index: {}]   ;;  %s2157_s4 = inlined_call_operand.vmem [shape: bf16[384,128], index: 4, kind: input, shape index: {}]   ;;  %s2158_s5 = inlined_call_operand.vmem [shape: bf16[384,128], index: 5, kind: input, shape index: {}]   ;;  %s2159_s6 = inlined_call_operand.vmem [shape: f32[1,128], index: 6, kind: input, shape index: {}]   ;;  %s2160_s7 = inlined_call_operand.vmem [shape: f32[128,96], index: 7, kind: input, shape index: {}]   ;;  %s2161_s8 = inlined_call_operand.vmem [shape: f32[32,96], index: 8, kind: input, shape index: {}]   ;;  %s2162_s9 = inlined_call_operand.vmem [shape: f32[1,96], index: 9, kind: input, shape index: {}]   ;;  %s2163_s10 = inlined_call_operand.vmem [shape: f32[1,96], index: 10, kind: input, shape index: {}]   ;;  %s2164_s11 = inlined_call_operand.hbm [shape: f32[2,32], index: 11, kind: output, shape index: {}]  }
   0x1   :  { %v1616_v0 = vld [vmem:[%s2157_s4 + $0x40] sm:$0xff]   ;;  %1456 = vmatprep.subr.bf16.mxu1 %v1727_v1  ;;  %1472 = vmatprep.mubr.msk.bf16.mxu1 %vm1728_vm0, %v1727_v1  ;;  %v1619_v4 = vld [vmem:[%s2157_s4 + $0x48] sm:$0xff]   ;;  %v1622_v7 = vld [vmem:[%s2157_s4 + $0x50] sm:$0xff]   ;;  %v141_v26 = vunpack.c.l.s4 %v1729_v25 }
   0x2   :  { %v1617_v2 = vld [vmem:[%s2157_s4] sm:$0xff]   ;;  %1336 = vmatprep.subr.bf16.mxu0 %v1616_v0  ;;  %v1620_v5 = vld [vmem:[%s2157_s4 + $0x8] sm:$0xff]   ;;  %v1623_v8 = vld [vmem:[%s2157_s4 + $0x10] sm:$0xff]   ;;  %v144_v27 = vshrl.u32 %v143_v20, 7 }
   0x3   :  { %v1618_v3 = vld [vmem:[%s2157_s4 + $0x80] sm:$0xff]   ;;  %1337 = vmatpush3.bf16.msra.mxu0 %v1617_v2  ;;  %v1621_v6 = vld [vmem:[%s2157_s4 + $0x88] sm:$0xff]   ;;  %v1624_v9 = vld [vmem:[%s2157_s4 + $0x90] sm:$0xff]   ;;  %v142_v31 = vunpack.c.0.s8 %v141_v26 }
   0x4   :  { %1457 = vmatpush3.bf16.msra.mxu1 %v1618_v3  ;;  %1338 = vmatprep.subr.bf16.mxu0 %v1619_v4  ;;  %v1625_v10 = vld [vmem:[%s2157_s4 + $0x58] sm:$0xff]   ;;  %v1628_v13 = vld [vmem:[%s2157_s4 + $0x60] sm:$0xff]   ;;  %v1631_v16 = vld [vmem:[%s2157_s4 + $0x68] sm:$0xff]  }
   0x5   :  { %1458 = vmatprep.subr.bf16.mxu1 %v1727_v1  ;;  %v1626_v11 = vld [vmem:[%s2157_s4 + $0x18] sm:$0xff]   ;;  %v1629_v14 = vld [vmem:[%s2157_s4 + $0x20] sm:$0xff]   ;;  %v1632_v17 = vld [vmem:[%s2157_s4 + $0x28] sm:$0xff]   ;;  %v1882_v33 = vsub.s32 %v142_v31, %v144_v27 }
   0x6   :  { %v1627_v12 = vld [vmem:[%s2157_s4 + $0x98] sm:$0xff]   ;;  %v1630_v15 = vld [vmem:[%s2157_s4 + $0xa0] sm:$0xff]   ;;  %v1633_v18 = vld [vmem:[%s2157_s4 + $0xa8] sm:$0xff]  }
   0x7   :  { %1339 = vmatpush3.bf16.msra.mxu0 %v1620_v5  ;;  %v1634_v19 = vld [vmem:[%s2157_s4 + $0x70] sm:$0xff]   ;;  %v1637_v23 = vld [vmem:[%s2157_s4 + $0x78] sm:$0xff]   ;;  %v89_v28 = vld [vmem:[%s2154_s1] sm:$0x3f] }
   0x8   :  { %1459 = vmatpush3.bf16.msra.mxu1 %v1621_v6  ;;  %1340 = vmatprep.subr.bf16.mxu0 %v1622_v7  ;;  %v1635_v21 = vld [vmem:[%s2157_s4 + $0x30] sm:$0xff]   ;;  %v1638_v24 = vld [vmem:[%s2157_s4 + $0x38] sm:$0xff]   ;;  %v139_v30 = vcombine.high %v89_v28, %v89_v28  ;;  %v1641_v32 = vld [vmem:[%s2156_s3 + $0x40] sm:$0xff]   ;;  %v146_v34 = vrot.slane %v89_v28, %v1882_v33 }
   0x9   :  { %1460 = vmatprep.subr.bf16.mxu1 %v1727_v1  ;;  %v1636_v22 = vld [vmem:[%s2157_s4 + $0xb0] sm:$0xff]   ;;  %v1639_v29 = vld [vmem:[%s2157_s4 + $0xb8] sm:$0xff]   ;;  %v1643_v36 = vld [vmem:[%s2156_s3 + $0x80] sm:$0xff]  }
   0xa   :  { %v153_v35 = vrot.slane %v139_v30, %v1882_v33  ;;  %v154_v37 = vcombine.high %v146_v34, %v146_v34  ;;  %v1642_v38 = vld [vmem:[%s2156_s3] sm:$0xff]   ;;  %v1644_v39 = vld [vmem:[%s2156_s3 + $0x48] sm:$0xff]   ;;  %v1647_v42 = vld [vmem:[%s2156_s3 + $0x50] sm:$0xff]  }
   0xb   :  { %1341 = vmatpush3.bf16.msra.mxu0 %v1623_v8  ;;  %v1646_v40 = vld [vmem:[%s2156_s3 + $0x88] sm:$0xff]   ;;  %v1649_v43 = vld [vmem:[%s2156_s3 + $0x90] sm:$0xff]   ;;  %v1650_v45 = vld [vmem:[%s2156_s3 + $0x58] sm:$0xff]  }
   0xc   :  { %1461 = vmatpush3.bf16.msra.mxu1 %v1624_v9  ;;  %1342 = vmatprep.subr.bf16.mxu0 %v1625_v10  ;;  %v1645_v41 = vld [vmem:[%s2156_s3 + $0x8] sm:$0xff]   ;;  %v1648_v44 = vld [vmem:[%s2156_s3 + $0x10] sm:$0xff]   ;;  %v1652_v46 = vld [vmem:[%s2156_s3 + $0x98] sm:$0xff]  }
   0xd   :  { %1462 = vmatprep.subr.bf16.mxu1 %v1727_v1  ;;  %334 = vmatprep.mubr.bf16.mxu0 %v154_v37  ;;  %v1651_v47 = vld [vmem:[%s2156_s3 + $0x18] sm:$0xff]   ;;  %v1653_v48 = vld [vmem:[%s2156_s3 + $0x60] sm:$0xff]   ;;  %v1656_v53 = vld [vmem:[%s2156_s3 + $0x68] sm:$0xff]  }
   0xe   :  { %v1655_v49 = vld [vmem:[%s2156_s3 + $0xa0] sm:$0xff]   ;;  %v1658_v55 = vld [vmem:[%s2156_s3 + $0xa8] sm:$0xff]   ;;  %v1659_v57 = vld [vmem:[%s2156_s3 + $0x70] sm:$0xff]  }
   0xf   :  { %1343 = vmatpush3.bf16.msra.mxu0 %v1626_v11  ;;  %v40_v50 = vld [vmem:[%s2153_s0] sm:$0x3f]  ;;  %v1657_v56 = vld [vmem:[%s2156_s3 + $0x28] sm:$0xff]   ;;  %v1661_v58 = vld [vmem:[%s2156_s3 + $0xb0] sm:$0xff]  }
  0x10   :  { %1463 = vmatpush3.bf16.msra.mxu1 %v1627_v12  ;;  %1344 = vmatprep.subr.bf16.mxu0 %v1628_v13  ;;  %v1654_v51 = vld [vmem:[%s2156_s3 + $0x20] sm:$0xff]   ;;  %v390_v52 = vrot.slane %v40_v50, %v1882_v33  ;;  %v1660_v59 = vld [vmem:[%s2156_s3 + $0x30] sm:$0xff]   ;;  %v1662_v60 = vld [vmem:[%s2156_s3 + $0x78] sm:$0xff]   ;;  %v383_v61 = vcombine.high %v40_v50, %v40_v50 }
  0x11   :  { %1464 = vmatprep.subr.bf16.mxu1 %v1727_v1  ;;  %v1664_v62 = vld [vmem:[%s2156_s3 + $0xb8] sm:$0xff]   ;;  %v1666_v0 = vld [vmem:[%s2158_s5 + $0x40] sm:$0xff]   ;;  %v1669_v5 = vld [vmem:[%s2158_s5 + $0x48] sm:$0xff]  }
  0x12   :  { %v398_v54 = vcombine.high %v390_v52, %v390_v52  ;;  %v1663_v63 = vld [vmem:[%s2156_s3 + $0x38] sm:$0xff]   ;;  %v397_v2 = vrot.slane %v383_v61, %v1882_v33  ;;  %v1668_v3 = vld [vmem:[%s2158_s5 + $0x80] sm:$0xff]   ;;  %v1671_v6 = vld [vmem:[%s2158_s5 + $0x88] sm:$0xff]  }
  0x13   :  { %1345 = vmatpush3.bf16.msra.mxu0 %v1629_v14  ;;  %v1667_v4 = vld [vmem:[%s2158_s5] sm:$0xff]   ;;  %v1670_v7 = vld [vmem:[%s2158_s5 + $0x8] sm:$0xff]   ;;  %v1672_v8 = vld [vmem:[%s2158_s5 + $0x50] sm:$0xff]  }
  0x14   :  { %1465 = vmatpush3.bf16.msra.mxu1 %v1630_v15  ;;  %1346 = vmatprep.subr.bf16.mxu0 %v1631_v16  ;;  %v1674_v9 = vld [vmem:[%s2158_s5 + $0x90] sm:$0xff]   ;;  %v626_v11 = vld [vmem:[%s2155_s2] sm:$0x3f]  ;;  %v1675_v12 = vld [vmem:[%s2158_s5 + $0x58] sm:$0xff]  }
  0x15   :  { %1466 = vmatprep.subr.bf16.mxu1 %v1727_v1  ;;  %v1673_v10 = vld [vmem:[%s2158_s5 + $0x10] sm:$0xff]   ;;  %v683_v13 = vrot.slane %v626_v11, %v1882_v33 }
  0x17   :  { %1347 = vmatpush3.bf16.msra.mxu0 %v1632_v17 }
  0x18   :  { %1467 = vmatpush3.bf16.msra.mxu1 %v1633_v18  ;;  %1348 = vmatprep.subr.bf16.mxu0 %v1634_v19 }
  0x19   :  { %1468 = vmatprep.subr.bf16.mxu1 %v1727_v1 }
  0x1b   :  { %1349 = vmatpush3.bf16.msra.mxu0 %v1635_v21 }
  0x1c   :  { %1469 = vmatpush3.bf16.msra.mxu1 %v1636_v22  ;;  %1350 = vmatprep.subr.bf16.mxu0 %v1637_v23 }
  0x1d   :  { %1470 = vmatprep.subr.bf16.mxu1 %v1727_v1 }
  0x1f   :  { %1351 = vmatpush3.bf16.msra.mxu0 %v1638_v24 }
  0x20   :  { %1471 = vmatpush3.bf16.msra.mxu1 %v1639_v29  ;;  %1367 = vmatprep.subr.bf16.mxu0 %v1641_v32 }
  0x21   :  { %1476 = vmatprep.subr.bf16.mxu1 %v1727_v1 }
  0x22   :  { %335 = vmatmul.mubr.bf16.vlgmr.msra.gmra.mrb[0].mxu0 %v146_v34 }
  0x23   :  { %1473 = vmatmul.mubr.bf16.vlgmr.msra.gmra.mrb[0].mxu1 %v153_v35  ;;  %1368 = vmatpush3.bf16.msra.mxu0 %v1642_v38 }
  0x24   :  { %1477 = vmatpush3.bf16.msra.mxu1 %v1643_v36  ;;  %1369 = vmatprep.subr.bf16.mxu0 %v1644_v39 }
  0x25   :  { %1478 = vmatprep.subr.bf16.mxu1 %v1727_v1  ;;  %1492 = vmatprep.mubr.msk.bf16.mxu1 %vm1728_vm0, %v1727_v1 }
  0x26   :  { %578 = vmatprep.mubr.bf16.mxu0 %v398_v54 }
  0x27   :  { %1370 = vmatpush3.bf16.msra.mxu0 %v1645_v41 }
  0x28   :  { %1479 = vmatpush3.bf16.msra.mxu1 %v1646_v40  ;;  %1371 = vmatprep.subr.bf16.mxu0 %v1647_v42 }
  0x29   :  { %1480 = vmatprep.subr.bf16.mxu1 %v1727_v1 }
  0x2b   :  { %1372 = vmatpush3.bf16.msra.mxu0 %v1648_v44 }
  0x2c   :  { %1481 = vmatpush3.bf16.msra.mxu1 %v1649_v43  ;;  %1373 = vmatprep.subr.bf16.mxu0 %v1650_v45 }
  0x2d   :  { %1482 = vmatprep.subr.bf16.mxu1 %v1727_v1 }
  0x2f   :  { %1374 = vmatpush3.bf16.msra.mxu0 %v1651_v47 }
  0x30   :  { %1483 = vmatpush3.bf16.msra.mxu1 %v1652_v46  ;;  %1375 = vmatprep.subr.bf16.mxu0 %v1653_v48 }
  0x31   :  { %1484 = vmatprep.subr.bf16.mxu1 %v1727_v1 }
  0x33   :  { %1376 = vmatpush3.bf16.msra.mxu0 %v1654_v51 }
  0x34   :  { %1485 = vmatpush3.bf16.msra.mxu1 %v1655_v49  ;;  %1377 = vmatprep.subr.bf16.mxu0 %v1656_v53 }
  0x35   :  { %1486 = vmatprep.subr.bf16.mxu1 %v1727_v1 }
  0x37   :  { %1378 = vmatpush3.bf16.msra.mxu0 %v1657_v56 }
  0x38   :  { %1487 = vmatpush3.bf16.msra.mxu1 %v1658_v55  ;;  %1379 = vmatprep.subr.bf16.mxu0 %v1659_v57 }
  0x39   :  { %1488 = vmatprep.subr.bf16.mxu1 %v1727_v1 }
  0x3b   :  { %1380 = vmatpush3.bf16.msra.mxu0 %v1660_v59 }
  0x3c   :  { %1489 = vmatpush3.bf16.msra.mxu1 %v1661_v58  ;;  %1381 = vmatprep.subr.bf16.mxu0 %v1662_v60 }
  0x3d   :  { %1490 = vmatprep.subr.bf16.mxu1 %v1727_v1 }
  0x3f   :  { %1382 = vmatpush3.bf16.msra.mxu0 %v1663_v63 }
  0x40   :  { %1491 = vmatpush3.bf16.msra.mxu1 %v1664_v62  ;;  %1398 = vmatprep.subr.bf16.mxu0 %v1666_v0 }
  0x41   :  { %1496 = vmatprep.subr.bf16.mxu1 %v1727_v1 }
  0x42   :  { %579 = vmatmul.mubr.bf16.vlgmr.msra.gmra.mrb[4].mxu0 %v390_v52 }
  0x43   :  { %1493 = vmatmul.mubr.bf16.vlgmr.msra.gmra.mrb[4].mxu1 %v397_v2  ;;  %1399 = vmatpush3.bf16.msra.mxu0 %v1667_v4 }
  0x44   :  { %1497 = vmatpush3.bf16.msra.mxu1 %v1668_v3  ;;  %1400 = vmatprep.subr.bf16.mxu0 %v1669_v5 }
  0x45   :  { %1498 = vmatprep.subr.bf16.mxu1 %v1727_v1  ;;  %1512 = vmatprep.mubr.msk.bf16.mxu1 %vm1728_vm0, %v1727_v1 }
  0x47   :  { %1401 = vmatpush3.bf16.msra.mxu0 %v1670_v7 }
  0x48   :  { %1499 = vmatpush3.bf16.msra.mxu1 %v1671_v6  ;;  %1402 = vmatprep.subr.bf16.mxu0 %v1672_v8 }
  0x49   :  { %1500 = vmatprep.subr.bf16.mxu1 %v1727_v1 }
  0x4a   :  { %16 = vsyncpa [#allocation4], 0  ;;  %v1677_v14 = vld [vmem:[%s2158_s5 + $0x98] sm:$0xff]   ;;  %v691_v15 = vcombine.high %v683_v13, %v683_v13  ;;  %v1678_v17 = vld [vmem:[%s2158_s5 + $0x60] sm:$0xff]   ;;  %v676_v27 = vcombine.high %v626_v11, %v626_v11  ;;  %v1730_v35 = vmov 0.0|0.0   ;;  %s1731_s30 = smov 64  }
  0x4b   :  { %1403 = vmatpush3.bf16.msra.mxu0 %v1673_v10  ;;  %v1676_v16 = vld [vmem:[%s2158_s5 + $0x18] sm:$0xff]   ;;  %v1680_v18 = vld [vmem:[%s2158_s5 + $0xa0] sm:$0xff]   ;;  %v1681_v20 = vld [vmem:[%s2158_s5 + $0x68] sm:$0xff]   ;;  %vm1022_vm1 = vcmask 781312   ;;  %vm1036_vm2 = vcmask 261120   ;;  %vm1242_vm3 = vcmask 254976  }
  0x4c   :  { %1501 = vmatpush3.bf16.msra.mxu1 %v1674_v9  ;;  %1404 = vmatprep.subr.bf16.mxu0 %v1675_v12  ;;  %v1679_v19 = vld [vmem:[%s2158_s5 + $0x20] sm:$0xff]   ;;  %v1683_v21 = vld [vmem:[%s2158_s5 + $0xa8] sm:$0xff]   ;;  %v1684_v23 = vld [vmem:[%s2158_s5 + $0x70] sm:$0xff]   ;;  %v690_v32 = vrot.slane %v676_v27, %v1882_v33 }
  0x4d   :  { %1502 = vmatprep.subr.bf16.mxu1 %v1727_v1  ;;  %871 = vmatprep.mubr.bf16.mxu0 %v691_v15  ;;  %v1682_v22 = vld [vmem:[%s2158_s5 + $0x28] sm:$0xff]   ;;  %v1686_v24 = vld [vmem:[%s2158_s5 + $0xb0] sm:$0xff]   ;;  %v1687_v26 = vld [vmem:[%s2158_s5 + $0x78] sm:$0xff]  }
  0x4e   :  { %v1685_v25 = vld [vmem:[%s2158_s5 + $0x30] sm:$0xff]   ;;  %v1689_v28 = vld [vmem:[%s2158_s5 + $0xb8] sm:$0xff]   ;;  %v1032_v30 = vld [vmem:[%s2161_s8] sm:$0xff] }
  0x4f   :  { %1405 = vmatpush3.bf16.msra.mxu0 %v1676_v16  ;;  %v1688_v29 = vld [vmem:[%s2158_s5 + $0x38] sm:$0xff]   ;;  %v1033_v31 = vld [vmem:[%s2161_s8 + $0x8] sm:$0xff]  ;;  %v1034_v36 = vld [vmem:[%s2161_s8 + $0x10] sm:$0xff] }
  0x50   :  { %1503 = vmatpush3.bf16.msra.mxu1 %v1677_v14  ;;  %1406 = vmatprep.subr.bf16.mxu0 %v1678_v17  ;;  %v1598_v34 = vpack.c.bf16 %v1033_v31, %v1032_v30  ;;  %v1035_v37 = vld [vmem:[%s2161_s8 + $0x18] sm:$0xff]  ;;  %v929_v33 = vld [vmem:[%s2160_s7] sm:$0xff]  ;;  %v930_v39 = vld [vmem:[%s2160_s7 + $0x8] sm:$0xff] }
  0x51   :  { %1504 = vmatprep.subr.bf16.mxu1 %v1727_v1  ;;  %v1601_v38 = vpack.c.bf16 %v1035_v37, %v1034_v36  ;;  %v931_v40 = vld [vmem:[%s2160_s7 + $0x10] sm:$0xff]  ;;  %v1574_v41 = vpack.c.bf16 %v930_v39, %v929_v33  ;;  %v932_v42 = vld [vmem:[%s2160_s7 + $0x18] sm:$0xff]  ;;  %v933_v43 = vld [vmem:[%s2160_s7 + $0x20] sm:$0xff] }
  0x52   :  { %v934_v44 = vld [vmem:[%s2160_s7 + $0x28] sm:$0xff]  ;;  %v935_v46 = vld [vmem:[%s2160_s7 + $0x30] sm:$0xff]  ;;  %v936_v47 = vld [vmem:[%s2160_s7 + $0x38] sm:$0xff] }
  0x53   :  { %1407 = vmatpush3.bf16.msra.mxu0 %v1679_v19  ;;  %v1580_v45 = vpack.c.bf16 %v934_v44, %v933_v43  ;;  %v1583_v48 = vpack.c.bf16 %v936_v47, %v935_v46  ;;  %v937_v49 = vld [vmem:[%s2160_s7 + $0x40] sm:$0xff]  ;;  %v938_v50 = vld [vmem:[%s2160_s7 + $0x48] sm:$0xff]  ;;  %v939_v52 = vld [vmem:[%s2160_s7 + $0x50] sm:$0xff] }
  0x54   :  { %1505 = vmatpush3.bf16.msra.mxu1 %v1680_v18  ;;  %1408 = vmatprep.subr.bf16.mxu0 %v1681_v20  ;;  %v1586_v51 = vpack.c.bf16 %v938_v50, %v937_v49  ;;  %v940_v53 = vld [vmem:[%s2160_s7 + $0x58] sm:$0xff]  ;;  %v941_v55 = vld [vmem:[%s2160_s7 + $0x60] sm:$0xff]  ;;  %v942_v56 = vld [vmem:[%s2160_s7 + $0x68] sm:$0xff] }
  0x55   :  { %1506 = vmatprep.subr.bf16.mxu1 %v1727_v1  ;;  %v1589_v54 = vpack.c.bf16 %v940_v53, %v939_v52  ;;  %v1592_v57 = vpack.c.bf16 %v942_v56, %v941_v55  ;;  %v943_v58 = vld [vmem:[%s2160_s7 + $0x70] sm:$0xff]  ;;  %v944_v59 = vld [vmem:[%s2160_s7 + $0x78] sm:$0xff]  ;;  %v1332_v30 = vld [vmem:[%s2163_s10] ss:$0 sm:$0xff] }
  0x56   :  { %v1595_v60 = vpack.c.bf16 %v944_v59, %v943_v58 }
  0x57   :  { %1409 = vmatpush3.bf16.msra.mxu0 %v1682_v22 }
  0x58   :  { %1507 = vmatpush3.bf16.msra.mxu1 %v1683_v21  ;;  %1410 = vmatprep.subr.bf16.mxu0 %v1684_v23 }
  0x59   :  { %1508 = vmatprep.subr.bf16.mxu1 %v1727_v1 }
  0x5b   :  { %1411 = vmatpush3.bf16.msra.mxu0 %v1685_v25 }
  0x5c   :  { %1509 = vmatpush3.bf16.msra.mxu1 %v1686_v24  ;;  %1412 = vmatprep.subr.bf16.mxu0 %v1687_v26 }
  0x5d   :  { %1510 = vmatprep.subr.bf16.mxu1 %v1727_v1 }
  0x5f   :  { %1413 = vmatpush3.bf16.msra.mxu0 %v1688_v29  ;;  %v1330_v29 = vld [vmem:[%s2159_s6] ss:$0 sm:$0xff]  ;;  %s1732_s6 = smov 96  }
  0x60   :  { %1511 = vmatpush3.bf16.msra.mxu1 %v1689_v28  ;;  %1573 = vmatprep.subr.bf16.mxu0 %v1730_v35 }
  0x61   :  { %1597 = vmatprep.subr.bf16.mxu1 %v1730_v35 }
  0x62   :  { %872 = vmatmul.mubr.bf16.vlgmr.msra.gmra.mrb[8].mxu0 %v683_v13 }
  0x63   :  { %1513 = vmatmul.mubr.bf16.vlgmr.msra.gmra.mrb[8].mxu1 %v690_v32  ;;  %1548 = vmatprep.mubr.msk.f32.mxu0 %vm1728_vm0, %v1727_v1 }
  0x64   :  { %1599 = vmatpush3.bf16.msra.mxu1 %v1598_v34  ;;  %1559 = vmatprep.mubr.msk.f32.mxu1 %vm1728_vm0, %v1727_v1 }
  0x65   :  { %1600 = vmatprep.subr.bf16.mxu1 %v1730_v35  ;;  %1575 = vmatpush3.bf16.msra.mxu0 %v1574_v41 }
  0x66   :  { %1576 = vmatprep.subr.bf16.mxu0 %v1730_v35 }
  0x68   :  { %1602 = vmatpush3.bf16.msra.mxu1 %v1601_v38 }
  0x69   :  { %1603 = vmatprep.subr.bf16.mxu1 %v1730_v35 }
  0x6b   :  { %1560 = vmatmul.mubr.f32.vlgmr.msra.gmra.mrb[12].mxu1 %v1727_v1 }
  0x6c   :  { %1605 = vmatpush3.bf16.msra.mxu1 %v1598_v34  ;;  %1570 = vmatprep.mubr.msk.f32.mxu1 %vm1728_vm0, %v1727_v1  ;;  %v1577_v1 = vpack.c.bf16 %v932_v42, %v931_v40 }
  0x6d   :  { %1606 = vmatprep.subr.bf16.mxu1 %v1730_v35 }
  0x6e   :  { %1578 = vmatpush3.bf16.msra.mxu0 %v1577_v1 }
  0x6f   :  { %1579 = vmatprep.subr.bf16.mxu0 %v1730_v35 }
  0x70   :  { %1608 = vmatpush3.bf16.msra.mxu1 %v1601_v38  ;;  %v1331_v38 = vld [vmem:[%s2162_s9] ss:$0 sm:$0xff]  ;;  %s1733_s9 = smov [#allocation3]  }
  0x71   :  { %s1250_s10 = sshll.u32 %s1733_s9, 4  ;;  %s1251_s10 = int_to_ptr.vmem [resolvable:$true] %s1250_s10 }
  0x72   :  { %1581 = vmatpush3.bf16.msra.mxu0 %v1580_v45  ;;  %s1703_s12 = scalar_lea.vmem %s1251_s10, 32  ;;  %p1708_p1 = scmp.lt.s32.totalorder %s1251_s10, %s1251_s10 }
  0x73   :  { %1582 = vmatprep.subr.bf16.mxu0 %v1730_v35  ;;  %p1704_p0 = scmp.ne.s32.totalorder %s1251_s10, %s1703_s12  ;;  %p1709_p2 = scmp.lt.s32.totalorder %s1703_s12, %s1703_s12 }
  0x75   :  { %p1710_p3 = por %p1709_p2, %p1708_p1 }
  0x76   :  { %1584 = vmatpush3.bf16.msra.mxu0 %v1583_v48 }
  0x77   :  { %1585 = vmatprep.subr.bf16.mxu0 %v1730_v35  ;;  %p1711_p4 = pnand %p1710_p3, %p1704_p0 }
  0x7a   :  { %1587 = vmatpush3.bf16.msra.mxu0 %v1586_v51 }
  0x7b   :  { %1588 = vmatprep.subr.bf16.mxu0 %v1730_v35 }
  0x7e   :  { %1590 = vmatpush3.bf16.msra.mxu0 %v1589_v54 }
  0x7f   :  { %1591 = vmatprep.subr.bf16.mxu0 %v1730_v35 }
  0x82   :  { %1593 = vmatpush3.bf16.msra.mxu0 %v1592_v57 }
  0x83   :  { %1594 = vmatprep.subr.bf16.mxu0 %v1730_v35 }
  0x86   :  { %1596 = vmatpush3.bf16.msra.mxu0 %v1595_v60 }
  0xf5   :  { %v1352_v62 = vpop.f32.mrb[0].mxu0 }
  0xf6   :  { %v376_v61 = vpop.f32.mrb[0].mxu1  ;;  %v1353_v0 = vpop.f32.mrb[1].mxu0 }
  0xf7   :  { %v1474_v63 = vpop.f32.mrb[1].mxu1  ;;  %v1354_v3 = vadd.f32 %v1353_v0, %v1352_v62  ;;  %v1355_v4 = vpop.f32.mrb[2].mxu0 }
  0xf8   :  { %v379_v2 = vpop.f32.mrb[2].mxu1  ;;  %v1356_v6 = vpop.f32.mrb[3].mxu0 }
  0xf9   :  { %v1475_v5 = vpop.f32.mrb[3].mxu1  ;;  %v377_v7 = vadd.f32 %v1354_v3, %v376_v61 }
 0x115   :  { %v1383_v9 = vpop.f32.mrb[4].mxu0 }
 0x116   :  { %v620_v8 = vpop.f32.mrb[4].mxu1  ;;  %v1384_v11 = vpop.f32.mrb[5].mxu0 }
 0x117   :  { %v1494_v10 = vpop.f32.mrb[5].mxu1  ;;  %v1385_v13 = vadd.f32 %v1384_v11, %v1383_v9  ;;  %v1386_v14 = vpop.f32.mrb[6].mxu0 }
 0x118   :  { %v623_v12 = vpop.f32.mrb[6].mxu1  ;;  %v1387_v16 = vpop.f32.mrb[7].mxu0 }
 0x119   :  { %v1495_v15 = vpop.f32.mrb[7].mxu1  ;;  %v581_v17 = vadd.f32 %v1385_v13, %v377_v7 }
 0x11b   :  { %v621_v18 = vadd.f32 %v620_v8, %v581_v17 }
 0x135   :  { %v1414_v20 = vpop.f32.mrb[8].mxu0 }
 0x136   :  { %v913_v19 = vpop.f32.mrb[8].mxu1  ;;  %v1415_v22 = vpop.f32.mrb[9].mxu0 }
 0x137   :  { %v1514_v21 = vpop.f32.mrb[9].mxu1  ;;  %v1416_v24 = vadd.f32 %v1415_v22, %v1414_v20  ;;  %v1417_v25 = vpop.f32.mrb[10].mxu0 }
 0x138   :  { %v916_v23 = vpop.f32.mrb[10].mxu1  ;;  %v1418_v27 = vpop.f32.mrb[11].mxu0 }
 0x139   :  { %v1515_v26 = vpop.f32.mrb[11].mxu1  ;;  %v914_v28 = vadd.f32 %v1416_v24, %v913_v19 }
 0x13b   :  { %v919_v31 = vadd.f32 %v914_v28, %v621_v18 }
 0x13d   :  { %v927_v34 = vadd.f32 %v1330_v29, %v919_v31 }
 0x13e   :  { %v1106_v32 = vpop.f32.mrb[12].mxu1 }
 0x13f   :  { %v1107_v35 = vadd.f32 %v1332_v30, %v1106_v32  ;;  %v1561_v36 = vpop.f32.mrb[13].mxu1  ;;  %v928_v37 = vmax.f32 %v927_v34, 0.0 }
 0x141   :  { %1118 = vrot.lane.b32.xlu0 %v1107_v35, %s1731_s30  ;;  %1549 = vmatmul.mubr.f32.vlgmr.msra.gmra.mrb[12].mxu0 %v928_v37 }
 0x1b3   :  { %v1119_v45 = vpop.permute.xlu0 %1118 }
 0x214   :  { %v1018_v33 = vpop.f32.mrb[12].mxu0 }
 0x215   :  { %v1019_v39 = vadd.f32 %v1331_v38, %v1018_v33  ;;  %v1550_v40 = vpop.f32.mrb[13].mxu0 }
 0x217   :  { %1023 = vst.msk [vmem:[#allocation2] sm:$0xf] %vm1022_vm1, %v1019_v39 }
 0x21e   :  { %v1031_v41 = vld [vmem:[#allocation2] sm:$0x3]  ;;  %v1136_v60 = vld [vmem:[#allocation2 + $0x2] sm:$0x3] }
 0x21f   :  { %v1110_v42 = vadd.f32 %v1107_v35, %v1031_v41 }
 0x221   :  { %v1333_v1 = vmul.f32 -1.442695, %v1110_v42 }
 0x223   :  { %1691 = vpow2.f32 %v1333_v1 }
 0x22d   :  { %v1692_v43 = vpop.eup %1691 }
 0x22e   :  { %v1114_v44 = vadd.f32 1.0, %v1692_v43 }
 0x230   :  { %1693 = vrcp.f32 %v1114_v44 }
 0x23a   :  { %v1694_v46 = vpop.eup %1693 }
 0x23b   :  { %v1121_v47 = vmul.f32 %v1694_v46, %v1119_v45  ;;  %v1128_v51 = vsub.f32 1.0, %v1694_v46  ;;  %v1134_v53 = vmul.f32 0.0, %v1694_v46 }
 0x23d   :  { %1123 = vrot.lane.b32.xlu0 %v1121_v47, %s1731_s30 }
 0x2af   :  { %v1124_v48 = vpop.permute.xlu0 %1123 }
 0x2b0   :  { %v1126_v49 = vadd.f32 %v1124_v48, %v1031_v41 }
 0x2b2   :  { %1695 = vtanh.f32 %v1126_v49 }
 0x2bc   :  { %v1696_v50 = vpop.eup %1695 }
 0x2bd   :  { %1130 = vrot.lane.b32.xlu1 %v1696_v50, %s1732_s6 }
 0x32f   :  { %v1131_v52 = vpop.permute.xlu1 %1130 }
 0x330   :  { %v1133_v54 = vmul.f32 %v1131_v52, %v1128_v51 }
 0x332   :  { %v1135_v55 = vadd.f32 %v1134_v53, %v1133_v54 }
 0x334   :  { %1138 = vrot.lane.b32.xlu1 %v1135_v55, %s1732_s6 }
 0x3a6   :  { %v1139_v56 = vpop.permute.xlu1 %1138 }
 0x3a7   :  { %1571 = vmatmul.mubr.msk.f32.vlgmr.msra.gmra.mrb[14].mxu1 %vm1036_vm2, %v1139_v56 }
 0x47a   :  { %v1208_v57 = vpop.f32.mrb[14].mxu1 }
 0x47b   :  { %v1209_v58 = vadd.f32 %v1332_v30, %v1208_v57  ;;  %v1572_v59 = vpop.f32.mrb[15].mxu1 }
 0x47d   :  { %1220 = vrot.lane.b32.xlu0 %v1209_v58, %s1731_s30  ;;  %v1212_v61 = vadd.f32 %v1209_v58, %v1136_v60 }
 0x47f   :  { %v1335_v62 = vmul.f32 -1.442695, %v1212_v61 }
 0x481   :  { %1697 = vpow2.f32 %v1335_v62 }
 0x48b   :  { %v1698_v63 = vpop.eup %1697 }
 0x48c   :  { %v1216_v0 = vadd.f32 1.0, %v1698_v63 }
 0x48e   :  { %1699 = vrcp.f32 %v1216_v0 }
 0x498   :  { %v1700_v2 = vpop.eup %1699 }
 0x499   :  { %v1230_v8 = vsub.f32 1.0, %v1700_v2  ;;  %v1236_v10 = vmul.f32 %v1700_v2, %v1135_v55 }
 0x4ef   :  { %v1221_v3 = vpop.permute.xlu0 %1220 }
 0x4f0   :  { %v1223_v4 = vmul.f32 %v1700_v2, %v1221_v3 }
 0x4f2   :  { %1225 = vrot.lane.b32.xlu1 %v1223_v4, %s1731_s30 }
 0x564   :  { %v1226_v5 = vpop.permute.xlu1 %1225 }
 0x565   :  { %v1228_v6 = vadd.f32 %v1226_v5, %v1136_v60 }
 0x567   :  { %1701 = vtanh.f32 %v1228_v6 }
 0x571   :  { %v1702_v7 = vpop.eup %1701 }
 0x572   :  { %1232 = vrot.lane.b32.xlu0 %v1702_v7, %s1732_s6 }
 0x5e4   :  { %v1233_v9 = vpop.permute.xlu0 %1232 }
 0x5e5   :  { %v1235_v11 = vmul.f32 %v1233_v9, %v1230_v8 }
 0x5e7   :  { %v1237_v12 = vadd.f32 %v1236_v10, %v1235_v11 }
 0x5e9   :  { %1239 = vrot.lane.b32.xlu1 %v1237_v12, %s1732_s6 }
 0x65b   :  { %v1240_v13 = vpop.permute.xlu1 %1239 }
 0x65c   :  { %1243 = vst.msk [vmem:[#allocation3] sm:$0x3] %vm1242_vm3, %v1240_v13 }
 0x65d   :  { %1714 = shalt.err (!%p1711_p4)
}
 0x65e   :  { %s1715_s15 = scalar_lea.hbm %s2164_s11, 32 }
 0x65f   :  { %p1716_p5 = scmp.ne.s32.totalorder %s2164_s11, %s1715_s15  ;;  %p1719_p6 = scmp.lt.u32.totalorder %s1715_s15, %s2164_s11 }
 0x661   :  { %p1721_p7 = pnand %p1719_p6, %p1716_p5 }
 0x663   :  { %1724 = shalt.err (!%p1721_p7)
}
 0x664   :  { %1253 = dma.vmem_to_hbm [thread:$0]  %s1251_s10, 32, %s2164_s11, [#allocation4]  }
 0x665   :  { %1725 = dma.done.wait [#allocation4], 32  }
 0x666   :  { %1726 = vsyncadd [#allocation4], 4294967264 }
 0x667   :  { %1257 = vsyncpa [#allocation4], 1 }

</bundles_post_ra>
